<compile_context>
chip_gen: v7x
topology: tpu7x:2x2x1
jax: 0.10.0
libtpu: 0.0.40
codegen_flags: <defaults>
</compile_context>

<pallas_src>
import functools

import jax
import jax.numpy as jnp
from jax import lax
from jax.experimental import pallas as pl
from jax.experimental.pallas import tpu as pltpu

EPS = 1e-5

_CPARAMS = pltpu.CompilerParams(
    dimension_semantics=("parallel",),          # megacore: split batch over TCs
    vmem_limit_bytes=48 * 1024 * 1024,          # above the 16/32 MiB scoped defaults
)


def _full_spec(shape):
    nd = len(shape)
    return pl.BlockSpec(tuple(shape), lambda i: (0,) * nd)


def _batch_spec(shape):
    nd = len(shape)
    return pl.BlockSpec((1,) + tuple(shape[1:]),
                        lambda i: (i,) + (0,) * (nd - 1))


# --------------------------- in-kernel helpers -------------------------------
def _write_padded_tile(pad_ref, interior, H, W):
    """Fill a (H+2, W+2, C) scratch: zero only the 1-wide halo, write the
    interior once.  All stores are full-width in the (sublane, lane) layout
    dims; offsets only touch the leading (non-layout) row axis."""
    C = pad_ref.shape[-1]
    dt = pad_ref.dtype
    zrow = jnp.zeros((1, W + 2, C), dt)
    zcol = jnp.zeros((H, 1, C), dt)
    pad_ref[0:1] = zrow
    pad_ref[H + 1:H + 2] = zrow
    pad_ref[1:H + 1] = jnp.concatenate([zcol, interior, zcol], axis=1)


def _conv3x3(xp, w_ref, H, W, C, P):
    """3x3 'valid' conv on a padded (H+2, W+2, C) bf16 tile -> (H*W, P) f32.

    bf16 operands, f32 MXU accumulation.  Only 3 sublane-shifted slices are
    materialized (one per dx); dy indexes the leading (non-layout) axis, and
    the flatten is layout-preserving when W % 8 == 0.
    """
    acc = jnp.zeros((H * W, P), jnp.float32)
    for dx in range(3):
        sdx = xp[:, dx:dx + W, :]                        # (H+2, W, C)
        for dy in range(3):
            patch = sdx[dy:dy + H].reshape(H * W, C)     # free leading-axis slice
            acc = acc + jnp.dot(patch, w_ref[dy, dx],
                                preferred_element_type=jnp.float32)
    return acc


def _store_stats(st_ref, acc):
    """One-pass BN partials for this tile: per-channel sum and sum-of-squares."""
    st_ref[0, 0:1, :] = jnp.sum(acc, axis=0, keepdims=True)
    st_ref[0, 1:2, :] = jnp.sum(acc * acc, axis=0, keepdims=True)


# ------------------------------- kernels --------------------------------------
def _phase1_kernel(has_proj, x_ref, w1_ref, *rest):
    """conv1 (+ 1x1 projection conv) for one batch sample."""
    if has_proj:
        ws_ref, y1_ref, st1_ref, ysc_ref, stsc_ref, pad = rest
    else:
        y1_ref, st1_ref, pad = rest
    _, H, W, Cin = x_ref.shape
    P = w1_ref.shape[-1]

    xb = x_ref[0].astype(jnp.bfloat16)                   # bf16 feeds the MXU
    _write_padded_tile(pad, xb, H, W)

    acc1 = _conv3x3(pad[...], w1_ref, H, W, Cin, P)      # f32 accumulator
    y1_ref[0] = acc1.reshape(H, W, P)
    _store_stats(st1_ref, acc1)

    if has_proj:
        sc = jnp.dot(xb.reshape(H * W, Cin), ws_ref[...],
                     preferred_element_type=jnp.float32)
        ysc_ref[0] = sc.reshape(H, W, P)
        _store_stats(stsc_ref, sc)


def _phase2_kernel(y1_ref, a1_ref, b1_ref, w2_ref, y2_ref, st2_ref, pad):
    """Fused bn1 (a*x + b, f32) + relu + conv2 for one batch sample."""
    _, H, W, P = y1_ref.shape
    y1 = y1_ref[0].reshape(H * W, P)
    h1 = jnp.maximum(y1 * a1_ref[...] + b1_ref[...], 0.0)        # f32 elementwise
    _write_padded_tile(pad, h1.astype(jnp.bfloat16).reshape(H, W, P), H, W)

    acc2 = _conv3x3(pad[...], w2_ref, H, W, P, P)
    y2_ref[0] = acc2.reshape(H, W, P)
    _store_stats(st2_ref, acc2)


def _phase3_proj_kernel(y2_ref, sc_ref, a2_ref, b2_ref, as_ref, bs_ref, o_ref):
    """bn2 + projection-bn + add + relu on a lane-dense (rows, W*P) slab."""
    out = y2_ref[...] * a2_ref[...] + b2_ref[...]
    out = out + sc_ref[...] * as_ref[...] + bs_ref[...]
    o_ref[...] = jnp.maximum(out, 0.0)


def _phase3_id_kernel(y2_ref, sc_ref, a2_ref, b2_ref, o_ref):
    """bn2 + identity shortcut + relu on a lane-dense (rows, W*P) slab."""
    o_ref[...] = jnp.maximum(y2_ref[...] * a2_ref[...] + b2_ref[...] + sc_ref[...], 0.0)


# ------------------------------- wrapper ---------------------------------------
def _fold_bn(partials, gamma, beta, count):
    """Reduce per-tile (sum, sumsq) partials into fused BN scale/shift (1, C).
    Biased variance over (N,H,W), eps=1e-5 == PyTorch BatchNorm2d in training."""
    s = jnp.sum(partials[:, 0, :], axis=0)
    sq = jnp.sum(partials[:, 1, :], axis=0)
    mean = s / count
    var = jnp.maximum(sq / count - mean * mean, 0.0)     # guard E[x^2]-E[x]^2 cancellation
    a = gamma * lax.rsqrt(var + EPS)
    b = beta - a * mean
    return (a.reshape(1, -1).astype(jnp.float32),
            b.reshape(1, -1).astype(jnp.float32))


def residual_block(x_nchw, params, *, in_planes, planes, stride=1):
    # TODO(synk): stride > 1 (the downsampling variant) would need strided
    # output indexing in the conv kernels; only stride == 1 is implemented.
    assert stride == 1
    N, C, H, W = x_nchw.shape
    assert C == in_planes
    P = planes
    has_proj = in_planes != planes

    # TODO(synk): keep the surrounding network NHWC end-to-end so these two
    # boundary transposes (a full HBM read+write each) disappear.
    x = jnp.transpose(x_nchw, (0, 2, 3, 1)).astype(jnp.float32)   # NCHW -> NHWC

    w1 = params["w1"].astype(jnp.bfloat16)
    w2 = params["w2"].astype(jnp.bfloat16)

    # ---------------- phase 1: conv1 (+ projection conv) ----------------
    inputs1 = [x, w1]
    in_specs1 = [_batch_spec(x.shape), _full_spec(w1.shape)]
    out_shape1 = [jax.ShapeDtypeStruct((N, H, W, P), jnp.float32),
                  jax.ShapeDtypeStruct((N, 2, P), jnp.float32)]
    out_specs1 = [_batch_spec((N, H, W, P)), _batch_spec((N, 2, P))]
    if has_proj:
        ws = params["ws"].astype(jnp.bfloat16)
        inputs1.append(ws)
        in_specs1.append(_full_spec(ws.shape))
        out_shape1 += [jax.ShapeDtypeStruct((N, H, W, P), jnp.float32),
                       jax.ShapeDtypeStruct((N, 2, P), jnp.float32)]
        out_specs1 += [_batch_spec((N, H, W, P)), _batch_spec((N, 2, P))]

    res1 = pl.pallas_call(
        functools.partial(_phase1_kernel, has_proj),
        grid=(N,),
        in_specs=in_specs1, out_specs=out_specs1, out_shape=out_shape1,
        scratch_shapes=[pltpu.VMEM((H + 2, W + 2, in_planes), jnp.bfloat16)],
        compiler_params=_CPARAMS,
    )(*inputs1)
    if has_proj:
        y1, st1, ysc, stsc = res1
    else:
        y1, st1 = res1

    nhw = N * H * W
    a1, b1 = _fold_bn(st1, params["g1"], params["b1"], nhw)

    # ---------------- phase 2: bn1 + relu + conv2 ----------------
    y2, st2 = pl.pallas_call(
        _phase2_kernel,
        grid=(N,),
        in_specs=[_batch_spec(y1.shape), _full_spec((1, P)),
                  _full_spec((1, P)), _full_spec(w2.shape)],
        out_specs=[_batch_spec((N, H, W, P)), _batch_spec((N, 2, P))],
        out_shape=[jax.ShapeDtypeStruct((N, H, W, P), jnp.float32),
                   jax.ShapeDtypeStruct((N, 2, P), jnp.float32)],
        scratch_shapes=[pltpu.VMEM((H + 2, W + 2, P), jnp.bfloat16)],
        compiler_params=_CPARAMS,
    )(y1, a1, b1, w2)

    a2, b2 = _fold_bn(st2, params["g2"], params["b2"], nhw)

    # -------- phase 3: bn2 (+ bn_sc) + add + relu, lane-dense output --------
    tile_c = lambda v: jnp.tile(v, (1, W))               # (1, P) -> (1, W*P)
    y2s = y2.reshape(N * H, W * P)                       # layout-preserving
    row_spec = pl.BlockSpec((H, W * P), lambda i: (i, 0))
    vec_spec = _full_spec((1, W * P))

    if has_proj:
        asc, bsc = _fold_bn(stsc, params["gs"], params["bs"], nhw)
        inputs3 = [y2s, ysc.reshape(N * H, W * P),
                   tile_c(a2), tile_c(b2), tile_c(asc), tile_c(bsc)]
        kernel3 = _phase3_proj_kernel
    else:
        inputs3 = [y2s, x.reshape(N * H, W * P), tile_c(a2), tile_c(b2)]
        kernel3 = _phase3_id_kernel

    out = pl.pallas_call(
        kernel3,
        grid=(N,),
        in_specs=[row_spec, row_spec] + [vec_spec] * (len(inputs3) - 2),
        out_specs=row_spec,
        out_shape=jax.ShapeDtypeStruct((N * H, W * P), jnp.float32),
        compiler_params=_CPARAMS,
    )(*inputs3)

    out = out.reshape(N, H, W, P)
    return jnp.transpose(out, (0, 3, 1, 2))              # NHWC -> NCHW


# ------------------------- pure-JAX f32 reference -----------------------------
def ref_residual_block(x_nchw, params, in_planes, planes):
    x = jnp.transpose(x_nchw, (0, 2, 3, 1)).astype(jnp.float32)

    def conv(a, w):
        return lax.conv_general_dilated(
            a, w, (1, 1), "SAME",
            dimension_numbers=("NHWC", "HWIO", "NHWC"),
            precision=lax.Precision.HIGHEST)

    def bn(a, g, b):
        m = jnp.mean(a, axis=(0, 1, 2), keepdims=True)
        v = jnp.mean(jnp.square(a - m), axis=(0, 1, 2), keepdims=True)
        return g.reshape(1, 1, 1, -1) * (a - m) * lax.rsqrt(v + EPS) + b.reshape(1, 1, 1, -1)

    out = jax.nn.relu(bn(conv(x, params["w1"]), params["g1"], params["b1"]))
    out = bn(conv(out, params["w2"]), params["g2"], params["b2"])
    if in_planes != planes:
        sc = bn(conv(x, params["ws"][None, None, :, :]), params["gs"], params["bs"])
    else:
        sc = x
    return jnp.transpose(jax.nn.relu(out + sc), (0, 3, 1, 2))


def init_params(key, in_planes, planes):
    ks = jax.random.split(key, 9)
    p = dict(
        w1=0.1 * jax.random.normal(ks[0], (3, 3, in_planes, planes), jnp.float32),
        g1=1.0 + 0.1 * jax.random.normal(ks[1], (planes,), jnp.float32),
        b1=0.1 * jax.random.normal(ks[2], (planes,), jnp.float32),
        w2=0.1 * jax.random.normal(ks[3], (3, 3, planes, planes), jnp.float32),
        g2=1.0 + 0.1 * jax.random.normal(ks[4], (planes,), jnp.float32),
        b2=0.1 * jax.random.normal(ks[5], (planes,), jnp.float32),
    )
    if in_planes != planes:
        p.update(
            ws=0.1 * jax.random.normal(ks[6], (in_planes, planes), jnp.float32),
            gs=1.0 + 0.1 * jax.random.normal(ks[7], (planes,), jnp.float32),
            bs=0.1 * jax.random.normal(ks[8], (planes,), jnp.float32),
        )
    return p


if __name__ == "__main__":
    key = jax.random.PRNGKey(0)
    N, Cin, H, W = 2, 4, 16, 16
    x = jax.random.normal(key, (N, Cin, H, W), jnp.float32)

    # case 1: identity shortcut (in_planes == planes)
    # case 2: projection shortcut (1x1 conv + BN) when planes != in_planes
    for planes in (4, 8):
        params = init_params(jax.random.PRNGKey(planes), Cin, planes)
        fn = jax.jit(functools.partial(residual_block, in_planes=Cin, planes=planes))
        out = jax.block_until_ready(fn(x, params))
        assert out.shape == (N, planes, H, W)

        ref = ref_residual_block(x, params, Cin, planes)
        err_max = float(jnp.max(jnp.abs(out - ref)))
        err_mean = float(jnp.mean(jnp.abs(out - ref)))
        # bf16 MXU operands (f32 accumulation) vs the f32 HIGHEST reference:
        # expected max-abs error is ~1e-2 for these scales.
        assert err_max < 5e-2, f"planes={planes} max abs err {err_max}"
        assert err_mean < 1e-2, f"planes={planes} mean abs err {err_mean}"

    print("KERNEL_OK")
</pallas_src>

<mosaic_0001>
module attributes {stable_mosaic.version = 11 : i64} {
  func.func @_phase1_kernel(%arg0: i32, %arg1: memref<1x16x16x4xf32, #tpu.memory_space<vmem>>, %arg2: memref<3x3x4x4xbf16, #tpu.memory_space<vmem>>, %arg3: memref<1x16x16x4xf32, #tpu.memory_space<vmem>>, %arg4: memref<1x2x4xf32, #tpu.memory_space<vmem>>, %arg5: memref<18x18x4xbf16, #tpu.memory_space<vmem>>) attributes {dimension_semantics = [#tpu.dimension_semantics<parallel>], iteration_bounds = array<i64: 2>, scalar_prefetch = 0 : i64, scratch_operands = 1 : i64, tpu.core_type = #tpu.core_type<tc>, window_params = [{transform_indices = @transform_0, window_bounds = array<i64: 1, 16, 16, 4>}, {pipeline_mode = #tpu.pipeline_mode<synchronous>, transform_indices = @transform_1, window_bounds = array<i64: 3, 3, 4, 4>}, {transform_indices = @transform_2, window_bounds = array<i64: 1, 16, 16, 4>}, {transform_indices = @transform_3, window_bounds = array<i64: 1, 2, 4>}]} {
    %c0 = arith.constant 0 : index
    %c0_0 = arith.constant 0 : index
    %c0_1 = arith.constant 0 : index
    %c0_2 = arith.constant 0 : index
    %0 = vector.load %arg1[%c0, %c0_0, %c0_1, %c0_2] : memref<1x16x16x4xf32, #tpu.memory_space<vmem>>, vector<1x16x16x4xf32>
    %1 = vector.shape_cast %0 : vector<1x16x16x4xf32> to vector<16x16x4xf32>
    %2 = arith.truncf %1 : vector<16x16x4xf32> to vector<16x16x4xbf16>
    %cst = arith.constant 0.000000e+00 : bf16
    %3 = vector.broadcast %cst : bf16 to vector<1x18x4xbf16>
    %cst_3 = arith.constant 0.000000e+00 : bf16
    %4 = vector.broadcast %cst_3 : bf16 to vector<16x1x4xbf16>
    %c0_4 = arith.constant 0 : index
    %c0_5 = arith.constant 0 : index
    %c0_6 = arith.constant 0 : index
    %5 = vector.load %arg5[%c0_4, %c0_5, %c0_6] : memref<18x18x4xbf16, #tpu.memory_space<vmem>>, vector<1x18x4xbf16>
    tpu.vector_store %arg5[%c0_4, %c0_5, %c0_6], %3 {strides = array<i32>} : memref<18x18x4xbf16, #tpu.memory_space<vmem>>, vector<1x18x4xbf16>,
    %c17 = arith.constant 17 : index
    %c0_7 = arith.constant 0 : index
    %c0_8 = arith.constant 0 : index
    %6 = vector.load %arg5[%c17, %c0_7, %c0_8] : memref<18x18x4xbf16, #tpu.memory_space<vmem>>, vector<1x18x4xbf16>
    tpu.vector_store %arg5[%c17, %c0_7, %c0_8], %3 {strides = array<i32>} : memref<18x18x4xbf16, #tpu.memory_space<vmem>>, vector<1x18x4xbf16>,
    %7 = tpu.concatenate %4, %2, %4 in 1 : vector<16x1x4xbf16>, vector<16x16x4xbf16>, vector<16x1x4xbf16> -> vector<16x18x4xbf16>
    %c1 = arith.constant 1 : index
    %c0_9 = arith.constant 0 : index
    %c0_10 = arith.constant 0 : index
    %8 = vector.load %arg5[%c1, %c0_9, %c0_10] : memref<18x18x4xbf16, #tpu.memory_space<vmem>>, vector<16x18x4xbf16>
    tpu.vector_store %arg5[%c1, %c0_9, %c0_10], %7 {strides = array<i32>} : memref<18x18x4xbf16, #tpu.memory_space<vmem>>, vector<16x18x4xbf16>,
    %c0_11 = arith.constant 0 : index
    %c0_12 = arith.constant 0 : index
    %c0_13 = arith.constant 0 : index
    %9 = vector.load %arg5[%c0_11, %c0_12, %c0_13] : memref<18x18x4xbf16, #tpu.memory_space<vmem>>, vector<18x18x4xbf16>
    %cst_14 = arith.constant 0.000000e+00 : f32
    %10 = vector.broadcast %cst_14 : f32 to vector<256x4xf32>
    %11 = vector.extract_strided_slice %9 {offsets = [0, 0, 0], sizes = [18, 16, 4], strides = [1, 1, 1]} : vector<18x18x4xbf16> to vector<18x16x4xbf16>
    %12 = vector.extract_strided_slice %11 {offsets = [0, 0, 0], sizes = [16, 16, 4], strides = [1, 1, 1]} : vector<18x16x4xbf16> to vector<16x16x4xbf16>
    %13 = vector.shape_cast %12 : vector<16x16x4xbf16> to vector<256x4xbf16>
    %c0_15 = arith.constant 0 : index
    %c0_16 = arith.constant 0 : index
    %c0_17 = arith.constant 0 : index
    %c0_18 = arith.constant 0 : index
    %14 = vector.load %arg2[%c0_15, %c0_16, %c0_17, %c0_18] : memref<3x3x4x4xbf16, #tpu.memory_space<vmem>>, vector<1x1x4x4xbf16>
    %15 = vector.shape_cast %14 : vector<1x1x4x4xbf16> to vector<4x4xbf16>
    %cst_19 = arith.constant dense<0.000000e+00> : vector<256x4xf32>
    %16 = tpu.matmul %13, %15, %cst_19 {dimension_numbers = #tpu.dot_dimension_numbers<[1], [0], [0], [1], [0, 0, 1, 1], [], []>} : vector<256x4xbf16>, vector<4x4xbf16>, vector<256x4xf32> -> vector<256x4xf32>
    %17 = arith.addf %10, %16 : vector<256x4xf32>
    %18 = vector.extract_strided_slice %11 {offsets = [1, 0, 0], sizes = [16, 16, 4], strides = [1, 1, 1]} : vector<18x16x4xbf16> to vector<16x16x4xbf16>
    %19 = vector.shape_cast %18 : vector<16x16x4xbf16> to vector<256x4xbf16>
    %c1_20 = arith.constant 1 : index
    %c0_21 = arith.constant 0 : index
    %c0_22 = arith.constant 0 : index
    %c0_23 = arith.constant 0 : index
    %20 = vector.load %arg2[%c1_20, %c0_21, %c0_22, %c0_23] : memref<3x3x4x4xbf16, #tpu.memory_space<vmem>>, vector<1x1x4x4xbf16>
    %21 = vector.shape_cast %20 : vector<1x1x4x4xbf16> to vector<4x4xbf16>
    %cst_24 = arith.constant dense<0.000000e+00> : vector<256x4xf32>
    %22 = tpu.matmul %19, %21, %cst_24 {dimension_numbers = #tpu.dot_dimension_numbers<[1], [0], [0], [1], [0, 0, 1, 1], [], []>} : vector<256x4xbf16>, vector<4x4xbf16>, vector<256x4xf32> -> vector<256x4xf32>
    %23 = arith.addf %17, %22 : vector<256x4xf32>
    %24 = vector.extract_strided_slice %11 {offsets = [2, 0, 0], sizes = [16, 16, 4], strides = [1, 1, 1]} : vector<18x16x4xbf16> to vector<16x16x4xbf16>
    %25 = vector.shape_cast %24 : vector<16x16x4xbf16> to vector<256x4xbf16>
    %c2 = arith.constant 2 : index
    %c0_25 = arith.constant 0 : index
    %c0_26 = arith.constant 0 : index
    %c0_27 = arith.constant 0 : index
    %26 = vector.load %arg2[%c2, %c0_25, %c0_26, %c0_27] : memref<3x3x4x4xbf16, #tpu.memory_space<vmem>>, vector<1x1x4x4xbf16>
    %27 = vector.shape_cast %26 : vector<1x1x4x4xbf16> to vector<4x4xbf16>
    %cst_28 = arith.constant dense<0.000000e+00> : vector<256x4xf32>
    %28 = tpu.matmul %25, %27, %cst_28 {dimension_numbers = #tpu.dot_dimension_numbers<[1], [0], [0], [1], [0, 0, 1, 1], [], []>} : vector<256x4xbf16>, vector<4x4xbf16>, vector<256x4xf32> -> vector<256x4xf32>
    %29 = arith.addf %23, %28 : vector<256x4xf32>
    %30 = vector.extract_strided_slice %9 {offsets = [0, 1, 0], sizes = [18, 16, 4], strides = [1, 1, 1]} : vector<18x18x4xbf16> to vector<18x16x4xbf16>
    %31 = vector.extract_strided_slice %30 {offsets = [0, 0, 0], sizes = [16, 16, 4], strides = [1, 1, 1]} : vector<18x16x4xbf16> to vector<16x16x4xbf16>
    %32 = vector.shape_cast %31 : vector<16x16x4xbf16> to vector<256x4xbf16>
    %c0_29 = arith.constant 0 : index
    %c1_30 = arith.constant 1 : index
    %c0_31 = arith.constant 0 : index
    %c0_32 = arith.constant 0 : index
    %33 = vector.load %arg2[%c0_29, %c1_30, %c0_31, %c0_32] : memref<3x3x4x4xbf16, #tpu.memory_space<vmem>>, vector<1x1x4x4xbf16>
    %34 = vector.shape_cast %33 : vector<1x1x4x4xbf16> to vector<4x4xbf16>
    %cst_33 = arith.constant dense<0.000000e+00> : vector<256x4xf32>
    %35 = tpu.matmul %32, %34, %cst_33 {dimension_numbers = #tpu.dot_dimension_numbers<[1], [0], [0], [1], [0, 0, 1, 1], [], []>} : vector<256x4xbf16>, vector<4x4xbf16>, vector<256x4xf32> -> vector<256x4xf32>
    %36 = arith.addf %29, %35 : vector<256x4xf32>
    %37 = vector.extract_strided_slice %30 {offsets = [1, 0, 0], sizes = [16, 16, 4], strides = [1, 1, 1]} : vector<18x16x4xbf16> to vector<16x16x4xbf16>
    %38 = vector.shape_cast %37 : vector<16x16x4xbf16> to vector<256x4xbf16>
    %c1_34 = arith.constant 1 : index
    %c1_35 = arith.constant 1 : index
    %c0_36 = arith.constant 0 : index
    %c0_37 = arith.constant 0 : index
    %39 = vector.load %arg2[%c1_34, %c1_35, %c0_36, %c0_37] : memref<3x3x4x4xbf16, #tpu.memory_space<vmem>>, vector<1x1x4x4xbf16>
    %40 = vector.shape_cast %39 : vector<1x1x4x4xbf16> to vector<4x4xbf16>
    %cst_38 = arith.constant dense<0.000000e+00> : vector<256x4xf32>
    %41 = tpu.matmul %38, %40, %cst_38 {dimension_numbers = #tpu.dot_dimension_numbers<[1], [0], [0], [1], [0, 0, 1, 1], [], []>} : vector<256x4xbf16>, vector<4x4xbf16>, vector<256x4xf32> -> vector<256x4xf32>
    %42 = arith.addf %36, %41 : vector<256x4xf32>
    %43 = vector.extract_strided_slice %30 {offsets = [2, 0, 0], sizes = [16, 16, 4], strides = [1, 1, 1]} : vector<18x16x4xbf16> to vector<16x16x4xbf16>
    %44 = vector.shape_cast %43 : vector<16x16x4xbf16> to vector<256x4xbf16>
    %c2_39 = arith.constant 2 : index
    %c1_40 = arith.constant 1 : index
    %c0_41 = arith.constant 0 : index
    %c0_42 = arith.constant 0 : index
    %45 = vector.load %arg2[%c2_39, %c1_40, %c0_41, %c0_42] : memref<3x3x4x4xbf16, #tpu.memory_space<vmem>>, vector<1x1x4x4xbf16>
    %46 = vector.shape_cast %45 : vector<1x1x4x4xbf16> to vector<4x4xbf16>
    %cst_43 = arith.constant dense<0.000000e+00> : vector<256x4xf32>
    %47 = tpu.matmul %44, %46, %cst_43 {dimension_numbers = #tpu.dot_dimension_numbers<[1], [0], [0], [1], [0, 0, 1, 1], [], []>} : vector<256x4xbf16>, vector<4x4xbf16>, vector<256x4xf32> -> vector<256x4xf32>
    %48 = arith.addf %42, %47 : vector<256x4xf32>
    %49 = vector.extract_strided_slice %9 {offsets = [0, 2, 0], sizes = [18, 16, 4], strides = [1, 1, 1]} : vector<18x18x4xbf16> to vector<18x16x4xbf16>
    %50 = vector.extract_strided_slice %49 {offsets = [0, 0, 0], sizes = [16, 16, 4], strides = [1, 1, 1]} : vector<18x16x4xbf16> to vector<16x16x4xbf16>
    %51 = vector.shape_cast %50 : vector<16x16x4xbf16> to vector<256x4xbf16>
    %c0_44 = arith.constant 0 : index
    %c2_45 = arith.constant 2 : index
    %c0_46 = arith.constant 0 : index
    %c0_47 = arith.constant 0 : index
    %52 = vector.load %arg2[%c0_44, %c2_45, %c0_46, %c0_47] : memref<3x3x4x4xbf16, #tpu.memory_space<vmem>>, vector<1x1x4x4xbf16>
    %53 = vector.shape_cast %52 : vector<1x1x4x4xbf16> to vector<4x4xbf16>
    %cst_48 = arith.constant dense<0.000000e+00> : vector<256x4xf32>
    %54 = tpu.matmul %51, %53, %cst_48 {dimension_numbers = #tpu.dot_dimension_numbers<[1], [0], [0], [1], [0, 0, 1, 1], [], []>} : vector<256x4xbf16>, vector<4x4xbf16>, vector<256x4xf32> -> vector<256x4xf32>
    %55 = arith.addf %48, %54 : vector<256x4xf32>
    %56 = vector.extract_strided_slice %49 {offsets = [1, 0, 0], sizes = [16, 16, 4], strides = [1, 1, 1]} : vector<18x16x4xbf16> to vector<16x16x4xbf16>
    %57 = vector.shape_cast %56 : vector<16x16x4xbf16> to vector<256x4xbf16>
    %c1_49 = arith.constant 1 : index
    %c2_50 = arith.constant 2 : index
    %c0_51 = arith.constant 0 : index
    %c0_52 = arith.constant 0 : index
    %58 = vector.load %arg2[%c1_49, %c2_50, %c0_51, %c0_52] : memref<3x3x4x4xbf16, #tpu.memory_space<vmem>>, vector<1x1x4x4xbf16>
    %59 = vector.shape_cast %58 : vector<1x1x4x4xbf16> to vector<4x4xbf16>
    %cst_53 = arith.constant dense<0.000000e+00> : vector<256x4xf32>
    %60 = tpu.matmul %57, %59, %cst_53 {dimension_numbers = #tpu.dot_dimension_numbers<[1], [0], [0], [1], [0, 0, 1, 1], [], []>} : vector<256x4xbf16>, vector<4x4xbf16>, vector<256x4xf32> -> vector<256x4xf32>
    %61 = arith.addf %55, %60 : vector<256x4xf32>
    %62 = vector.extract_strided_slice %49 {offsets = [2, 0, 0], sizes = [16, 16, 4], strides = [1, 1, 1]} : vector<18x16x4xbf16> to vector<16x16x4xbf16>
    %63 = vector.shape_cast %62 : vector<16x16x4xbf16> to vector<256x4xbf16>
    %c2_54 = arith.constant 2 : index
    %c2_55 = arith.constant 2 : index
    %c0_56 = arith.constant 0 : index
    %c0_57 = arith.constant 0 : index
    %64 = vector.load %arg2[%c2_54, %c2_55, %c0_56, %c0_57] : memref<3x3x4x4xbf16, #tpu.memory_space<vmem>>, vector<1x1x4x4xbf16>
    %65 = vector.shape_cast %64 : vector<1x1x4x4xbf16> to vector<4x4xbf16>
    %cst_58 = arith.constant dense<0.000000e+00> : vector<256x4xf32>
    %66 = tpu.matmul %63, %65, %cst_58 {dimension_numbers = #tpu.dot_dimension_numbers<[1], [0], [0], [1], [0, 0, 1, 1], [], []>} : vector<256x4xbf16>, vector<4x4xbf16>, vector<256x4xf32> -> vector<256x4xf32>
    %67 = arith.addf %61, %66 : vector<256x4xf32>
    %68 = vector.shape_cast %67 : vector<256x4xf32> to vector<16x16x4xf32>
    %c0_59 = arith.constant 0 : index
    %c0_60 = arith.constant 0 : index
    %c0_61 = arith.constant 0 : index
    %c0_62 = arith.constant 0 : index
    %69 = vector.load %arg3[%c0_59, %c0_60, %c0_61, %c0_62] : memref<1x16x16x4xf32, #tpu.memory_space<vmem>>, vector<1x16x16x4xf32>
    %70 = vector.shape_cast %69 : vector<1x16x16x4xf32> to vector<16x16x4xf32>
    %71 = vector.shape_cast %68 : vector<16x16x4xf32> to vector<1x16x16x4xf32>
    tpu.vector_store %arg3[%c0_59, %c0_60, %c0_61, %c0_62], %71 {strides = array<i32>} : memref<1x16x16x4xf32, #tpu.memory_space<vmem>>, vector<1x16x16x4xf32>,
    %cst_63 = arith.constant dense<0.000000e+00> : vector<4xf32>
    %72 = vector.multi_reduction <add>, %67, %cst_63 [0] : vector<256x4xf32> to vector<4xf32>
    %73 = vector.shape_cast %72 : vector<4xf32> to vector<1x4xf32>
    %c0_64 = arith.constant 0 : index
    %c0_65 = arith.constant 0 : index
    %c0_66 = arith.constant 0 : index
    %74 = vector.load %arg4[%c0_64, %c0_65, %c0_66] : memref<1x2x4xf32, #tpu.memory_space<vmem>>, vector<1x1x4xf32>
    %75 = vector.shape_cast %74 : vector<1x1x4xf32> to vector<1x4xf32>
    %76 = vector.shape_cast %73 : vector<1x4xf32> to vector<1x1x4xf32>
    tpu.vector_store %arg4[%c0_64, %c0_65, %c0_66], %76 {strides = array<i32>} : memref<1x2x4xf32, #tpu.memory_space<vmem>>, vector<1x1x4xf32>,
    %77 = arith.mulf %67, %67 : vector<256x4xf32>
    %cst_67 = arith.constant dense<0.000000e+00> : vector<4xf32>
    %78 = vector.multi_reduction <add>, %77, %cst_67 [0] : vector<256x4xf32> to vector<4xf32>
    %79 = vector.shape_cast %78 : vector<4xf32> to vector<1x4xf32>
    %c0_68 = arith.constant 0 : index
    %c1_69 = arith.constant 1 : index
    %c0_70 = arith.constant 0 : index
    %80 = vector.load %arg4[%c0_68, %c1_69, %c0_70] : memref<1x2x4xf32, #tpu.memory_space<vmem>>, vector<1x1x4xf32>
    %81 = vector.shape_cast %80 : vector<1x1x4xf32> to vector<1x4xf32>
    %82 = vector.shape_cast %79 : vector<1x4xf32> to vector<1x1x4xf32>
    tpu.vector_store %arg4[%c0_68, %c1_69, %c0_70], %82 {strides = array<i32>} : memref<1x2x4xf32, #tpu.memory_space<vmem>>, vector<1x1x4xf32>,
    return
  }
  func.func @transform_0(%arg0: i32) -> (i32, i32, i32, i32) {
    %c0_i32 = arith.constant 0 : i32
    %c0_i32_0 = arith.constant 0 : i32
    %c0_i32_1 = arith.constant 0 : i32
    %c0_i32_2 = arith.constant 0 : i32
    return %arg0, %c0_i32, %c0_i32_0, %c0_i32_1 : i32, i32, i32, i32
  }
  func.func @transform_1(%arg0: i32) -> (i32, i32, i32, i32) {
    %c0_i32 = arith.constant 0 : i32
    %c0_i32_0 = arith.constant 0 : i32
    %c0_i32_1 = arith.constant 0 : i32
    %c0_i32_2 = arith.constant 0 : i32
    %c0_i32_3 = arith.constant 0 : i32
    return %c0_i32, %c0_i32_0, %c0_i32_1, %c0_i32_2 : i32, i32, i32, i32
  }
  func.func @transform_2(%arg0: i32) -> (i32, i32, i32, i32) {
    %c0_i32 = arith.constant 0 : i32
    %c0_i32_0 = arith.constant 0 : i32
    %c0_i32_1 = arith.constant 0 : i32
    %c0_i32_2 = arith.constant 0 : i32
    return %arg0, %c0_i32, %c0_i32_0, %c0_i32_1 : i32, i32, i32, i32
  }
  func.func @transform_3(%arg0: i32) -> (i32, i32, i32) {
    %c0_i32 = arith.constant 0 : i32
    %c0_i32_0 = arith.constant 0 : i32
    %c0_i32_1 = arith.constant 0 : i32
    return %arg0, %c0_i32, %c0_i32_0 : i32, i32, i32
  }
}

module attributes {stable_mosaic.version = 11 : i64} {
  func.func @_phase2_kernel(%arg0: i32, %arg1: memref<1x16x16x4xf32, #tpu.memory_space<vmem>>, %arg2: memref<1x4xf32, #tpu.memory_space<vmem>>, %arg3: memref<1x4xf32, #tpu.memory_space<vmem>>, %arg4: memref<3x3x4x4xbf16, #tpu.memory_space<vmem>>, %arg5: memref<1x16x16x4xf32, #tpu.memory_space<vmem>>, %arg6: memref<1x2x4xf32, #tpu.memory_space<vmem>>, %arg7: memref<18x18x4xbf16, #tpu.memory_space<vmem>>) attributes {dimension_semantics = [#tpu.dimension_semantics<parallel>], iteration_bounds = array<i64: 2>, scalar_prefetch = 0 : i64, scratch_operands = 1 : i64, tpu.core_type = #tpu.core_type<tc>, window_params = [{transform_indices = @transform_0, window_bounds = array<i64: 1, 16, 16, 4>}, {pipeline_mode = #tpu.pipeline_mode<synchronous>, transform_indices = @transform_1, window_bounds = array<i64: 1, 4>}, {pipeline_mode = #tpu.pipeline_mode<synchronous>, transform_indices = @transform_2, window_bounds = array<i64: 1, 4>}, {pipeline_mode = #tpu.pipeline_mode<synchronous>, transform_indices = @transform_3, window_bounds = array<i64: 3, 3, 4, 4>}, {transform_indices = @transform_4, window_bounds = array<i64: 1, 16, 16, 4>}, {transform_indices = @transform_5, window_bounds = array<i64: 1, 2, 4>}]} {
    %c0 = arith.constant 0 : index
    %c0_0 = arith.constant 0 : index
    %c0_1 = arith.constant 0 : index
    %c0_2 = arith.constant 0 : index
    %0 = vector.load %arg1[%c0, %c0_0, %c0_1, %c0_2] : memref<1x16x16x4xf32, #tpu.memory_space<vmem>>, vector<1x16x16x4xf32>
    %1 = vector.shape_cast %0 : vector<1x16x16x4xf32> to vector<16x16x4xf32>
    %2 = vector.shape_cast %1 : vector<16x16x4xf32> to vector<256x4xf32>
    %c0_3 = arith.constant 0 : index
    %c0_4 = arith.constant 0 : index
    %3 = vector.load %arg2[%c0_3, %c0_4] : memref<1x4xf32, #tpu.memory_space<vmem>>, vector<1x4xf32>
    %4 = vector.broadcast %3 : vector<1x4xf32> to vector<256x4xf32>
    %5 = arith.mulf %2, %4 : vector<256x4xf32>
    %c0_5 = arith.constant 0 : index
    %c0_6 = arith.constant 0 : index
    %6 = vector.load %arg3[%c0_5, %c0_6] : memref<1x4xf32, #tpu.memory_space<vmem>>, vector<1x4xf32>
    %7 = vector.broadcast %6 : vector<1x4xf32> to vector<256x4xf32>
    %8 = arith.addf %5, %7 : vector<256x4xf32>
    %cst = arith.constant 0.000000e+00 : f32
    %9 = vector.broadcast %cst : f32 to vector<256x4xf32>
    %10 = arith.maximumf %8, %9 : vector<256x4xf32>
    %11 = arith.truncf %10 : vector<256x4xf32> to vector<256x4xbf16>
    %12 = vector.shape_cast %11 : vector<256x4xbf16> to vector<16x16x4xbf16>
    %cst_7 = arith.constant 0.000000e+00 : bf16
    %13 = vector.broadcast %cst_7 : bf16 to vector<1x18x4xbf16>
    %cst_8 = arith.constant 0.000000e+00 : bf16
    %14 = vector.broadcast %cst_8 : bf16 to vector<16x1x4xbf16>
    %c0_9 = arith.constant 0 : index
    %c0_10 = arith.constant 0 : index
    %c0_11 = arith.constant 0 : index
    %15 = vector.load %arg7[%c0_9, %c0_10, %c0_11] : memref<18x18x4xbf16, #tpu.memory_space<vmem>>, vector<1x18x4xbf16>
    tpu.vector_store %arg7[%c0_9, %c0_10, %c0_11], %13 {strides = array<i32>} : memref<18x18x4xbf16, #tpu.memory_space<vmem>>, vector<1x18x4xbf16>,
    %c17 = arith.constant 17 : index
    %c0_12 = arith.constant 0 : index
    %c0_13 = arith.constant 0 : index
    %16 = vector.load %arg7[%c17, %c0_12, %c0_13] : memref<18x18x4xbf16, #tpu.memory_space<vmem>>, vector<1x18x4xbf16>
    tpu.vector_store %arg7[%c17, %c0_12, %c0_13], %13 {strides = array<i32>} : memref<18x18x4xbf16, #tpu.memory_space<vmem>>, vector<1x18x4xbf16>,
    %17 = tpu.concatenate %14, %12, %14 in 1 : vector<16x1x4xbf16>, vector<16x16x4xbf16>, vector<16x1x4xbf16> -> vector<16x18x4xbf16>
    %c1 = arith.constant 1 : index
    %c0_14 = arith.constant 0 : index
    %c0_15 = arith.constant 0 : index
    %18 = vector.load %arg7[%c1, %c0_14, %c0_15] : memref<18x18x4xbf16, #tpu.memory_space<vmem>>, vector<16x18x4xbf16>
    tpu.vector_store %arg7[%c1, %c0_14, %c0_15], %17 {strides = array<i32>} : memref<18x18x4xbf16, #tpu.memory_space<vmem>>, vector<16x18x4xbf16>,
    %c0_16 = arith.constant 0 : index
    %c0_17 = arith.constant 0 : index
    %c0_18 = arith.constant 0 : index
    %19 = vector.load %arg7[%c0_16, %c0_17, %c0_18] : memref<18x18x4xbf16, #tpu.memory_space<vmem>>, vector<18x18x4xbf16>
    %cst_19 = arith.constant 0.000000e+00 : f32
    %20 = vector.broadcast %cst_19 : f32 to vector<256x4xf32>
    %21 = vector.extract_strided_slice %19 {offsets = [0, 0, 0], sizes = [18, 16, 4], strides = [1, 1, 1]} : vector<18x18x4xbf16> to vector<18x16x4xbf16>
    %22 = vector.extract_strided_slice %21 {offsets = [0, 0, 0], sizes = [16, 16, 4], strides = [1, 1, 1]} : vector<18x16x4xbf16> to vector<16x16x4xbf16>
    %23 = vector.shape_cast %22 : vector<16x16x4xbf16> to vector<256x4xbf16>
    %c0_20 = arith.constant 0 : index
    %c0_21 = arith.constant 0 : index
    %c0_22 = arith.constant 0 : index
    %c0_23 = arith.constant 0 : index
    %24 = vector.load %arg4[%c0_20, %c0_21, %c0_22, %c0_23] : memref<3x3x4x4xbf16, #tpu.memory_space<vmem>>, vector<1x1x4x4xbf16>
    %25 = vector.shape_cast %24 : vector<1x1x4x4xbf16> to vector<4x4xbf16>
    %cst_24 = arith.constant dense<0.000000e+00> : vector<256x4xf32>
    %26 = tpu.matmul %23, %25, %cst_24 {dimension_numbers = #tpu.dot_dimension_numbers<[1], [0], [0], [1], [0, 0, 1, 1], [], []>} : vector<256x4xbf16>, vector<4x4xbf16>, vector<256x4xf32> -> vector<256x4xf32>
    %27 = arith.addf %20, %26 : vector<256x4xf32>
    %28 = vector.extract_strided_slice %21 {offsets = [1, 0, 0], sizes = [16, 16, 4], strides = [1, 1, 1]} : vector<18x16x4xbf16> to vector<16x16x4xbf16>
    %29 = vector.shape_cast %28 : vector<16x16x4xbf16> to vector<256x4xbf16>
    %c1_25 = arith.constant 1 : index
    %c0_26 = arith.constant 0 : index
    %c0_27 = arith.constant 0 : index
    %c0_28 = arith.constant 0 : index
    %30 = vector.load %arg4[%c1_25, %c0_26, %c0_27, %c0_28] : memref<3x3x4x4xbf16, #tpu.memory_space<vmem>>, vector<1x1x4x4xbf16>
    %31 = vector.shape_cast %30 : vector<1x1x4x4xbf16> to vector<4x4xbf16>
    %cst_29 = arith.constant dense<0.000000e+00> : vector<256x4xf32>
    %32 = tpu.matmul %29, %31, %cst_29 {dimension_numbers = #tpu.dot_dimension_numbers<[1], [0], [0], [1], [0, 0, 1, 1], [], []>} : vector<256x4xbf16>, vector<4x4xbf16>, vector<256x4xf32> -> vector<256x4xf32>
    %33 = arith.addf %27, %32 : vector<256x4xf32>
    %34 = vector.extract_strided_slice %21 {offsets = [2, 0, 0], sizes = [16, 16, 4], strides = [1, 1, 1]} : vector<18x16x4xbf16> to vector<16x16x4xbf16>
    %35 = vector.shape_cast %34 : vector<16x16x4xbf16> to vector<256x4xbf16>
    %c2 = arith.constant 2 : index
    %c0_30 = arith.constant 0 : index
    %c0_31 = arith.constant 0 : index
    %c0_32 = arith.constant 0 : index
    %36 = vector.load %arg4[%c2, %c0_30, %c0_31, %c0_32] : memref<3x3x4x4xbf16, #tpu.memory_space<vmem>>, vector<1x1x4x4xbf16>
    %37 = vector.shape_cast %36 : vector<1x1x4x4xbf16> to vector<4x4xbf16>
    %cst_33 = arith.constant dense<0.000000e+00> : vector<256x4xf32>
    %38 = tpu.matmul %35, %37, %cst_33 {dimension_numbers = #tpu.dot_dimension_numbers<[1], [0], [0], [1], [0, 0, 1, 1], [], []>} : vector<256x4xbf16>, vector<4x4xbf16>, vector<256x4xf32> -> vector<256x4xf32>
    %39 = arith.addf %33, %38 : vector<256x4xf32>
    %40 = vector.extract_strided_slice %19 {offsets = [0, 1, 0], sizes = [18, 16, 4], strides = [1, 1, 1]} : vector<18x18x4xbf16> to vector<18x16x4xbf16>
    %41 = vector.extract_strided_slice %40 {offsets = [0, 0, 0], sizes = [16, 16, 4], strides = [1, 1, 1]} : vector<18x16x4xbf16> to vector<16x16x4xbf16>
    %42 = vector.shape_cast %41 : vector<16x16x4xbf16> to vector<256x4xbf16>
    %c0_34 = arith.constant 0 : index
    %c1_35 = arith.constant 1 : index
    %c0_36 = arith.constant 0 : index
    %c0_37 = arith.constant 0 : index
    %43 = vector.load %arg4[%c0_34, %c1_35, %c0_36, %c0_37] : memref<3x3x4x4xbf16, #tpu.memory_space<vmem>>, vector<1x1x4x4xbf16>
    %44 = vector.shape_cast %43 : vector<1x1x4x4xbf16> to vector<4x4xbf16>
    %cst_38 = arith.constant dense<0.000000e+00> : vector<256x4xf32>
    %45 = tpu.matmul %42, %44, %cst_38 {dimension_numbers = #tpu.dot_dimension_numbers<[1], [0], [0], [1], [0, 0, 1, 1], [], []>} : vector<256x4xbf16>, vector<4x4xbf16>, vector<256x4xf32> -> vector<256x4xf32>
    %46 = arith.addf %39, %45 : vector<256x4xf32>
    %47 = vector.extract_strided_slice %40 {offsets = [1, 0, 0], sizes = [16, 16, 4], strides = [1, 1, 1]} : vector<18x16x4xbf16> to vector<16x16x4xbf16>
    %48 = vector.shape_cast %47 : vector<16x16x4xbf16> to vector<256x4xbf16>
    %c1_39 = arith.constant 1 : index
    %c1_40 = arith.constant 1 : index
    %c0_41 = arith.constant 0 : index
    %c0_42 = arith.constant 0 : index
    %49 = vector.load %arg4[%c1_39, %c1_40, %c0_41, %c0_42] : memref<3x3x4x4xbf16, #tpu.memory_space<vmem>>, vector<1x1x4x4xbf16>
    %50 = vector.shape_cast %49 : vector<1x1x4x4xbf16> to vector<4x4xbf16>
    %cst_43 = arith.constant dense<0.000000e+00> : vector<256x4xf32>
    %51 = tpu.matmul %48, %50, %cst_43 {dimension_numbers = #tpu.dot_dimension_numbers<[1], [0], [0], [1], [0, 0, 1, 1], [], []>} : vector<256x4xbf16>, vector<4x4xbf16>, vector<256x4xf32> -> vector<256x4xf32>
    %52 = arith.addf %46, %51 : vector<256x4xf32>
    %53 = vector.extract_strided_slice %40 {offsets = [2, 0, 0], sizes = [16, 16, 4], strides = [1, 1, 1]} : vector<18x16x4xbf16> to vector<16x16x4xbf16>
    %54 = vector.shape_cast %53 : vector<16x16x4xbf16> to vector<256x4xbf16>
    %c2_44 = arith.constant 2 : index
    %c1_45 = arith.constant 1 : index
    %c0_46 = arith.constant 0 : index
    %c0_47 = arith.constant 0 : index
    %55 = vector.load %arg4[%c2_44, %c1_45, %c0_46, %c0_47] : memref<3x3x4x4xbf16, #tpu.memory_space<vmem>>, vector<1x1x4x4xbf16>
    %56 = vector.shape_cast %55 : vector<1x1x4x4xbf16> to vector<4x4xbf16>
    %cst_48 = arith.constant dense<0.000000e+00> : vector<256x4xf32>
    %57 = tpu.matmul %54, %56, %cst_48 {dimension_numbers = #tpu.dot_dimension_numbers<[1], [0], [0], [1], [0, 0, 1, 1], [], []>} : vector<256x4xbf16>, vector<4x4xbf16>, vector<256x4xf32> -> vector<256x4xf32>
    %58 = arith.addf %52, %57 : vector<256x4xf32>
    %59 = vector.extract_strided_slice %19 {offsets = [0, 2, 0], sizes = [18, 16, 4], strides = [1, 1, 1]} : vector<18x18x4xbf16> to vector<18x16x4xbf16>
    %60 = vector.extract_strided_slice %59 {offsets = [0, 0, 0], sizes = [16, 16, 4], strides = [1, 1, 1]} : vector<18x16x4xbf16> to vector<16x16x4xbf16>
    %61 = vector.shape_cast %60 : vector<16x16x4xbf16> to vector<256x4xbf16>
    %c0_49 = arith.constant 0 : index
    %c2_50 = arith.constant 2 : index
    %c0_51 = arith.constant 0 : index
    %c0_52 = arith.constant 0 : index
    %62 = vector.load %arg4[%c0_49, %c2_50, %c0_51, %c0_52] : memref<3x3x4x4xbf16, #tpu.memory_space<vmem>>, vector<1x1x4x4xbf16>
    %63 = vector.shape_cast %62 : vector<1x1x4x4xbf16> to vector<4x4xbf16>
    %cst_53 = arith.constant dense<0.000000e+00> : vector<256x4xf32>
    %64 = tpu.matmul %61, %63, %cst_53 {dimension_numbers = #tpu.dot_dimension_numbers<[1], [0], [0], [1], [0, 0, 1, 1], [], []>} : vector<256x4xbf16>, vector<4x4xbf16>, vector<256x4xf32> -> vector<256x4xf32>
    %65 = arith.addf %58, %64 : vector<256x4xf32>
    %66 = vector.extract_strided_slice %59 {offsets = [1, 0, 0], sizes = [16, 16, 4], strides = [1, 1, 1]} : vector<18x16x4xbf16> to vector<16x16x4xbf16>
    %67 = vector.shape_cast %66 : vector<16x16x4xbf16> to vector<256x4xbf16>
    %c1_54 = arith.constant 1 : index
    %c2_55 = arith.constant 2 : index
    %c0_56 = arith.constant 0 : index
    %c0_57 = arith.constant 0 : index
    %68 = vector.load %arg4[%c1_54, %c2_55, %c0_56, %c0_57] : memref<3x3x4x4xbf16, #tpu.memory_space<vmem>>, vector<1x1x4x4xbf16>
    %69 = vector.shape_cast %68 : vector<1x1x4x4xbf16> to vector<4x4xbf16>
    %cst_58 = arith.constant dense<0.000000e+00> : vector<256x4xf32>
    %70 = tpu.matmul %67, %69, %cst_58 {dimension_numbers = #tpu.dot_dimension_numbers<[1], [0], [0], [1], [0, 0, 1, 1], [], []>} : vector<256x4xbf16>, vector<4x4xbf16>, vector<256x4xf32> -> vector<256x4xf32>
    %71 = arith.addf %65, %70 : vector<256x4xf32>
    %72 = vector.extract_strided_slice %59 {offsets = [2, 0, 0], sizes = [16, 16, 4], strides = [1, 1, 1]} : vector<18x16x4xbf16> to vector<16x16x4xbf16>
    %73 = vector.shape_cast %72 : vector<16x16x4xbf16> to vector<256x4xbf16>
    %c2_59 = arith.constant 2 : index
    %c2_60 = arith.constant 2 : index
    %c0_61 = arith.constant 0 : index
    %c0_62 = arith.constant 0 : index
    %74 = vector.load %arg4[%c2_59, %c2_60, %c0_61, %c0_62] : memref<3x3x4x4xbf16, #tpu.memory_space<vmem>>, vector<1x1x4x4xbf16>
    %75 = vector.shape_cast %74 : vector<1x1x4x4xbf16> to vector<4x4xbf16>
    %cst_63 = arith.constant dense<0.000000e+00> : vector<256x4xf32>
    %76 = tpu.matmul %73, %75, %cst_63 {dimension_numbers = #tpu.dot_dimension_numbers<[1], [0], [0], [1], [0, 0, 1, 1], [], []>} : vector<256x4xbf16>, vector<4x4xbf16>, vector<256x4xf32> -> vector<256x4xf32>
    %77 = arith.addf %71, %76 : vector<256x4xf32>
    %78 = vector.shape_cast %77 : vector<256x4xf32> to vector<16x16x4xf32>
    %c0_64 = arith.constant 0 : index
    %c0_65 = arith.constant 0 : index
    %c0_66 = arith.constant 0 : index
    %c0_67 = arith.constant 0 : index
    %79 = vector.load %arg5[%c0_64, %c0_65, %c0_66, %c0_67] : memref<1x16x16x4xf32, #tpu.memory_space<vmem>>, vector<1x16x16x4xf32>
    %80 = vector.shape_cast %79 : vector<1x16x16x4xf32> to vector<16x16x4xf32>
    %81 = vector.shape_cast %78 : vector<16x16x4xf32> to vector<1x16x16x4xf32>
    tpu.vector_store %arg5[%c0_64, %c0_65, %c0_66, %c0_67], %81 {strides = array<i32>} : memref<1x16x16x4xf32, #tpu.memory_space<vmem>>, vector<1x16x16x4xf32>,
    %cst_68 = arith.constant dense<0.000000e+00> : vector<4xf32>
    %82 = vector.multi_reduction <add>, %77, %cst_68 [0] : vector<256x4xf32> to vector<4xf32>
    %83 = vector.shape_cast %82 : vector<4xf32> to vector<1x4xf32>
    %c0_69 = arith.constant 0 : index
    %c0_70 = arith.constant 0 : index
    %c0_71 = arith.constant 0 : index
    %84 = vector.load %arg6[%c0_69, %c0_70, %c0_71] : memref<1x2x4xf32, #tpu.memory_space<vmem>>, vector<1x1x4xf32>
    %85 = vector.shape_cast %84 : vector<1x1x4xf32> to vector<1x4xf32>
    %86 = vector.shape_cast %83 : vector<1x4xf32> to vector<1x1x4xf32>
    tpu.vector_store %arg6[%c0_69, %c0_70, %c0_71], %86 {strides = array<i32>} : memref<1x2x4xf32, #tpu.memory_space<vmem>>, vector<1x1x4xf32>,
    %87 = arith.mulf %77, %77 : vector<256x4xf32>
    %cst_72 = arith.constant dense<0.000000e+00> : vector<4xf32>
    %88 = vector.multi_reduction <add>, %87, %cst_72 [0] : vector<256x4xf32> to vector<4xf32>
    %89 = vector.shape_cast %88 : vector<4xf32> to vector<1x4xf32>
    %c0_73 = arith.constant 0 : index
    %c1_74 = arith.constant 1 : index
    %c0_75 = arith.constant 0 : index
    %90 = vector.load %arg6[%c0_73, %c1_74, %c0_75] : memref<1x2x4xf32, #tpu.memory_space<vmem>>, vector<1x1x4xf32>
    %91 = vector.shape_cast %90 : vector<1x1x4xf32> to vector<1x4xf32>
    %92 = vector.shape_cast %89 : vector<1x4xf32> to vector<1x1x4xf32>
    tpu.vector_store %arg6[%c0_73, %c1_74, %c0_75], %92 {strides = array<i32>} : memref<1x2x4xf32, #tpu.memory_space<vmem>>, vector<1x1x4xf32>,
    return
  }
  func.func @transform_0(%arg0: i32) -> (i32, i32, i32, i32) {
    %c0_i32 = arith.constant 0 : i32
    %c0_i32_0 = arith.constant 0 : i32
    %c0_i32_1 = arith.constant 0 : i32
    %c0_i32_2 = arith.constant 0 : i32
    return %arg0, %c0_i32, %c0_i32_0, %c0_i32_1 : i32, i32, i32, i32
  }
  func.func @transform_1(%arg0: i32) -> (i32, i32) {
    %c0_i32 = arith.constant 0 : i32
    %c0_i32_0 = arith.constant 0 : i32
    %c0_i32_1 = arith.constant 0 : i32
    return %c0_i32, %c0_i32_0 : i32, i32
  }
  func.func @transform_2(%arg0: i32) -> (i32, i32) {
    %c0_i32 = arith.constant 0 : i32
    %c0_i32_0 = arith.constant 0 : i32
    %c0_i32_1 = arith.constant 0 : i32
    return %c0_i32, %c0_i32_0 : i32, i32
  }
  func.func @transform_3(%arg0: i32) -> (i32, i32, i32, i32) {
    %c0_i32 = arith.constant 0 : i32
    %c0_i32_0 = arith.constant 0 : i32
    %c0_i32_1 = arith.constant 0 : i32
    %c0_i32_2 = arith.constant 0 : i32
    %c0_i32_3 = arith.constant 0 : i32
    return %c0_i32, %c0_i32_0, %c0_i32_1, %c0_i32_2 : i32, i32, i32, i32
  }
  func.func @transform_4(%arg0: i32) -> (i32, i32, i32, i32) {
    %c0_i32 = arith.constant 0 : i32
    %c0_i32_0 = arith.constant 0 : i32
    %c0_i32_1 = arith.constant 0 : i32
    %c0_i32_2 = arith.constant 0 : i32
    return %arg0, %c0_i32, %c0_i32_0, %c0_i32_1 : i32, i32, i32, i32
  }
  func.func @transform_5(%arg0: i32) -> (i32, i32, i32) {
    %c0_i32 = arith.constant 0 : i32
    %c0_i32_0 = arith.constant 0 : i32
    %c0_i32_1 = arith.constant 0 : i32
    return %arg0, %c0_i32, %c0_i32_0 : i32, i32, i32
  }
}

module attributes {stable_mosaic.version = 11 : i64} {
  func.func @_phase3_id_kernel(%arg0: i32, %arg1: memref<16x64xf32, #tpu.memory_space<vmem>>, %arg2: memref<16x64xf32, #tpu.memory_space<vmem>>, %arg3: memref<1x64xf32, #tpu.memory_space<vmem>>, %arg4: memref<1x64xf32, #tpu.memory_space<vmem>>, %arg5: memref<16x64xf32, #tpu.memory_space<vmem>>) attributes {dimension_semantics = [#tpu.dimension_semantics<parallel>], iteration_bounds = array<i64: 2>, scalar_prefetch = 0 : i64, scratch_operands = 0 : i64, tpu.core_type = #tpu.core_type<tc>, window_params = [{transform_indices = @transform_0, window_bounds = array<i64: 16, 64>}, {transform_indices = @transform_1, window_bounds = array<i64: 16, 64>}, {pipeline_mode = #tpu.pipeline_mode<synchronous>, transform_indices = @transform_2, window_bounds = array<i64: 1, 64>}, {pipeline_mode = #tpu.pipeline_mode<synchronous>, transform_indices = @transform_3, window_bounds = array<i64: 1, 64>}, {transform_indices = @transform_4, window_bounds = array<i64: 16, 64>}]} {
    %c0 = arith.constant 0 : index
    %c0_0 = arith.constant 0 : index
    %0 = vector.load %arg1[%c0, %c0_0] : memref<16x64xf32, #tpu.memory_space<vmem>>, vector<16x64xf32>
    %c0_1 = arith.constant 0 : index
    %c0_2 = arith.constant 0 : index
    %1 = vector.load %arg3[%c0_1, %c0_2] : memref<1x64xf32, #tpu.memory_space<vmem>>, vector<1x64xf32>
    %2 = vector.broadcast %1 : vector<1x64xf32> to vector<16x64xf32>
    %3 = arith.mulf %0, %2 : vector<16x64xf32>
    %c0_3 = arith.constant 0 : index
    %c0_4 = arith.constant 0 : index
    %4 = vector.load %arg4[%c0_3, %c0_4] : memref<1x64xf32, #tpu.memory_space<vmem>>, vector<1x64xf32>
    %5 = vector.broadcast %4 : vector<1x64xf32> to vector<16x64xf32>
    %6 = arith.addf %3, %5 : vector<16x64xf32>
    %c0_5 = arith.constant 0 : index
    %c0_6 = arith.constant 0 : index
    %7 = vector.load %arg2[%c0_5, %c0_6] : memref<16x64xf32, #tpu.memory_space<vmem>>, vector<16x64xf32>
    %8 = arith.addf %6, %7 : vector<16x64xf32>
    %cst = arith.constant 0.000000e+00 : f32
    %9 = vector.broadcast %cst : f32 to vector<16x64xf32>
    %10 = arith.maximumf %8, %9 : vector<16x64xf32>
    %c0_7 = arith.constant 0 : index
    %c0_8 = arith.constant 0 : index
    %11 = vector.load %arg5[%c0_7, %c0_8] : memref<16x64xf32, #tpu.memory_space<vmem>>, vector<16x64xf32>
    tpu.vector_store %arg5[%c0_7, %c0_8], %10 {strides = array<i32>} : memref<16x64xf32, #tpu.memory_space<vmem>>, vector<16x64xf32>,
    return
  }
  func.func @transform_0(%arg0: i32) -> (i32, i32) {
    %c0_i32 = arith.constant 0 : i32
    %c0_i32_0 = arith.constant 0 : i32
    return %arg0, %c0_i32 : i32, i32
  }
  func.func @transform_1(%arg0: i32) -> (i32, i32) {
    %c0_i32 = arith.constant 0 : i32
    %c0_i32_0 = arith.constant 0 : i32
    return %arg0, %c0_i32 : i32, i32
  }
  func.func @transform_2(%arg0: i32) -> (i32, i32) {
    %c0_i32 = arith.constant 0 : i32
    %c0_i32_0 = arith.constant 0 : i32
    %c0_i32_1 = arith.constant 0 : i32
    return %c0_i32, %c0_i32_0 : i32, i32
  }
  func.func @transform_3(%arg0: i32) -> (i32, i32) {
    %c0_i32 = arith.constant 0 : i32
    %c0_i32_0 = arith.constant 0 : i32
    %c0_i32_1 = arith.constant 0 : i32
    return %c0_i32, %c0_i32_0 : i32, i32
  }
  func.func @transform_4(%arg0: i32) -> (i32, i32) {
    %c0_i32 = arith.constant 0 : i32
    %c0_i32_0 = arith.constant 0 : i32
    return %arg0, %c0_i32 : i32, i32
  }
}

</mosaic_0001>

<bundles_post_ra>
// kernel: residual_block.5
= control target key start
LH: loop header
LB: loop body
LE: loop exit
PB: predicated region body
PF: predicated region fallthrough
CT: control target
= control target key end

     0   :  { %s376_s15 = smov 0   ;;  %s402_s0 = inlined_call_operand.vmem [shape: f32[32,64], index: 0, kind: input, shape index: {}]   ;;  %s403_s1 = inlined_call_operand.vmem [shape: f32[32,64], index: 1, kind: input, shape index: {}]   ;;  %s404_s2 = inlined_call_operand.vmem [shape: f32[1,64], index: 2, kind: input, shape index: {}]   ;;  %s405_s3 = inlined_call_operand.vmem [shape: f32[1,64], index: 3, kind: input, shape index: {}]   ;;  %s406_s4 = inlined_call_operand.vmem [shape: f32[32,64], index: 4, kind: output, shape index: {}]  }
   0x1 LB: > { %s320_s16 = sadd.s32 4294967295, %s349_s15   ;;  %p324_p0 = scmp.ge.s32.totalorder %s349_s15, 1  ;;  %s349_s15 = sphi %s376_s15, %s14_s15  }
   0x2   : > { %p174_p1 = scmp.lt.s32.totalorder %s349_s15, 3 }
   0x4   : > { %p175_p2 = pnand %p324_p0, %p174_p1 }
   0x5   : > { %s325_s17 = sshll.u32 (!%p175_p2), %s320_s16, 1  ;;  %v331_v0 = vld [vmem:[%s404_s2] ss:$0 sm:$0xff] (!%p175_p2)  ;;  %vm249_vm0 = vcmask (!%p175_p2), 523264  }
   0x6   : > { %178 = sbr.rel (%p175_p2) target bundleno = 26 (0x1a), region = 36  ;;  %p206_p3 = scmp.lt.s32.totalorder (!%p175_p2), %s325_s17, 3  ;;  %v332_v3 = vld [vmem:[%s405_s3] ss:$0 sm:$0xff] (!%p175_p2) }
   0xd   : > { %s408_s17 = smov (!%p206_p3, %s325_s17), 3 }
   0xe   : > { %s326_s18 = sshll.u32 %s408_s17, 3 }
   0xf   : > { %s209_s23 = scalar_lea.vmem %s402_s0, %s326_s18  ;;  %s215_s26 = scalar_lea.vmem %s403_s1, %s326_s18 }
  0x10   : > { %v223_v1 = vld [vmem:[%s209_s23] sm:$0xff]  ;;  %v224_v2 = vld [vmem:[%s209_s23 + $0x8] sm:$0xff]  ;;  %s221_s5 = scalar_lea.vmem %s406_s4, %s326_s18 }
  0x11   : > { %v232_v4 = vmul.f32 %v331_v0, %v223_v1  ;;  %v233_v5 = vmul.f32 %v331_v0, %v224_v2  ;;  %v243_v6 = vld [vmem:[%s215_s26] sm:$0xff]  ;;  %v244_v7 = vld [vmem:[%s215_s26 + $0x8] sm:$0xff] }
  0x13   : > { %v241_v8 = vadd.f32 %v332_v3, %v232_v4  ;;  %v242_v9 = vadd.f32 %v332_v3, %v233_v5 }
  0x15   : > { %v245_v10 = vadd.f32 %v243_v6, %v241_v8  ;;  %v246_v11 = vadd.f32 %v244_v7, %v242_v9 }
  0x17   : > { %v247_v12 = vmax.f32 %v245_v10, 0.0  ;;  %v248_v13 = vmax.f32 %v246_v11, 0.0 }
  0x19   : > { %250 = vst.msk [vmem:[%s221_s5] sm:$0xff] %vm249_vm0, %v247_v12  ;;  %251 = vst.msk [vmem:[%s221_s5 + $0x8] sm:$0xff] %vm249_vm0, %v248_v13 }
  0x1a PF: > { %s14_s15 = sadd.s32 1, %s349_s15  }
  0x1b   : > { %p11_p4 = scmp.ge.s32.totalorder %s14_s15, 4  }
  0x1d   :  { %13 = sbr.rel (!%p11_p4) target bundleno = 1 (0x1), region = 69 }

// kernel: residual_block.4
= control target key start
LH: loop header
LB: loop body
LE: loop exit
PB: predicated region body
PF: predicated region fallthrough
CT: control target
= control target key end

     0   :  { %s4912_s18 = smov 0   ;;  %s6279_s0 = inlined_call_operand.vmem [shape: f32[2,16,16,4], index: 0, kind: input, shape index: {}]   ;;  %s6280_s1 = inlined_call_operand.vmem [shape: f32[1,4], index: 1, kind: input, shape index: {}]   ;;  %s6281_s2 = inlined_call_operand.vmem [shape: f32[1,4], index: 2, kind: input, shape index: {}]   ;;  %s6282_s3 = inlined_call_operand.vmem [shape: bf16[3,3,4,4], index: 3, kind: input, shape index: {}]   ;;  %s6283_s4 = inlined_call_operand.vmem [shape: f32[2,16,16,4], index: 4, kind: output, shape index: {0}]   ;;  %s6284_s5 = inlined_call_operand.vmem [shape: f32[2,2,4], index: 5, kind: output, shape index: {1}]  }
   0x1 LB: > { %s3813_s19 = sadd.s32 4294967295, %s4879_s18   ;;  %p3817_p0 = scmp.ge.s32.totalorder %s4879_s18, 1  ;;  %s4879_s18 = sphi %s4912_s18, %s16_s18  }
   0x2   : > { %p190_p1 = scmp.lt.s32.totalorder %s4879_s18, 3 }
   0x4   : > { %p191_p2 = pnand %p3817_p0, %p190_p1 }
   0x6   : > { %194 = sbr.rel (%p191_p2) target bundleno = 608 (0x260), region = 36 }
   0xd   : > { %v3873_v0 = vld [vmem:[%s6282_s3 + $0x6] sm:$0x3]  ;;  %vm994_vm0 = vcmask 1041408   ;;  %p222_p3 = scmp.lt.s32.totalorder %s3813_s19, 1  ;;  %v3974_v2 = vld [vmem:[%s6282_s3 + $0x8] sm:$0x3] }
   0xe   : > { %4818 = vmatprep.subr.msk.bf16.mxu1 %vm994_vm0, %v3873_v0  ;;  %v996_v1 = vsel %vm994_vm0, %v3873_v0, 0  ;;  %v862_v3 = vld [vmem:[%s6282_s3] sm:$0x3]  ;;  %4822 = vmatprep.subr.msk.bf16.mxu0 %vm994_vm0, %v3974_v2  ;;  %v4941_v5 = vsel %vm994_vm0, %v3974_v2, 0  ;;  %v3992_v6 = vld [vmem:[%s6282_s3 + $0xe] sm:$0x3] }
   0xf   : > { %4255 = vmatpush3.bf16.msra.mxu1 %v996_v1  ;;  %s6411_s19 = smov (!%p222_p3, %s3813_s19), 1  ;;  %v4937_v4 = vld [vmem:[%s6280_s1] ss:$0 sm:$0xff]  ;;  %6325 = vst [vmem:[#allocation3_spill] sm:$0xff] %v4941_v5  ;;  %vm395_vm1 = vcmask 27648   ;;  %4391 = vmatpush3.bf16.msra.mxu0 %v4941_v5  ;;  %vm398_vm2 = vcmask 24576  }
  0x10   : > { %s4099_s26 = sshll.u32 %s6411_s19, 8  ;;  %4819 = vmatprep.subr.msk.bf16.mxu1 %vm994_vm0, %v862_v3  ;;  %v4957_v7 = vld [vmem:[%s6281_s2] ss:$0 sm:$0xff]  ;;  %4824 = vmatprep.subr.msk.bf16.mxu0 %vm994_vm0, %v3992_v6  ;;  %v4881_v11 = vmov 0   ;;  %vm548_vm3 = vcmask 1040384   ;;  %v4977_v18 = vsel %vm994_vm0, %v862_v3, 0 }
  0x11   : > { %s4952_s8 = scalar_lea.vmem %s6279_s0, %s4099_s26  ;;  %396 = vst.msk [vmem:[#allocation2] sm:$0xf] %vm395_vm1, %v4881_v11  ;;  %397 = vst.msk [vmem:[#allocation2 + $0x4] sm:$0xf] %vm395_vm1, %v4881_v11  ;;  %vm549_vm4 = vsmask.f32 256  ;;  %s6132_s28 = scalar_lea.vmem %s6283_s4, %s4099_s26 }
  0x12   : > { %v237_v8 = vld [vmem:[%s4952_s8] sm:$0xff]  ;;  %v238_v9 = vld [vmem:[%s4952_s8 + $0x8] sm:$0xff]  ;;  %v239_v10 = vld [vmem:[%s4952_s8 + $0x10] sm:$0xff]  ;;  %399 = vst.msk [vmem:[#allocation2 + $0x8] sm:$0x1] %vm398_vm2, %v4881_v11  ;;  %v4985_v24 = vsel %vm994_vm0, %v3992_v6, 0 }
  0x13   : > { %401 = vst.msk [vmem:[#allocation2 + $0xcc] sm:$0xf] %vm395_vm1, %v4881_v11  ;;  %402 = vst.msk [vmem:[#allocation2 + $0xd0] sm:$0xf] %vm395_vm1, %v4881_v11  ;;  %v276_v12 = vmul.f32 %v4937_v4, %v237_v8  ;;  %v277_v13 = vmul.f32 %v4937_v4, %v238_v9  ;;  %v240_v14 = vld [vmem:[%s4952_s8 + $0x18] sm:$0xff]  ;;  %v278_v15 = vmul.f32 %v4937_v4, %v239_v10  ;;  %v241_v16 = vld [vmem:[%s4952_s8 + $0x20] sm:$0xff] }
  0x14   : > { %403 = vst.msk [vmem:[#allocation2 + $0xd4] sm:$0x1] %vm398_vm2, %v4881_v11  ;;  %v242_v17 = vld [vmem:[%s4952_s8 + $0x28] sm:$0xff]  ;;  %v279_v19 = vmul.f32 %v4937_v4, %v240_v14  ;;  %v280_v20 = vmul.f32 %v4937_v4, %v241_v16  ;;  %v243_v22 = vld [vmem:[%s4952_s8 + $0x30] sm:$0xff]  ;;  %v244_v23 = vld [vmem:[%s4952_s8 + $0x38] sm:$0xff]  ;;  %vm2690_vm6 = vcmask 1042432  }
  0x15   : > { %v281_v21 = vmul.f32 %v4937_v4, %v242_v17  ;;  %v315_v25 = vadd.f32 %v4957_v7, %v276_v12  ;;  %v316_v26 = vadd.f32 %v4957_v7, %v277_v13  ;;  %v317_v27 = vadd.f32 %v4957_v7, %v278_v15  ;;  %v245_v33 = vld [vmem:[%s4952_s8 + $0x40] sm:$0xff]  ;;  %v246_v34 = vld [vmem:[%s4952_s8 + $0x48] sm:$0xff]  ;;  %v247_v39 = vld [vmem:[%s4952_s8 + $0x50] sm:$0xff]  ;;  %s3822_s26 = sshll.u32 %s6411_s19, 1 }
  0x16   : > { %v282_v28 = vmul.f32 %v4937_v4, %v243_v22  ;;  %v318_v29 = vadd.f32 %v4957_v7, %v279_v19  ;;  %v319_v30 = vadd.f32 %v4957_v7, %v280_v20  ;;  %v283_v32 = vmul.f32 %v4937_v4, %v244_v23  ;;  %v248_v56 = vld [vmem:[%s4952_s8 + $0x58] sm:$0xff]  ;;  %vm5008_vm5 = vmand %vm548_vm3, %vm549_vm4  ;;  %s235_s6 = scalar_lea.vmem %s6284_s5, %s3822_s26 }
  0x17   : > { %v320_v31 = vadd.f32 %v4957_v7, %v281_v21  ;;  %v347_v35 = vmax.f32 %v315_v25, 0.0  ;;  %v348_v36 = vmax.f32 %v316_v26, 0.0  ;;  %v349_v37 = vmax.f32 %v317_v27, 0.0  ;;  %v249_v27 = vld [vmem:[%s4952_s8 + $0x60] sm:$0xff] }
  0x18   : > { %v321_v38 = vadd.f32 %v4957_v7, %v282_v28  ;;  %v350_v40 = vmax.f32 %v318_v29, 0.0  ;;  %v351_v41 = vmax.f32 %v319_v30, 0.0  ;;  %v322_v43 = vadd.f32 %v4957_v7, %v283_v32  ;;  %v5533_v5 = vld [vmem:[#allocation2] sm:$0xf] }
  0x19   : > { %v352_v42 = vmax.f32 %v320_v31, 0.0  ;;  %v379_v44 = vpack.c.bf16 %v348_v36, %v347_v35  ;;  %v284_v46 = vmul.f32 %v4937_v4, %v245_v33  ;;  %v285_v47 = vmul.f32 %v4937_v4, %v246_v34  ;;  %v250_v36 = vld [vmem:[%s4952_s8 + $0x68] sm:$0xff] }
  0x1a   : > { %v353_v45 = vmax.f32 %v321_v38, 0.0  ;;  %v380_v48 = vpack.c.bf16 %v350_v40, %v349_v37  ;;  %v354_v50 = vmax.f32 %v322_v43, 0.0  ;;  %v286_v51 = vmul.f32 %v4937_v4, %v247_v39  ;;  %v5681_v1 = vld [vmem:[#allocation2 + $0xd0] sm:$0xf] }
  0x1b   : > { %v381_v49 = vpack.c.bf16 %v352_v42, %v351_v41  ;;  %v405_v52 = vshrl.u32 %v379_v44, 16  ;;  %v408_v53 = vshll.u32 %v379_v44, 16  ;;  %v323_v54 = vadd.f32 %v4957_v7, %v284_v46  ;;  %v251_v41 = vld [vmem:[%s4952_s8 + $0x70] sm:$0xff]  ;;  %v252_v46 = vld [vmem:[%s4952_s8 + $0x78] sm:$0xff]  ;;  %6372 = vst [vmem:[#allocation27_spill] sm:$0xff] %v5681_v1 }
  0x1c   : > { %v324_v55 = vadd.f32 %v4957_v7, %v285_v47  ;;  %v412_v57 = vshrl.u32 %v380_v48, 16  ;;  %v415_v58 = vshll.u32 %v380_v48, 16  ;;  %v382_v62 = vpack.c.bf16 %v354_v50, %v353_v45  ;;  %v253_v47 = vld [vmem:[%s4952_s8 + $0x80] sm:$0xff] }
  0x1d   : > { %v419_v59 = vshrl.u32 %v381_v49, 16  ;;  %v422_v60 = vshll.u32 %v381_v49, 16  ;;  %v407_v61 = vrot.slane %v405_v52, 7  ;;  %v355_v63 = vmax.f32 %v323_v54, 0.0 }
  0x1e   : > { %v356_v0 = vmax.f32 %v324_v55, 0.0  ;;  %v414_v2 = vrot.slane %v412_v57, 7  ;;  %v287_v6 = vmul.f32 %v4937_v4, %v248_v56  ;;  %v325_v8 = vadd.f32 %v4957_v7, %v286_v51 }
  0x1f   : > { %v421_v3 = vrot.slane %v419_v59, 7  ;;  %v410_v9 = vor.u32 %v408_v53, %v407_v61  ;;  %v426_v10 = vshrl.u32 %v382_v62, 16  ;;  %v429_v11 = vshll.u32 %v382_v62, 16 }
  0x20   : > { %v567_v12 = vsel %vm5008_vm5, %v407_v61, 0  ;;  %v417_v13 = vor.u32 %v415_v58, %v414_v2  ;;  %v568_v16 = vsel %vm5008_vm5, %v414_v2, 0  ;;  %vm2691_vm7 = vcmask 1046532  }
  0x21   : > { %v424_v14 = vor.u32 %v422_v60, %v421_v3  ;;  %v3827_v15 = vcombine.low %v567_v12, %v567_v12  ;;  %v551_v17 = vsel %vm5008_vm5, 0, %v410_v9  ;;  %v428_v19 = vrot.slane %v426_v10, 7  ;;  %vm5080_vm11 = vmor %vm2690_vm6, %vm2691_vm7 }
  0x22   : > { %v3830_v20 = vcombine.low %v568_v16, %v568_v16  ;;  %v383_v21 = vpack.c.bf16 %v356_v0, %v355_v63  ;;  %v3825_v22 = vcombine.low %v551_v17, %v551_v17  ;;  %v3826_v23 = vcombine.high %v551_v17, %v551_v17 }
  0x23   : > { %v552_v25 = vsel %vm5008_vm5, 0, %v417_v13  ;;  %v553_v26 = vsel %vm5008_vm5, 0, %v424_v14  ;;  %762 = vst.msk [vmem:[#allocation2 + $0x14] sm:$0x1] %vm398_vm2, %v3827_v15  ;;  %vm945_vm8 = vcmask 31744   ;;  %v431_v32 = vor.u32 %v429_v11, %v428_v19 }
  0x24   : > { %v3828_v28 = vcombine.low %v552_v25, %v552_v25  ;;  %v3829_v29 = vcombine.high %v552_v25, %v552_v25  ;;  %v3831_v30 = vcombine.low %v553_v26, %v553_v26  ;;  %v3832_v31 = vcombine.high %v553_v26, %v553_v26  ;;  %765 = vst.msk [vmem:[#allocation2 + $0x20] sm:$0x1] %vm398_vm2, %v3830_v20 }
  0x25   : > { %760 = vst.msk [vmem:[#allocation2 + $0xc] sm:$0xf] %vm395_vm1, %v3825_v22  ;;  %761 = vst.msk [vmem:[#allocation2 + $0x10] sm:$0xf] %vm395_vm1, %v3826_v23  ;;  %v433_v33 = vshrl.u32 %v383_v21, 16  ;;  %v436_v34 = vshll.u32 %v383_v21, 16  ;;  %v326_v35 = vadd.f32 %v4957_v7, %v287_v6  ;;  %v288_v40 = vmul.f32 %v4937_v4, %v249_v27 }
  0x26   : > { %763 = vst.msk [vmem:[#allocation2 + $0x18] sm:$0xf] %vm395_vm1, %v3828_v28  ;;  %764 = vst.msk [vmem:[#allocation2 + $0x1c] sm:$0xf] %vm395_vm1, %v3829_v29  ;;  %v357_v37 = vmax.f32 %v325_v8, 0.0  ;;  %v569_v38 = vsel %vm5008_vm5, %v421_v3, 0  ;;  %v289_v51 = vmul.f32 %v4937_v4, %v250_v36  ;;  %v290_v55 = vmul.f32 %v4937_v4, %v251_v41 }
  0x27   : > { %766 = vst.msk [vmem:[#allocation2 + $0x24] sm:$0xf] %vm395_vm1, %v3831_v30  ;;  %767 = vst.msk [vmem:[#allocation2 + $0x28] sm:$0xf] %vm395_vm1, %v3832_v31  ;;  %v570_v39 = vsel %vm5008_vm5, %v428_v19, 0  ;;  %v554_v42 = vsel %vm5008_vm5, 0, %v431_v32  ;;  %v3833_v45 = vcombine.low %v569_v38, %v569_v38  ;;  %v5050_v54 = vadd.f32 %v4957_v7, %v288_v40 }
  0x28   : > { %v435_v43 = vrot.slane %v433_v33, 7  ;;  %v358_v44 = vmax.f32 %v326_v35, 0.0  ;;  %v3834_v48 = vcombine.low %v554_v42, %v554_v42  ;;  %v3835_v49 = vcombine.high %v554_v42, %v554_v42  ;;  %v5103_v35 = vld [vmem:[%s6282_s3 + $0xc] sm:$0x3] }
  0x29   : > { %v3836_v50 = vcombine.low %v570_v39, %v570_v39  ;;  %768 = vst.msk [vmem:[#allocation2 + $0x2c] sm:$0x1] %vm398_vm2, %v3833_v45  ;;  %v5059_v57 = vadd.f32 %v4957_v7, %v289_v51  ;;  %v291_v58 = vmul.f32 %v4937_v4, %v252_v46  ;;  %v5065_v60 = vmul.f32 %v4937_v4, %v253_v47 }
  0x2a   : > { %v438_v52 = vor.u32 %v436_v34, %v435_v43  ;;  %v5046_v53 = vpack.c.bf16 %v358_v44, %v357_v37  ;;  %769 = vst.msk [vmem:[#allocation2 + $0x30] sm:$0xf] %vm395_vm1, %v3834_v48  ;;  %770 = vst.msk [vmem:[#allocation2 + $0x34] sm:$0xf] %vm395_vm1, %v3835_v49  ;;  %v5055_v56 = vld [vmem:[#allocation2 + $0x14] sm:$0x1]  ;;  %v5093_v30 = vadd.f32 %v4957_v7, %v290_v55 }
  0x2b   : > { %771 = vst.msk [vmem:[#allocation2 + $0x38] sm:$0x1] %vm398_vm2, %v3836_v50  ;;  %v571_v59 = vsel %vm5008_vm5, %v435_v43, 0  ;;  %vm1537_vm9 = vsmask.f32 3328  ;;  %v1584_v61 = vshll.u32 %v5055_v56, 16  ;;  %v5113_v40 = vadd.f32 %v4957_v7, %v291_v58 }
  0x2c   : > { %vm1538_vm10 = vsmask.f32 7440  ;;  %v2705_v62 = vrot.slane %v5055_v56, 5  ;;  %v5069_v63 = vld [vmem:[#allocation2 + $0x20] sm:$0x1]  ;;  %v555_v0 = vsel %vm5008_vm5, 0, %v438_v52  ;;  %v3839_v41 = vcombine.low %v571_v59, %v571_v59 }
  0x2d   : > { %v440_v2 = vshrl.u32 %v5046_v53, 16  ;;  %v811_v3 = vld [vmem:[#allocation2 + $0xc] sm:$0xf]  ;;  %v812_v6 = vld [vmem:[#allocation2 + $0x10] sm:$0xf]  ;;  %v1608_v8 = vshll.u32 %v5069_v63, 16  ;;  %v3837_v9 = vcombine.low %v555_v0, %v555_v0  ;;  %v3838_v10 = vcombine.high %v555_v0, %v555_v0  ;;  %vm5138_vm12 = vmor %vm1537_vm9, %vm1538_vm10 }
  0x2e   : > { %v443_v11 = vshll.u32 %v5046_v53, 16  ;;  %v5076_v12 = vcombine.low %v811_v3, %v812_v6  ;;  %v1565_v13 = vshrl.u32 %v811_v3, 16  ;;  %v1568_v14 = vshll.u32 %v811_v3, 16  ;;  %v814_v17 = vld [vmem:[#allocation2 + $0x18] sm:$0xf] }
  0x2f   : > { %v1578_v15 = vshrl.u32 %v812_v6, 16  ;;  %v4011_v19 = vrot.slane %v811_v3, 9  ;;  %v2702_v20 = vrot.slane %v812_v6, 5  ;;  %v815_v21 = vld [vmem:[#allocation2 + $0x1c] sm:$0xf]  ;;  %v1589_v22 = vshrl.u32 %v814_v17, 16 }
  0x30   : > { %v1592_v23 = vshll.u32 %v814_v17, 16  ;;  %772 = vst.msk [vmem:[#allocation2 + $0x3c] sm:$0xf] %vm395_vm1, %v3837_v9  ;;  %773 = vst.msk [vmem:[#allocation2 + $0x40] sm:$0xf] %vm395_vm1, %v3838_v10  ;;  %4256 = vmatprep.mubr.msk.bf16.mxu1 %vm945_vm8, %v5076_v12  ;;  %v5088_v25 = vcombine.low %v814_v17, %v815_v21  ;;  %v1602_v26 = vshrl.u32 %v815_v21, 16 }
  0x31   : > { %v817_v27 = vld [vmem:[#allocation2 + $0x24] sm:$0xf]  ;;  %v5090_v28 = vld [vmem:[#allocation2 + $0x28] sm:$0xf]  ;;  %v1567_v29 = vrot.slane %v1565_v13, 4  ;;  %v2703_v31 = vsel %vm5080_vm11, %v4011_v19, %v2702_v20  ;;  %v2704_v32 = vrot.slane %v2702_v20, 4 }
  0x32   : > { %v5098_v33 = vcombine.low %v817_v27, %v5090_v28  ;;  %v1613_v34 = vshrl.u32 %v817_v27, 16  ;;  %4257 = vmatmul.mubr.msk.bf16.vlgmr.msra.gmra.mrb[0].mxu1 %vm945_vm8, %v5088_v25  ;;  %v1616_v36 = vshll.u32 %v817_v27, 16  ;;  %v1626_v37 = vshrl.u32 %v5090_v28, 16  ;;  %v5108_v38 = vld [vmem:[#allocation2 + $0x30] sm:$0xf] }
  0x33   : > { %v5110_v39 = vld [vmem:[#allocation2 + $0x34] sm:$0xf]  ;;  %v1637_v43 = vshrl.u32 %v5108_v38, 16  ;;  %v1640_v44 = vshll.u32 %v5108_v38, 16  ;;  %4289 = vmatpush3.bf16.msra.mxu1 %v4977_v18  ;;  %v1570_v46 = vrot.slane %v1568_v14, 5  ;;  %v1574_v47 = vshll.u32 %v812_v6, 16 }
  0x34   : > { %4260 = vmatprep.mubr.msk.bf16.mxu1 %vm945_vm8, %v5098_v33  ;;  %v5119_v42 = vcombine.low %v5108_v38, %v5110_v39  ;;  %v1650_v45 = vshrl.u32 %v5110_v39, 16  ;;  %v1580_v48 = vrot.slane %v1578_v15, 4  ;;  %v1586_v49 = vrot.slane %v1584_v61, 5  ;;  %774 = vst.msk [vmem:[#allocation2 + $0x44] sm:$0x1] %vm398_vm2, %v3839_v41  ;;  %4820 = vmatprep.subr.msk.bf16.mxu1 %vm994_vm0, %v5103_v35 }
  0x35   : > { %v2706_v50 = vsel %vm5080_vm11, %v2704_v32, %v2705_v62  ;;  %v1591_v51 = vrot.slane %v1589_v22, 4  ;;  %v1594_v52 = vrot.slane %v1592_v23, 5  ;;  %v1598_v55 = vshll.u32 %v815_v21, 16  ;;  %v819_v22 = vld [vmem:[#allocation2 + $0x2c] sm:$0x1] }
  0x36   : > { %v1571_v56 = vor.u32 %v1570_v46, %v1567_v29  ;;  %v1576_v58 = vrot.slane %v1574_v47, 5  ;;  %v5130_v59 = vcombine.low %v2703_v31, %v2706_v50  ;;  %v1604_v18 = vrot.slane %v1602_v26, 4 }
  0x37   : > { %v5132_v63 = vld [vmem:[#allocation2 + $0x3c] sm:$0xf]  ;;  %v5134_v0 = vld [vmem:[#allocation2 + $0x40] sm:$0xf]  ;;  %v1595_v3 = vor.u32 %v1594_v52, %v1591_v51  ;;  %v1600_v62 = vrot.slane %v1598_v55, 5  ;;  %v1610_v6 = vrot.slane %v1608_v8, 5 }
  0x38   : > { %v5144_v9 = vcombine.low %v5132_v63, %v5134_v0  ;;  %v1572_v10 = vrot.slane %v1571_v56, 4  ;;  %v1581_v13 = vor.u32 %v1580_v48, %v1576_v58  ;;  %v1661_v14 = vshrl.u32 %v5132_v63, 16  ;;  %v822_v51 = vld [vmem:[#allocation2 + $0x38] sm:$0x1] }
  0x39   : > { %v1664_v15 = vshll.u32 %v5132_v63, 16  ;;  %v1596_v17 = vrot.slane %v1595_v3, 4  ;;  %v1605_v19 = vor.u32 %v1604_v18, %v1600_v62  ;;  %v1674_v20 = vshrl.u32 %v5134_v0, 16 }
  0x3a   : > { %v5151_v21 = vrot.slane %v440_v2, 7  ;;  %4261 = vmatmul.mubr.msk.bf16.gmra.mrb[4].mxu1 %vm945_vm8, %v5119_v42  ;;  %v1577_v8 = vsel %vm5138_vm12, %v1572_v10, %v1576_v58  ;;  %v1582_v23 = vrot.slane %v1581_v13, 4  ;;  %v1615_v26 = vrot.slane %v1613_v34, 4  ;;  %v5180_v58 = vld [vmem:[%s6282_s3 + $0x4] sm:$0x3] }
  0x3b   : > { %v1618_v27 = vrot.slane %v1616_v36, 5  ;;  %v1601_v29 = vsel %vm5138_vm12, %v1596_v17, %v1600_v62  ;;  %v1606_v31 = vrot.slane %v1605_v19, 4  ;;  %4264 = vmatprep.mubr.msk.bf16.mxu1 %vm945_vm8, %v5144_v9  ;;  %v1622_v32 = vshll.u32 %v5090_v28, 16 }
  0x3c   : > { %v445_v2 = vor.u32 %v443_v11, %v5151_v21  ;;  %v1587_v38 = vsel %vm5138_vm12, %v1582_v23, %v1586_v49  ;;  %v1628_v46 = vrot.slane %v1626_v37, 4  ;;  %v1632_v34 = vshll.u32 %v819_v22, 16 }
  0x3d   : > { %v1619_v41 = vor.u32 %v1618_v27, %v1615_v26  ;;  %v5167_v36 = vcombine.low %v1577_v8, %v1587_v38  ;;  %v1611_v47 = vsel %vm5138_vm12, %v1606_v31, %v1610_v6  ;;  %v1624_v50 = vrot.slane %v1622_v32, 5  ;;  %v254_v27 = vld [vmem:[%s4952_s8 + $0x88] sm:$0xff] }
  0x3e   : > { %v556_v48 = vsel %vm5008_vm5, 0, %v445_v2  ;;  %v5173_v53 = vcombine.low %v1601_v29, %v1611_v47  ;;  %v1634_v49 = vrot.slane %v1632_v34, 5  ;;  %v1639_v55 = vrot.slane %v1637_v43, 4 }
  0x3f   : > { %6332 = vst [vmem:[#allocation4_spill] sm:$0xff] %v5167_v36  ;;  %v3840_v11 = vcombine.low %v556_v48, %v556_v48  ;;  %v3841_v28 = vcombine.high %v556_v48, %v556_v48  ;;  %v1620_v52 = vrot.slane %v1619_v41, 4  ;;  %4392 = vmatprep.mubr.msk.bf16.mxu0 %vm945_vm8, %v5167_v36  ;;  %v1629_v37 = vor.u32 %v1628_v46, %v1624_v50 }
  0x40   : > { %6333 = vst [vmem:[#allocation5_spill] sm:$0xff] %v5173_v53  ;;  %v1642_v56 = vrot.slane %v1640_v44, 5  ;;  %4393 = vmatmul.mubr.msk.bf16.vlgmr.msra.gmra.mrb[0].mxu0 %vm945_vm8, %v5173_v53  ;;  %v1646_v63 = vshll.u32 %v5110_v39, 16  ;;  %v1652_v43 = vrot.slane %v1650_v45, 4  ;;  %v1656_v44 = vshll.u32 %v822_v51, 16 }
  0x41   : > { %775 = vst.msk [vmem:[#allocation2 + $0x48] sm:$0xf] %vm395_vm1, %v3840_v11  ;;  %776 = vst.msk [vmem:[#allocation2 + $0x4c] sm:$0xf] %vm395_vm1, %v3841_v28  ;;  %v1625_v18 = vsel %vm5138_vm12, %v1620_v52, %v1624_v50  ;;  %4425 = vmatpush3.bf16.msra.mxu0 %v4985_v24  ;;  %v1630_v3 = vrot.slane %v1629_v37, 4  ;;  %v359_v6 = vmax.f32 %v5050_v54, 0.0  ;;  %v293_v48 = vmul.f32 %v4937_v4, %v254_v27 }
  0x42   : > { %v1643_v62 = vor.u32 %v1642_v56, %v1639_v55  ;;  %v360_v10 = vmax.f32 %v5059_v57, 0.0  ;;  %v1648_v13 = vrot.slane %v1646_v63, 5  ;;  %v1658_v17 = vrot.slane %v1656_v44, 5  ;;  %4825 = vmatprep.subr.msk.bf16.mxu0 %vm994_vm0, %v5180_v58 }
  0x43   : > { %v361_v19 = vmax.f32 %v5093_v30, 0.0  ;;  %v362_v22 = vmax.f32 %v5113_v40, 0.0  ;;  %v1635_v39 = vsel %vm5138_vm12, %v1630_v3, %v1634_v49  ;;  %v1663_v8 = vrot.slane %v1661_v14, 4  ;;  %v825_v14 = vld [vmem:[#allocation2 + $0x44] sm:$0x1] }
  0x44   : > { %v1644_v24 = vrot.slane %v1643_v62, 4  ;;  %v385_v45 = vpack.c.bf16 %v360_v10, %v359_v6  ;;  %v5200_v23 = vcombine.low %v1625_v18, %v1635_v39  ;;  %v1653_v54 = vor.u32 %v1652_v43, %v1648_v13  ;;  %v255_v39 = vld [vmem:[%s4952_s8 + $0x90] sm:$0xff] }
  0x45   : > { %v386_v26 = vpack.c.bf16 %v362_v22, %v361_v19  ;;  %v1666_v57 = vrot.slane %v1664_v15, 5  ;;  %v1670_v31 = vshll.u32 %v5134_v0, 16  ;;  %v331_v50 = vadd.f32 %v4957_v7, %v5065_v60 }
  0x46   : > { %6334 = vst [vmem:[#allocation6_spill] sm:$0xff] %v5200_v23  ;;  %v1649_v30 = vsel %vm5138_vm12, %v1644_v24, %v1648_v13  ;;  %v447_v29 = vshrl.u32 %v385_v45, 16  ;;  %v450_v40 = vshll.u32 %v385_v45, 16  ;;  %4396 = vmatprep.mubr.msk.bf16.mxu0 %vm945_vm8, %v5200_v23  ;;  %v1654_v2 = vrot.slane %v1653_v54, 4  ;;  %v256_v24 = vld [vmem:[%s4952_s8 + $0x98] sm:$0xff] }
  0x47   : > { %v454_v32 = vshrl.u32 %v386_v26, 16  ;;  %v457_v38 = vshll.u32 %v386_v26, 16  ;;  %v1667_v41 = vor.u32 %v1666_v57, %v1663_v8  ;;  %v1672_v15 = vrot.slane %v1670_v31, 5 }
  0x48   : > { %v826_v46 = vld [vmem:[#allocation2 + $0x48] sm:$0xf]  ;;  %v827_v34 = vld [vmem:[#allocation2 + $0x4c] sm:$0xf]  ;;  %v449_v47 = vrot.slane %v447_v29, 7  ;;  %v1659_v37 = vsel %vm5138_vm12, %v1654_v2, %v1658_v17  ;;  %v1676_v63 = vrot.slane %v1674_v20, 4  ;;  %v294_v31 = vmul.f32 %v4937_v4, %v255_v39 }
  0x49   : > { %v5211_v51 = vcombine.low %v826_v46, %v827_v34  ;;  %v1685_v11 = vshrl.u32 %v826_v46, 16  ;;  %v1688_v28 = vshll.u32 %v826_v46, 16  ;;  %v1698_v52 = vshrl.u32 %v827_v34, 16 }
  0x4a   : > { %v452_v49 = vor.u32 %v450_v40, %v449_v47  ;;  %v456_v55 = vrot.slane %v454_v32, 7  ;;  %v1668_v56 = vrot.slane %v1667_v41, 4  ;;  %v5217_v18 = vcombine.low %v1649_v30, %v1659_v37  ;;  %v260_v37 = vld [vmem:[%s4952_s8 + $0xb8] sm:$0xff] }
  0x4b   : > { %4265 = vmatmul.mubr.msk.bf16.gmra.mrb[8].mxu1 %vm945_vm8, %v5211_v51  ;;  %v1680_v60 = vshll.u32 %v825_v14, 16  ;;  %v572_v43 = vsel %vm5008_vm5, %v5151_v21, 0  ;;  %v1677_v10 = vor.u32 %v1676_v63, %v1672_v15  ;;  %v1687_v21 = vrot.slane %v1685_v11, 4 }
  0x4c   : > { %6335 = vst [vmem:[#allocation7_spill] sm:$0xff] %v5217_v18  ;;  %v557_v44 = vsel %vm5008_vm5, 0, %v452_v49  ;;  %v459_v3 = vor.u32 %v457_v38, %v456_v55  ;;  %v1673_v62 = vsel %vm5138_vm12, %v1668_v56, %v1672_v15  ;;  %v3842_v6 = vcombine.low %v572_v43, %v572_v43  ;;  %4397 = vmatmul.mubr.msk.bf16.gmra.mrb[4].mxu0 %vm945_vm8, %v5217_v18  ;;  %v258_v15 = vld [vmem:[%s4952_s8 + $0xa8] sm:$0xff] }
  0x4d   : > { %v3843_v0 = vcombine.low %v557_v44, %v557_v44  ;;  %v3844_v20 = vcombine.high %v557_v44, %v557_v44  ;;  %v1682_v13 = vrot.slane %v1680_v60, 5  ;;  %v1690_v19 = vrot.slane %v1688_v28, 5 }
  0x4e   : > { %v558_v17 = vsel %vm5008_vm5, 0, %v459_v3  ;;  %777 = vst.msk [vmem:[#allocation2 + $0x50] sm:$0x1] %vm398_vm2, %v3842_v6  ;;  %v1694_v22 = vshll.u32 %v827_v34, 16  ;;  %v1678_v54 = vrot.slane %v1677_v10, 4  ;;  %v1700_v26 = vrot.slane %v1698_v52, 4 }
  0x4f   : > { %778 = vst.msk [vmem:[#allocation2 + $0x54] sm:$0xf] %vm395_vm1, %v3843_v0  ;;  %779 = vst.msk [vmem:[#allocation2 + $0x58] sm:$0xf] %vm395_vm1, %v3844_v20  ;;  %v3846_v45 = vcombine.low %v558_v17, %v558_v17  ;;  %v3847_v8 = vcombine.high %v558_v17, %v558_v17  ;;  %v1691_v57 = vor.u32 %v1690_v19, %v1687_v21  ;;  %v363_v29 = vmax.f32 %v331_v50, 0.0  ;;  %v257_v34 = vld [vmem:[%s4952_s8 + $0xa0] sm:$0xff] }
  0x50   : > { %v1696_v27 = vrot.slane %v1694_v22, 5  ;;  %v332_v30 = vadd.f32 %v4957_v7, %v293_v48  ;;  %v1683_v40 = vsel %vm5138_vm12, %v1678_v54, %v1682_v13  ;;  %v295_v2 = vmul.f32 %v4937_v4, %v256_v24  ;;  %v259_v52 = vld [vmem:[%s4952_s8 + $0xb0] sm:$0xff] }
  0x51   : > { %781 = vst.msk [vmem:[#allocation2 + $0x60] sm:$0xf] %vm395_vm1, %v3846_v45  ;;  %782 = vst.msk [vmem:[#allocation2 + $0x64] sm:$0xf] %vm395_vm1, %v3847_v8  ;;  %v573_v32 = vsel %vm5008_vm5, %v449_v47, 0  ;;  %v5246_v38 = vcombine.low %v1673_v62, %v1683_v40  ;;  %v1692_v14 = vrot.slane %v1691_v57, 4  ;;  %v333_v48 = vadd.f32 %v4957_v7, %v294_v31 }
  0x52   : > { %v1701_v41 = vor.u32 %v1700_v26, %v1696_v27  ;;  %v364_v46 = vmax.f32 %v332_v30, 0.0  ;;  %v334_v50 = vadd.f32 %v4957_v7, %v295_v2  ;;  %v3845_v11 = vcombine.low %v573_v32, %v573_v32 }
  0x53   : > { %6336 = vst [vmem:[#allocation8_spill] sm:$0xff] %v5246_v38  ;;  %v574_v28 = vsel %vm5008_vm5, %v456_v55, 0  ;;  %4400 = vmatprep.mubr.msk.bf16.mxu0 %vm945_vm8, %v5246_v38  ;;  %v1697_v47 = vsel %vm5138_vm12, %v1692_v14, %v1696_v27  ;;  %v365_v43 = vmax.f32 %v333_v48, 0.0  ;;  %v296_v3 = vmul.f32 %v4937_v4, %v257_v34 }
  0x54   : > { %v1702_v49 = vrot.slane %v1701_v41, 4  ;;  %v387_v56 = vpack.c.bf16 %v364_v46, %v363_v29  ;;  %v3848_v63 = vcombine.low %v574_v28, %v574_v28  ;;  %v366_v44 = vmax.f32 %v334_v50, 0.0  ;;  %780 = vst.msk [vmem:[#allocation2 + $0x5c] sm:$0x1] %vm398_vm2, %v3845_v11 }
  0x55   : > { %v5260_v60 = vld [vmem:[#allocation2 + $0x50] sm:$0x1]  ;;  %v5265_v55 = vmul.f32 %v4937_v4, %v258_v15  ;;  %v5272_v10 = vmul.f32 %v4937_v4, %v259_v52  ;;  %v5275_v13 = vmul.f32 %v4937_v4, %v260_v37  ;;  %v5284_v26 = vadd.f32 %v4957_v7, %v296_v3 }
  0x56   : > { %v829_v62 = vld [vmem:[#allocation2 + $0x54] sm:$0xf]  ;;  %v5267_v6 = vld [vmem:[#allocation2 + $0x58] sm:$0xf]  ;;  %v1704_v0 = vshll.u32 %v5260_v60, 16  ;;  %v461_v20 = vshrl.u32 %v387_v56, 16  ;;  %v388_v54 = vpack.c.bf16 %v366_v44, %v365_v43 }
  0x57   : > { %783 = vst.msk [vmem:[#allocation2 + $0x68] sm:$0x1] %vm398_vm2, %v3848_v63  ;;  %v5278_v17 = vcombine.low %v829_v62, %v5267_v6  ;;  %v1709_v21 = vshrl.u32 %v829_v62, 16  ;;  %v1712_v19 = vshll.u32 %v829_v62, 16  ;;  %v1722_v22 = vshrl.u32 %v5267_v6, 16 }
  0x58   : > { %v832_v39 = vld [vmem:[#allocation2 + $0x60] sm:$0xf]  ;;  %v833_v24 = vld [vmem:[#allocation2 + $0x64] sm:$0xf]  ;;  %v1706_v45 = vrot.slane %v1704_v0, 5  ;;  %v5281_v8 = vrot.slane %v461_v20, 7 }
  0x59   : > { %4268 = vmatprep.mubr.msk.bf16.mxu1 %vm945_vm8, %v5278_v17  ;;  %v5288_v57 = vcombine.low %v832_v39, %v833_v24  ;;  %v1733_v27 = vshrl.u32 %v832_v39, 16  ;;  %v1736_v30 = vshll.u32 %v832_v39, 16  ;;  %v1746_v29 = vshrl.u32 %v833_v24, 16 }
  0x5a   : > { %v1707_v40 = vsel %vm5138_vm12, %v1702_v49, %v1706_v45  ;;  %v464_v31 = vshll.u32 %v387_v56, 16  ;;  %v468_v2 = vshrl.u32 %v388_v54, 16  ;;  %v471_v32 = vshll.u32 %v388_v54, 16 }
  0x5b   : > { %4269 = vmatmul.mubr.msk.bf16.gmra.mrb[12].mxu1 %vm945_vm8, %v5288_v57  ;;  %v5294_v14 = vcombine.low %v1697_v47, %v1707_v40  ;;  %v1711_v41 = vrot.slane %v1709_v21, 4  ;;  %v1714_v46 = vrot.slane %v1712_v19, 5  ;;  %v1718_v34 = vshll.u32 %v5267_v6, 16  ;;  %v5300_v50 = vld [vmem:[#allocation2 + $0x5c] sm:$0x1] }
  0x5c   : > { %v466_v15 = vor.u32 %v464_v31, %v5281_v8  ;;  %v5298_v48 = vrot.slane %v468_v2, 7  ;;  %v1724_v11 = vrot.slane %v1722_v22, 4  ;;  %v1735_v28 = vrot.slane %v1733_v27, 4 }
  0x5d   : > { %6337 = vst [vmem:[#allocation9_spill] sm:$0xff] %v5294_v14  ;;  %4401 = vmatmul.mubr.msk.bf16.gmra.mrb[8].mxu0 %vm945_vm8, %v5294_v14  ;;  %v1715_v52 = vor.u32 %v1714_v46, %v1711_v41  ;;  %v1720_v37 = vrot.slane %v1718_v34, 5  ;;  %v1728_v47 = vshll.u32 %v5300_v50, 16  ;;  %v1738_v49 = vrot.slane %v1736_v30, 5 }
  0x5e   : > { %v559_v56 = vsel %vm5008_vm5, 0, %v466_v15  ;;  %v473_v63 = vor.u32 %v471_v32, %v5298_v48  ;;  %v1742_v43 = vshll.u32 %v833_v24, 16  ;;  %v1748_v44 = vrot.slane %v1746_v29, 4  ;;  %v5308_v21 = vld [vmem:[#allocation2 + $0x68] sm:$0x1]  ;;  %v261_v32 = vld [vmem:[%s4952_s8 + $0xc0] sm:$0xff] }
  0x5f   : > { %v3849_v3 = vcombine.low %v559_v56, %v559_v56  ;;  %v3850_v62 = vcombine.high %v559_v56, %v559_v56  ;;  %v1716_v0 = vrot.slane %v1715_v52, 4  ;;  %v1725_v20 = vor.u32 %v1724_v11, %v1720_v37  ;;  %6338 = vst [vmem:[#allocation10_spill] sm:$0xff] %v5308_v21  ;;  %v262_v11 = vld [vmem:[%s4952_s8 + $0xc8] sm:$0xff] }
  0x60   : > { %v560_v19 = vsel %vm5008_vm5, 0, %v473_v63  ;;  %v1730_v22 = vrot.slane %v1728_v47, 5  ;;  %v1739_v39 = vor.u32 %v1738_v49, %v1735_v28  ;;  %v1744_v45 = vrot.slane %v1742_v43, 5  ;;  %v263_v28 = vld [vmem:[%s4952_s8 + $0xd0] sm:$0xff] }
  0x61   : > { %784 = vst.msk [vmem:[#allocation2 + $0x6c] sm:$0xf] %vm395_vm1, %v3849_v3  ;;  %785 = vst.msk [vmem:[#allocation2 + $0x70] sm:$0xf] %vm395_vm1, %v3850_v62  ;;  %v3852_v24 = vcombine.low %v560_v19, %v560_v19  ;;  %v3853_v54 = vcombine.high %v560_v19, %v560_v19  ;;  %v1721_v27 = vsel %vm5138_vm12, %v1716_v0, %v1720_v37  ;;  %v1726_v30 = vrot.slane %v1725_v20, 4  ;;  %v266_v19 = vld [vmem:[%s4952_s8 + $0xe8] sm:$0xff] }
  0x62   : > { %v1740_v29 = vrot.slane %v1739_v39, 4  ;;  %v1749_v40 = vor.u32 %v1748_v44, %v1744_v45  ;;  %v1752_v31 = vshll.u32 %v5308_v21, 16  ;;  %v336_v2 = vadd.f32 %v4957_v7, %v5265_v55  ;;  %v264_v55 = vld [vmem:[%s4952_s8 + $0xd8] sm:$0xff] }
  0x63   : > { %787 = vst.msk [vmem:[#allocation2 + $0x78] sm:$0xf] %vm395_vm1, %v3852_v24  ;;  %788 = vst.msk [vmem:[#allocation2 + $0x7c] sm:$0xf] %vm395_vm1, %v3853_v54  ;;  %v1731_v41 = vsel %vm5138_vm12, %v1726_v30, %v1730_v22  ;;  %v367_v46 = vmax.f32 %v5284_v26, 0.0  ;;  %v337_v34 = vadd.f32 %v4957_v7, %v5272_v10  ;;  %v338_v15 = vadd.f32 %v4957_v7, %v5275_v13  ;;  %v265_v10 = vld [vmem:[%s4952_s8 + $0xe0] sm:$0xff] }
  0x64   : > { %v5332_v52 = vcombine.low %v1721_v27, %v1731_v41  ;;  %v1745_v37 = vsel %vm5138_vm12, %v1740_v29, %v1744_v45  ;;  %v1750_v47 = vrot.slane %v1749_v40, 4  ;;  %v1754_v49 = vrot.slane %v1752_v31, 5 }
  0x65   : > { %v368_v56 = vmax.f32 %v336_v2, 0.0  ;;  %v369_v63 = vmax.f32 %v337_v34, 0.0  ;;  %v370_v26 = vmax.f32 %v338_v15, 0.0  ;;  %v300_v43 = vmul.f32 %v4937_v4, %v261_v32 }
  0x66   : > { %6339 = vst [vmem:[#allocation11_spill] sm:$0xff] %v5332_v52  ;;  %4404 = vmatprep.mubr.msk.bf16.mxu0 %vm945_vm8, %v5332_v52  ;;  %v1755_v13 = vsel %vm5138_vm12, %v1750_v47, %v1754_v49  ;;  %v301_v44 = vmul.f32 %v4937_v4, %v262_v11  ;;  %v302_v3 = vmul.f32 %v4937_v4, %v263_v28  ;;  %v2904_v11 = vsel %vm994_vm0, %v5180_v58, 0  ;;  %v267_v28 = vld [vmem:[%s4952_s8 + $0xf0] sm:$0xff] }
  0x67   : > { %v303_v62 = vmul.f32 %v4937_v4, %v264_v55  ;;  %v5345_v0 = vcombine.low %v1745_v37, %v1755_v13  ;;  %v389_v20 = vpack.c.bf16 %v368_v56, %v367_v46  ;;  %v390_v45 = vpack.c.bf16 %v370_v26, %v369_v63  ;;  %v268_v56 = vld [vmem:[%s4952_s8 + $0xf8] sm:$0xff] }
  0x68   : > { %v5348_v22 = vld [vmem:[#allocation2 + $0x6c] sm:$0xf]  ;;  %v5350_v39 = vld [vmem:[#allocation2 + $0x70] sm:$0xf]  ;;  %v339_v24 = vadd.f32 %v4957_v7, %v300_v43  ;;  %v304_v54 = vmul.f32 %v4937_v4, %v265_v10  ;;  %v340_v30 = vadd.f32 %v4957_v7, %v301_v44  ;;  %v341_v29 = vadd.f32 %v4957_v7, %v302_v3 }
  0x69   : > { %6340 = vst [vmem:[#allocation12_spill] sm:$0xff] %v5345_v0  ;;  %6341 = vst [vmem:[#allocation13_spill] sm:$0xff] %v5348_v22  ;;  %v5356_v27 = vcombine.low %v5348_v22, %v5350_v39  ;;  %4405 = vmatmul.mubr.msk.bf16.gmra.mrb[12].mxu0 %vm945_vm8, %v5345_v0  ;;  %v342_v40 = vadd.f32 %v4957_v7, %v303_v62  ;;  %v475_v32 = vshrl.u32 %v389_v20, 16  ;;  %v478_v41 = vshll.u32 %v389_v20, 16 }
  0x6a   : > { %6342 = vst [vmem:[#allocation14_spill] sm:$0xff] %v5350_v39  ;;  %v5363_v31 = vld [vmem:[#allocation2 + $0x78] sm:$0xf]  ;;  %v5365_v2 = vld [vmem:[#allocation2 + $0x7c] sm:$0xf]  ;;  %4426 = vmatprep.mubr.msk.bf16.mxu0 %vm945_vm8, %v5173_v53  ;;  %v305_v46 = vmul.f32 %v4937_v4, %v266_v19  ;;  %v343_v34 = vadd.f32 %v4957_v7, %v304_v54  ;;  %v482_v37 = vshrl.u32 %v390_v45, 16  ;;  %v306_v3 = vmul.f32 %v4937_v4, %v267_v28 }
  0x6b   : > { %6343 = vst [vmem:[#allocation15_spill] sm:$0xff] %v5363_v31  ;;  %6344 = vst [vmem:[#allocation16_spill] sm:$0xff] %v5365_v2  ;;  %4272 = vmatprep.mubr.msk.bf16.mxu1 %vm945_vm8, %v5356_v27  ;;  %v5375_v15 = vcombine.low %v5363_v31, %v5365_v2  ;;  %v5380_v55 = vrot.slane %v475_v32, 7  ;;  %v485_v47 = vshll.u32 %v390_v45, 16  ;;  %v371_v49 = vmax.f32 %v339_v24, 0.0 }
  0x6c   : > { %v372_v63 = vmax.f32 %v340_v30, 0.0  ;;  %v373_v26 = vmax.f32 %v341_v29, 0.0  ;;  %v374_v43 = vmax.f32 %v342_v40, 0.0  ;;  %v344_v10 = vadd.f32 %v4957_v7, %v305_v46  ;;  %v5399_v40 = vld [vmem:[%s6282_s3 + $0xa] sm:$0x3] }
  0x6d   : > { %4273 = vmatmul.mubr.msk.bf16.gmra.mrb[16].mxu1 %vm945_vm8, %v5375_v15  ;;  %v480_v13 = vor.u32 %v478_v41, %v5380_v55  ;;  %v5387_v44 = vrot.slane %v482_v37, 7  ;;  %v375_v58 = vmax.f32 %v343_v34, 0.0  ;;  %v307_v45 = vmul.f32 %v4937_v4, %v268_v56 }
  0x6e   : > { %v391_v62 = vpack.c.bf16 %v372_v63, %v371_v49  ;;  %v392_v20 = vpack.c.bf16 %v374_v43, %v373_v26  ;;  %v376_v19 = vmax.f32 %v344_v10, 0.0  ;;  %v1757_v24 = vshrl.u32 %v5348_v22, 16 }
  0x6f   : > { %v561_v54 = vsel %vm5008_vm5, 0, %v480_v13  ;;  %v487_v30 = vor.u32 %v485_v47, %v5387_v44  ;;  %v345_v29 = vadd.f32 %v4957_v7, %v306_v3  ;;  %v346_v26 = vadd.f32 %v4957_v7, %v307_v45 }
  0x70   : > { %v3855_v32 = vcombine.low %v561_v54, %v561_v54  ;;  %v3856_v41 = vcombine.high %v561_v54, %v561_v54  ;;  %v489_v4 = vshrl.u32 %v391_v62, 16  ;;  %v492_v46 = vshll.u32 %v391_v62, 16 }
  0x71   : > { %4427 = vmatmul.mubr.msk.bf16.vlgmr.msra.gmra.mrb[0].mxu0 %vm945_vm8, %v5200_v23  ;;  %v562_v34 = vsel %vm5008_vm5, 0, %v487_v30  ;;  %v496_v28 = vshrl.u32 %v392_v20, 16  ;;  %v499_v37 = vshll.u32 %v392_v20, 16  ;;  %v393_v47 = vpack.c.bf16 %v376_v19, %v375_v58 }
  0x72   : > { %4459 = vmatpush3.bf16.msra.mxu0 %v2904_v11  ;;  %4430 = vmatprep.mubr.msk.bf16.mxu0 %vm945_vm8, %v5217_v18  ;;  %790 = vst.msk [vmem:[#allocation2 + $0x84] sm:$0xf] %vm395_vm1, %v3855_v32  ;;  %791 = vst.msk [vmem:[#allocation2 + $0x88] sm:$0xf] %vm395_vm1, %v3856_v41  ;;  %v3858_v49 = vcombine.low %v562_v34, %v562_v34  ;;  %v3859_v56 = vcombine.high %v562_v34, %v562_v34  ;;  %v5409_v63 = vrot.slane %v489_v4, 7 }
  0x73   : > { %4826 = vmatprep.subr.msk.bf16.mxu0 %vm994_vm0, %v5399_v40  ;;  %v5414_v11 = vrot.slane %v496_v28, 7  ;;  %v503_v43 = vshrl.u32 %v393_v47, 16  ;;  %v506_v10 = vshll.u32 %v393_v47, 16  ;;  %v377_v13 = vmax.f32 %v345_v29, 0.0 }
  0x74   : > { %v1760_v58 = vshll.u32 %v5348_v22, 16  ;;  %793 = vst.msk [vmem:[#allocation2 + $0x90] sm:$0xf] %vm395_vm1, %v3858_v49  ;;  %794 = vst.msk [vmem:[#allocation2 + $0x94] sm:$0xf] %vm395_vm1, %v3859_v56  ;;  %v494_v3 = vor.u32 %v492_v46, %v5409_v63  ;;  %v378_v62 = vmax.f32 %v346_v26, 0.0 }
  0x75   : > { %v1770_v20 = vshrl.u32 %v5350_v39, 16  ;;  %v501_v7 = vor.u32 %v499_v37, %v5414_v11  ;;  %v5422_v19 = vrot.slane %v503_v43, 7  ;;  %v575_v45 = vsel %vm5008_vm5, %v5281_v8, 0 }
  0x76   : > { %v563_v54 = vsel %vm5008_vm5, 0, %v494_v3  ;;  %v394_v30 = vpack.c.bf16 %v378_v62, %v377_v13  ;;  %v3851_v29 = vcombine.low %v575_v45, %v575_v45  ;;  %v1759_v32 = vrot.slane %v1757_v24, 4 }
  0x77   : > { %v3861_v41 = vcombine.low %v563_v54, %v563_v54  ;;  %v3862_v4 = vcombine.high %v563_v54, %v563_v54  ;;  %v564_v46 = vsel %vm5008_vm5, 0, %v501_v7  ;;  %v508_v34 = vor.u32 %v506_v10, %v5422_v19 }
  0x78   : > { %v3864_v28 = vcombine.low %v564_v46, %v564_v46  ;;  %v3865_v37 = vcombine.high %v564_v46, %v564_v46  ;;  %v510_v47 = vshrl.u32 %v394_v30, 16  ;;  %v513_v8 = vshll.u32 %v394_v30, 16  ;;  %786 = vst.msk [vmem:[#allocation2 + $0x74] sm:$0x1] %vm398_vm2, %v3851_v29 }
  0x79   : > { %4431 = vmatmul.mubr.msk.bf16.gmra.mrb[4].mxu0 %vm945_vm8, %v5246_v38  ;;  %v5435_v49 = vld [vmem:[#allocation2 + $0x84] sm:$0xf]  ;;  %v5437_v56 = vld [vmem:[#allocation2 + $0x88] sm:$0xf]  ;;  %796 = vst.msk [vmem:[#allocation2 + $0x9c] sm:$0xf] %vm395_vm1, %v3861_v41 }
  0x7a   : > { %797 = vst.msk [vmem:[#allocation2 + $0xa0] sm:$0xf] %vm395_vm1, %v3862_v4  ;;  %v565_v24 = vsel %vm5008_vm5, 0, %v508_v34  ;;  %4434 = vmatprep.mubr.msk.bf16.mxu0 %vm945_vm8, %v5294_v14  ;;  %v1762_v26 = vrot.slane %v1760_v58, 5  ;;  %v1781_v43 = vshrl.u32 %v5363_v31, 16  ;;  %v1784_v10 = vshll.u32 %v5363_v31, 16 }
  0x7b   : > { %v1794_v13 = vshrl.u32 %v5365_v2, 16  ;;  %v5450_v3 = vcombine.low %v5435_v49, %v5437_v56  ;;  %799 = vst.msk [vmem:[#allocation2 + $0xa8] sm:$0xf] %vm395_vm1, %v3864_v28  ;;  %800 = vst.msk [vmem:[#allocation2 + $0xac] sm:$0xf] %vm395_vm1, %v3865_v37  ;;  %v3867_v45 = vcombine.low %v565_v24, %v565_v24  ;;  %v3868_v58 = vcombine.high %v565_v24, %v565_v24 }
  0x7c   : > { %v5454_v62 = vld [vmem:[#allocation2 + $0x90] sm:$0xf]  ;;  %v5456_v7 = vld [vmem:[#allocation2 + $0x94] sm:$0xf]  ;;  %v5458_v54 = vrot.slane %v510_v47, 7  ;;  %v1763_v30 = vor.u32 %v1762_v26, %v1759_v32  ;;  %v1766_v37 = vshll.u32 %v5350_v39, 16 }
  0x7d   : > { %4276 = vmatprep.mubr.msk.bf16.mxu1 %vm945_vm8, %v5450_v3  ;;  %v5467_v46 = vcombine.low %v5454_v62, %v5456_v7  ;;  %802 = vst.msk [vmem:[#allocation2 + $0xb4] sm:$0xf] %vm395_vm1, %v3867_v45  ;;  %803 = vst.msk [vmem:[#allocation2 + $0xb8] sm:$0xf] %vm395_vm1, %v3868_v58  ;;  %v1772_v47 = vrot.slane %v1770_v20, 4  ;;  %v576_v24 = vsel %vm5008_vm5, %v5298_v48, 0 }
  0x7e   : > { %v515_v32 = vor.u32 %v513_v8, %v5458_v54  ;;  %v1783_v26 = vrot.slane %v1781_v43, 4  ;;  %v1786_v34 = vrot.slane %v1784_v10, 5  ;;  %v1764_v58 = vrot.slane %v1763_v30, 4 }
  0x7f   : > { %4277 = vmatmul.mubr.msk.bf16.gmra.mrb[20].mxu1 %vm945_vm8, %v5467_v46  ;;  %v5482_v45 = vld [vmem:[#allocation2 + $0x74] sm:$0x1]  ;;  %v1768_v4 = vrot.slane %v1766_v37, 5  ;;  %v3854_v8 = vcombine.low %v576_v24, %v576_v24  ;;  %v1790_v43 = vshll.u32 %v5365_v2, 16  ;;  %v1796_v37 = vrot.slane %v1794_v13, 4 }
  0x80   : > { %v566_v28 = vsel %vm5008_vm5, 0, %v515_v32  ;;  %6345 = vst [vmem:[#allocation17_spill] sm:$0xff] %v5482_v45  ;;  %v5484_v41 = vld [vmem:[#allocation2 + $0x9c] sm:$0xf]  ;;  %v1776_v48 = vshll.u32 %v5482_v45, 16  ;;  %v6349_v13 = vshll.u32 %v5435_v49, 16 }
  0x81   : > { %v5486_v29 = vld [vmem:[#allocation2 + $0xa0] sm:$0xf]  ;;  %v3870_v14 = vcombine.low %v566_v28, %v566_v28  ;;  %v3871_v20 = vcombine.high %v566_v28, %v566_v28  ;;  %4435 = vmatmul.mubr.msk.bf16.gmra.mrb[8].mxu0 %vm945_vm8, %v5332_v52  ;;  %789 = vst.msk [vmem:[#allocation2 + $0x80] sm:$0x1] %vm398_vm2, %v3854_v8  ;;  %v1787_v28 = vor.u32 %v1786_v34, %v1783_v26  ;;  %v1342_v22 = vsel %vm994_vm0, %v5103_v35, 0 }
  0x82   : > { %v5495_v30 = vcombine.low %v5484_v41, %v5486_v29  ;;  %v5497_v32 = vld [vmem:[#allocation2 + $0xa8] sm:$0xf]  ;;  %4438 = vmatprep.mubr.msk.bf16.mxu0 %vm945_vm8, %v5345_v0  ;;  %v5505_v10 = vld [vmem:[#allocation2 + $0xac] sm:$0xf]  ;;  %v1773_v18 = vor.u32 %v1772_v47, %v1768_v4  ;;  %v1778_v8 = vrot.slane %v1776_v48, 5  ;;  %v6348_v48 = vshrl.u32 %v5435_v49, 16 }
  0x83   : > { %805 = vst.msk [vmem:[#allocation2 + $0xc0] sm:$0xf] %vm395_vm1, %v3870_v14  ;;  %806 = vst.msk [vmem:[#allocation2 + $0xc4] sm:$0xf] %vm395_vm1, %v3871_v20  ;;  %v5513_v34 = vcombine.low %v5497_v32, %v5505_v10  ;;  %v1769_v14 = vsel %vm5138_vm12, %v1764_v58, %v1768_v4  ;;  %v1792_v20 = vrot.slane %v1790_v43, 5  ;;  %v1788_v23 = vrot.slane %v1787_v28, 4 }
  0x84   : > { %4280 = vmatprep.mubr.msk.bf16.mxu1 %vm945_vm8, %v5495_v30  ;;  %v5517_v38 = vld [vmem:[#allocation2 + $0xb4] sm:$0xf]  ;;  %v5519_v52 = vld [vmem:[#allocation2 + $0xb8] sm:$0xf]  ;;  %v1774_v47 = vrot.slane %v1773_v18, 4  ;;  %v577_v28 = vsel %vm5008_vm5, %v5380_v55, 0 }
  0x85   : > { %v5526_v0 = vcombine.low %v5517_v38, %v5519_v52  ;;  %v5535_v18 = vld [vmem:[#allocation2 + $0x4] sm:$0xf]  ;;  %v1797_v58 = vor.u32 %v1796_v37, %v1792_v20  ;;  %v1807_v26 = vrot.slane %v6348_v48, 4  ;;  %v1810_v24 = vrot.slane %v6349_v13, 5 }
  0x86   : > { %v1779_v4 = vsel %vm5138_vm12, %v1774_v47, %v1778_v8  ;;  %v3857_v8 = vcombine.low %v577_v28, %v577_v28  ;;  %v1814_v37 = vshll.u32 %v5437_v56, 16  ;;  %v6351_v47 = vshrl.u32 %v5437_v56, 16 }
  0x87   : > { %6346 = vst [vmem:[#allocation18_spill] sm:$0xff] %v5526_v0  ;;  %4281 = vmatmul.mubr.msk.bf16.gmra.mrb[24].mxu1 %vm945_vm8, %v5513_v34  ;;  %v5541_v43 = vcombine.low %v1769_v14, %v1779_v4  ;;  %v1798_v36 = vrot.slane %v1797_v58, 4  ;;  %v3906_v55 = vcombine.low %v5533_v5, %v5535_v18  ;;  %v1811_v48 = vor.u32 %v1810_v24, %v1807_v26 }
  0x88   : > { %4284 = vmatprep.mubr.msk.bf16.mxu1 %vm945_vm8, %v5526_v0  ;;  %v5550_v53 = vld [vmem:[#allocation2 + $0x80] sm:$0x1]  ;;  %v1820_v14 = vrot.slane %v6351_v47, 4  ;;  %v578_v58 = vsel %vm5008_vm5, %v5387_v44, 0  ;;  %v1793_v45 = vsel %vm5138_vm12, %v1788_v23, %v1792_v20  ;;  %792 = vst.msk [vmem:[#allocation2 + $0x8c] sm:$0x1] %vm398_vm2, %v3857_v8 }
  0x89   : > { %6347 = vst [vmem:[#allocation19_spill] sm:$0xff] %v5541_v43  ;;  %6350 = vst [vmem:[#allocation20_spill] sm:$0xff] %v5550_v53  ;;  %4439 = vmatmul.mubr.msk.bf16.gmra.mrb[12].mxu0 %vm945_vm8, %v5541_v43  ;;  %v1800_v13 = vshll.u32 %v5550_v53, 16  ;;  %v1816_v43 = vrot.slane %v1814_v37, 5  ;;  %v3860_v53 = vcombine.low %v578_v58, %v578_v58  ;;  %v6353_v44 = vshrl.u32 %v5454_v62, 16 }
  0x8a   : > { %v5555_v4 = vld [vmem:[#allocation2 + $0xc0] sm:$0xf]  ;;  %v5557_v31 = vld [vmem:[#allocation2 + $0xc4] sm:$0xf]  ;;  %v6354_v2 = vshll.u32 %v5454_v62, 16  ;;  %v1838_v47 = vshll.u32 %v5456_v7, 16 }
  0x8b   : > { %v5569_v28 = vcombine.low %v5555_v4, %v5557_v31  ;;  %v1802_v26 = vrot.slane %v1800_v13, 5  ;;  %v1831_v0 = vrot.slane %v6353_v44, 4  ;;  %v6355_v23 = vshrl.u32 %v5456_v7, 16  ;;  %795 = vst.msk [vmem:[#allocation2 + $0x98] sm:$0x1] %vm398_vm2, %v3860_v53 }
  0x8c   : > { %v1834_v39 = vrot.slane %v6354_v2, 5  ;;  %v1812_v8 = vrot.slane %v1811_v48, 4  ;;  %v1821_v21 = vor.u32 %v1820_v14, %v1816_v43  ;;  %v579_v37 = vsel %vm5008_vm5, %v5409_v63, 0 }
  0x8d   : > { %6352 = vst [vmem:[#allocation21_spill] sm:$0xff] %v5569_v28  ;;  %v1844_v20 = vrot.slane %v6355_v23, 4  ;;  %v1803_v35 = vsel %vm5138_vm12, %v1798_v36, %v1802_v26  ;;  %v1840_v58 = vrot.slane %v1838_v47, 5  ;;  %v3863_v44 = vcombine.low %v579_v37, %v579_v37 }
  0x8e   : > { %v5593_v2 = vcombine.low %v1793_v45, %v1803_v35  ;;  %v1835_v13 = vor.u32 %v1834_v39, %v1831_v0  ;;  %v6357_v36 = vshrl.u32 %v5484_v41, 16  ;;  %v6358_v53 = vshll.u32 %v5484_v41, 16 }
  0x8f   : > { %4285 = vmatmul.mubr.msk.bf16.gmra.mrb[28].mxu1 %vm945_vm8, %v5569_v28  ;;  %v1862_v63 = vshll.u32 %v5486_v29, 16  ;;  %v1845_v26 = vor.u32 %v1844_v20, %v1840_v58  ;;  %798 = vst.msk [vmem:[#allocation2 + $0xa4] sm:$0x1] %vm398_vm2, %v3863_v44  ;;  %v6359_v0 = vshrl.u32 %v5486_v29, 16  ;;  %v5610_v47 = vld [vmem:[#allocation2 + $0x8c] sm:$0x1]  ;;  %v1817_v20 = vsel %vm5138_vm12, %v1812_v8, %v1816_v43 }
  0x90   : > { %6356 = vst [vmem:[#allocation22_spill] sm:$0xff] %v5593_v2  ;;  %4290 = vmatprep.mubr.msk.bf16.mxu1 %vm945_vm8, %v3906_v55  ;;  %v1855_v14 = vrot.slane %v6357_v36, 4  ;;  %v1858_v48 = vrot.slane %v6358_v53, 5  ;;  %4442 = vmatprep.mubr.msk.bf16.mxu0 %vm945_vm8, %v5593_v2  ;;  %v1836_v45 = vrot.slane %v1835_v13, 4  ;;  %v580_v55 = vsel %vm5008_vm5, %v5414_v11, 0 }
  0x91   : > { %v1868_v39 = vrot.slane %v6359_v0, 4  ;;  %v5612_v37 = vrot.slane %v1862_v63, 5  ;;  %v3866_v36 = vcombine.low %v580_v55, %v580_v55  ;;  %v6360_v53 = vshrl.u32 %v5497_v32, 16 }
  0x92   : > { %v1859_v35 = vor.u32 %v1858_v48, %v1855_v14  ;;  %v1822_v13 = vrot.slane %v1821_v21, 4  ;;  %v1824_v44 = vshll.u32 %v5610_v47, 16  ;;  %v6361_v0 = vshll.u32 %v5497_v32, 16 }
  0x93   : > { %v1879_v23 = vrot.slane %v6360_v53, 4  ;;  %v1841_v11 = vsel %vm5138_vm12, %v1836_v45, %v1840_v58  ;;  %801 = vst.msk [vmem:[#allocation2 + $0xb0] sm:$0x1] %vm398_vm2, %v3866_v36  ;;  %v1886_v14 = vshll.u32 %v5505_v10, 16  ;;  %v6362_v48 = vshrl.u32 %v5505_v10, 16 }
  0x94   : > { %v1882_v24 = vrot.slane %v6361_v0, 5  ;;  %v1860_v2 = vrot.slane %v1859_v35, 4  ;;  %v1826_v55 = vrot.slane %v1824_v44, 5  ;;  %v5627_v53 = vld [vmem:[#allocation2 + $0x98] sm:$0x1]  ;;  %v1869_v21 = vor.u32 %v1868_v39, %v5612_v37 }
  0x95   : > { %v1892_v63 = vrot.slane %v6362_v48, 4  ;;  %v581_v8 = vsel %vm5008_vm5, %v5422_v19, 0  ;;  %v1846_v0 = vrot.slane %v1845_v26, 4  ;;  %v1848_v58 = vshll.u32 %v5627_v53, 16  ;;  %v5639_v44 = vld [vmem:[%s6282_s3 + $0x2] sm:$0x3] }
  0x96   : > { %v1883_v43 = vor.u32 %v1882_v24, %v1879_v23  ;;  %v1888_v45 = vrot.slane %v1886_v14, 5  ;;  %v6363_v35 = vshrl.u32 %v5517_v38, 16  ;;  %6364 = vst [vmem:[#allocation23_spill] sm:$0xff] %v5639_v44  ;;  %v1827_v24 = vsel %vm5138_vm12, %v1822_v13, %v1826_v55 }
  0x97   : > { %4291 = vmatmul.mubr.msk.bf16.vlgmr.msra.gmra.mrb[0].mxu1 %vm945_vm8, %v5076_v12  ;;  %v1865_v19 = vsel %vm5138_vm12, %v1860_v2, %v5612_v37  ;;  %v3869_v23 = vcombine.low %v581_v8, %v581_v8  ;;  %v6365_v26 = vshll.u32 %v5517_v38, 16  ;;  %v5652_v14 = vcombine.low %v1817_v20, %v1827_v24 }
  0x98   : > { %v1903_v36 = vrot.slane %v6363_v35, 4  ;;  %4294 = vmatprep.mubr.msk.bf16.mxu1 %vm945_vm8, %v5088_v25  ;;  %4323 = vmatpush3.bf16.msra.mxu1 %v1342_v22  ;;  %v1850_v48 = vrot.slane %v1848_v58, 5  ;;  %v5654_v35 = vld [vmem:[#allocation2 + $0xa4] sm:$0x1]  ;;  %v1893_v12 = vor.u32 %v1892_v63, %v1888_v45  ;;  %v1910_v13 = vshll.u32 %v5519_v52, 16 }
  0x99   : > { %v1906_v39 = vrot.slane %v6365_v26, 5  ;;  %6366 = vst [vmem:[#allocation24_spill] sm:$0xff] %v5652_v14  ;;  %v1870_v55 = vrot.slane %v1869_v21, 4  ;;  %v1872_v28 = vshll.u32 %v5654_v35, 16  ;;  %v1884_v2 = vrot.slane %v1883_v43, 4  ;;  %4821 = vmatprep.subr.msk.bf16.mxu1 %vm994_vm0, %v5639_v44  ;;  %4443 = vmatmul.mubr.msk.bf16.gmra.mrb[16].mxu0 %vm945_vm8, %v5652_v14 }
  0x9a   : > { %804 = vst.msk [vmem:[#allocation2 + $0xbc] sm:$0x1] %vm398_vm2, %v3869_v23  ;;  %v6367_v37 = vshrl.u32 %v5519_v52, 16  ;;  %v1851_v22 = vsel %vm5138_vm12, %v1846_v0, %v1850_v48  ;;  %v1912_v63 = vrot.slane %v1910_v13, 5  ;;  %v582_v21 = vsel %vm5008_vm5, %v5458_v54, 0 }
  0x9b   : > { %v1907_v20 = vor.u32 %v1906_v39, %v1903_v36  ;;  %v5670_v43 = vcombine.low %v1841_v11, %v1851_v22  ;;  %v1874_v58 = vrot.slane %v1872_v28, 5  ;;  %v5672_v24 = vld [vmem:[#allocation2 + $0xb0] sm:$0x1]  ;;  %v1894_v23 = vrot.slane %v1893_v12, 4 }
  0x9c   : > { %v1916_v8 = vrot.slane %v6367_v37, 4  ;;  %v3872_v26 = vcombine.low %v582_v21, %v582_v21  ;;  %v5674_v37 = vld [vmem:[#allocation2 + $0xcc] sm:$0xf]  ;;  %v1896_v14 = vshll.u32 %v5672_v24, 16  ;;  %v6370_v0 = vshrl.u32 %v5555_v4, 16 }
  0x9d   : > { %6368 = vst [vmem:[#allocation25_spill] sm:$0xff] %v5670_v43  ;;  %6369 = vst [vmem:[#allocation26_spill] sm:$0xff] %v5674_v37  ;;  %v6371_v39 = vshll.u32 %v5555_v4, 16  ;;  %4446 = vmatprep.mubr.msk.bf16.mxu0 %vm945_vm8, %v5670_v43  ;;  %v1875_v54 = vsel %vm5138_vm12, %v1870_v55, %v1874_v58  ;;  %v1889_v28 = vsel %vm5138_vm12, %v1884_v2, %v1888_v45  ;;  %v2228_v11 = vshll.u32 %v5557_v31, 16 }
  0x9e   : > { %v1917_v44 = vor.u32 %v1916_v8, %v1912_v63  ;;  %v2221_v36 = vrot.slane %v6370_v0, 4  ;;  %807 = vst.msk [vmem:[#allocation2 + $0xc8] sm:$0x1] %vm398_vm2, %v3872_v26  ;;  %v6373_v12 = vshrl.u32 %v5557_v31, 16  ;;  %v5693_v8 = vcombine.low %v1865_v19, %v1875_v54 }
  0x9f   : > { %v2224_v48 = vrot.slane %v6371_v39, 5  ;;  %v1898_v22 = vrot.slane %v1896_v14, 5  ;;  %v1908_v21 = vrot.slane %v1907_v20, 4  ;;  %4295 = vmatmul.mubr.msk.bf16.gmra.mrb[4].mxu1 %vm945_vm8, %v5098_v33  ;;  %v2230_v39 = vrot.slane %v2228_v11, 5  ;;  %v5706_v20 = vld [vmem:[#allocation2 + $0xd4] sm:$0x1] }
  0xa0   : > { %v2234_v13 = vrot.slane %v6373_v12, 4  ;;  %6374 = vst [vmem:[#allocation28_spill] sm:$0xff] %v5693_v8  ;;  %v2447_v55 = vshrl.u32 %v5674_v37, 16  ;;  %v2450_v45 = vshll.u32 %v5674_v37, 16  ;;  %v2456_v2 = vshll.u32 %v5681_v1, 16  ;;  %4298 = vmatprep.mubr.msk.bf16.mxu1 %vm945_vm8, %v5119_v42  ;;  %6375 = vst [vmem:[#allocation29_spill] sm:$0xff] %v5706_v20 }
  0xa1   : > { %v2225_v0 = vor.u32 %v2224_v48, %v2221_v36  ;;  %v1899_v19 = vsel %vm5138_vm12, %v1894_v23, %v1898_v22  ;;  %v5704_v58 = vld [vmem:[#allocation2 + $0xbc] sm:$0x1]  ;;  %v1918_v14 = vrot.slane %v1917_v44, 4  ;;  %v2460_v26 = vshrl.u32 %v5681_v1, 16  ;;  %4447 = vmatmul.mubr.msk.bf16.gmra.mrb[20].mxu0 %vm945_vm8, %v5693_v8 }
  0xa2   : > { %v5709_v36 = vcombine.low %v1889_v28, %v1899_v19  ;;  %v1920_v48 = vshll.u32 %v5704_v58, 16  ;;  %v2235_v54 = vor.u32 %v2234_v13, %v2230_v39  ;;  %v2449_v11 = vrot.slane %v2447_v55, 4 }
  0xa3   : > { %v2226_v12 = vrot.slane %v2225_v0, 4  ;;  %v2452_v43 = vrot.slane %v2450_v45, 5  ;;  %v2458_v37 = vrot.slane %v2456_v2, 5  ;;  %v2462_v23 = vrot.slane %v2460_v26, 4  ;;  %v5725_v26 = vld [vmem:[#allocation2 + $0x8] sm:$0x1] }
  0xa4   : > { %6376 = vst [vmem:[#allocation30_spill] sm:$0xff] %v5709_v36  ;;  %4450 = vmatprep.mubr.msk.bf16.mxu0 %vm945_vm8, %v5709_v36  ;;  %v1913_v44 = vsel %vm5138_vm12, %v1908_v21, %v1912_v63  ;;  %v1922_v22 = vrot.slane %v1920_v48, 5  ;;  %v2466_v28 = vshll.u32 %v5706_v20, 16  ;;  %v2695_v1 = vrot.slane %v5535_v18, 5  ;;  %v4858_v20 = vld [vmem:[#allocation2 + $0x20] sm:$0x1] }
  0xa5   : > { %v5719_v19 = vld [vmem:[#allocation2 + $0xc8] sm:$0x1]  ;;  %v2453_v13 = vor.u32 %v2452_v43, %v2449_v11  ;;  %v2463_v55 = vor.u32 %v2462_v23, %v2458_v37  ;;  %v2236_v45 = vrot.slane %v2235_v54, 4  ;;  %v2231_v63 = vsel %vm5138_vm12, %v2226_v12, %v2230_v39  ;;  %v4855_v12 = vld [vmem:[#allocation2 + $0x1c] sm:$0xf] }
  0xa6   : > { %v1923_v0 = vsel %vm5138_vm12, %v1918_v14, %v1922_v22  ;;  %v2238_v2 = vshll.u32 %v5719_v19, 16  ;;  %v2468_v11 = vrot.slane %v2466_v28, 5  ;;  %v4010_v14 = vrot.slane %v5533_v5, 9 }
  0xa7   : > { %v5727_v36 = vcombine.low %v1913_v44, %v1923_v0  ;;  %4299 = vmatmul.mubr.msk.bf16.gmra.mrb[8].mxu1 %vm945_vm8, %v5144_v9  ;;  %v2454_v21 = vrot.slane %v2453_v13, 4  ;;  %v2464_v48 = vrot.slane %v2463_v55, 4  ;;  %v2697_v54 = vrot.slane %v2695_v1, 4 }
  0xa8   : > { %v2240_v43 = vrot.slane %v2238_v2, 5  ;;  %4302 = vmatprep.mubr.msk.bf16.mxu1 %vm945_vm8, %v5211_v51  ;;  %v2698_v23 = vrot.slane %v5725_v26, 5  ;;  %v2709_v22 = vrot.slane %v4855_v12, 5  ;;  %v2696_v55 = vsel %vm5080_vm11, %v4010_v14, %v2695_v1  ;;  %v4860_v1 = vld [vmem:[#allocation2 + $0x24] sm:$0xf] }
  0xa9   : > { %6377 = vst [vmem:[#allocation31_spill] sm:$0xff] %v5727_v36  ;;  %4451 = vmatmul.mubr.msk.bf16.gmra.mrb[24].mxu0 %vm945_vm8, %v5727_v36  ;;  %v2459_v28 = vsel %vm5138_vm12, %v2454_v21, %v2458_v37  ;;  %v2469_v13 = vsel %vm5138_vm12, %v2464_v48, %v2468_v11  ;;  %v2712_v37 = vrot.slane %v4858_v20, 5  ;;  %v4859_v21 = vld [vmem:[#allocation2 + $0x34] sm:$0xf]  ;;  %v4013_v11 = vrot.slane %v4860_v1, 9 }
  0xaa   : > { %v2241_v44 = vsel %vm5138_vm12, %v2236_v45, %v2240_v43  ;;  %v2699_v0 = vsel %vm5080_vm11, %v2697_v54, %v2698_v23  ;;  %v4856_v45 = vld [vmem:[#allocation2 + $0x28] sm:$0xf]  ;;  %v2711_v12 = vrot.slane %v2709_v22, 4  ;;  %v2723_v36 = vrot.slane %v4859_v21, 5  ;;  %v4861_v54 = vld [vmem:[#allocation2 + $0x2c] sm:$0x1] }
  0xab   : > { %v5741_v39 = vcombine.low %v2231_v63, %v2241_v44  ;;  %v2716_v2 = vrot.slane %v4856_v45, 5  ;;  %v4857_v63 = vld [vmem:[#allocation2 + $0x18] sm:$0xf]  ;;  %v3993_v44 = vcombine.low %v2459_v28, %v2469_v13  ;;  %v4027_v48 = vcombine.low %v2696_v55, %v2699_v0  ;;  %v4862_v13 = vld [vmem:[#allocation2 + $0x30] sm:$0xf] }
  0xac   : > { %v4012_v43 = vrot.slane %v4857_v63, 9  ;;  %v2719_v23 = vrot.slane %v4861_v54, 5  ;;  %v4014_v45 = vrot.slane %v4862_v13, 9  ;;  %v2713_v20 = vsel %vm5080_vm11, %v2711_v12, %v2712_v37  ;;  %v4863_v55 = vld [vmem:[#allocation2 + $0x38] sm:$0x1] }
  0xad   : > { %6378 = vst [vmem:[#allocation32_spill] sm:$0xff] %v5741_v39  ;;  %4454 = vmatprep.mubr.msk.bf16.mxu0 %vm945_vm8, %v5741_v39  ;;  %v2718_v14 = vrot.slane %v2716_v2, 4  ;;  %v2725_v63 = vrot.slane %v2723_v36, 4  ;;  %v2726_v0 = vrot.slane %v4863_v55, 5  ;;  %v4864_v21 = vld [vmem:[#allocation2 + $0x40] sm:$0xf] }
  0xae   : > { %v2710_v28 = vsel %vm5080_vm11, %v4012_v43, %v2709_v22  ;;  %v2730_v39 = vrot.slane %v4864_v21, 5  ;;  %v4865_v1 = vld [vmem:[#allocation2 + $0x3c] sm:$0xf]  ;;  %v1541_v54 = vshrl.u32 %v5533_v5, 16  ;;  %v2717_v43 = vsel %vm5080_vm11, %v4013_v11, %v2716_v2 }
  0xaf   : > { %4303 = vmatmul.mubr.msk.bf16.gmra.mrb[12].mxu1 %vm945_vm8, %v5278_v17  ;;  %v4015_v8 = vrot.slane %v4865_v1, 9  ;;  %v1554_v12 = vshrl.u32 %v5535_v18, 16  ;;  %v3116_v37 = vsel %vm994_vm0, %v5399_v40, 0  ;;  %v5772_v13 = vcombine.low %v2710_v28, %v2713_v20  ;;  %v4866_v1 = vld [vmem:[#allocation2 + $0x44] sm:$0x1] }
  0xb0   : > { %4306 = vmatprep.mubr.msk.bf16.mxu1 %vm945_vm8, %v5288_v57  ;;  %v2727_v55 = vsel %vm5080_vm11, %v2725_v63, %v2726_v0  ;;  %v2732_v21 = vrot.slane %v2730_v39, 4  ;;  %v2733_v22 = vrot.slane %v4866_v1, 5  ;;  %v4021_v2 = vrot.slane %v5435_v49, 9  ;;  %v4868_v28 = vld [vmem:[#allocation2 + $0x4c] sm:$0xf] }
  0xb1   : > { %4455 = vmatmul.mubr.msk.bf16.gmra.mrb[28].mxu0 %vm945_vm8, %v3993_v44  ;;  %v2720_v44 = vsel %vm5080_vm11, %v2718_v14, %v2719_v23  ;;  %v5785_v40 = vsel %vm5080_vm11, %v4015_v8, %v2730_v39  ;;  %v4867_v14 = vld [vmem:[#allocation2 + $0x48] sm:$0xf]  ;;  %v2740_v49 = vrot.slane %v5260_v60, 5  ;;  %v2775_v20 = vrot.slane %v5610_v47, 5 }
  0xb2   : > { %4460 = vmatprep.mubr.msk.bf16.mxu0 %vm945_vm8, %v4027_v48  ;;  %v2724_v48 = vsel %vm5080_vm11, %v4014_v45, %v2723_v36  ;;  %v5781_v11 = vcombine.low %v2717_v43, %v2720_v44  ;;  %v4016_v23 = vrot.slane %v4867_v14, 9  ;;  %v2772_v36 = vrot.slane %v5437_v56, 5  ;;  %v5801_v56 = vld [vmem:[%s6282_s3 + $0x10] sm:$0x3] }
  0xb3   : > { %v2737_v45 = vrot.slane %v4868_v28, 5  ;;  %v4022_v63 = vrot.slane %v5454_v62, 9  ;;  %v5793_v0 = vcombine.low %v2724_v48, %v2727_v55  ;;  %v2779_v43 = vrot.slane %v5456_v7, 5 }
  0xb4   : > { %v2773_v8 = vsel %vm5080_vm11, %v4021_v2, %v2772_v36  ;;  %v2774_v39 = vrot.slane %v2772_v36, 4  ;;  %v2734_v60 = vsel %vm5080_vm11, %v2732_v21, %v2733_v22  ;;  %v2744_v62 = vrot.slane %v5267_v6, 5 }
  0xb5   : > { %v2782_v47 = vrot.slane %v5627_v53, 5  ;;  %v4023_v44 = vrot.slane %v5484_v41, 9  ;;  %v2738_v7 = vsel %vm5080_vm11, %v4016_v23, %v2737_v45  ;;  %v2780_v55 = vsel %vm5080_vm11, %v4022_v63, %v2779_v43 }
  0xb6   : > { %v2776_v48 = vsel %vm5080_vm11, %v2774_v39, %v2775_v20  ;;  %v2781_v22 = vrot.slane %v2779_v43, 4  ;;  %v2786_v53 = vrot.slane %v5486_v29, 5  ;;  %v2789_v41 = vrot.slane %v5654_v35, 5 }
  0xb7   : > { %4307 = vmatmul.mubr.msk.bf16.gmra.mrb[16].mxu1 %vm945_vm8, %v5356_v27  ;;  %v5818_v21 = vcombine.low %v2773_v8, %v2776_v48  ;;  %v2793_v2 = vrot.slane %v5505_v10, 5  ;;  %v2796_v14 = vrot.slane %v5672_v24, 5  ;;  %v4025_v23 = vrot.slane %v5517_v38, 9 }
  0xb8   : > { %4310 = vmatprep.mubr.msk.bf16.mxu1 %vm945_vm8, %v5375_v15  ;;  %v2783_v1 = vsel %vm5080_vm11, %v2781_v22, %v2782_v47  ;;  %v2787_v29 = vsel %vm5080_vm11, %v4023_v44, %v2786_v53  ;;  %v2788_v35 = vrot.slane %v2786_v53, 4  ;;  %v2739_v28 = vrot.slane %v2737_v45, 4 }
  0xb9   : > { %4461 = vmatmul.mubr.msk.bf16.vlgmr.msra.gmra.mrb[0].mxu0 %vm945_vm8, %v5130_v59  ;;  %v5830_v36 = vcombine.low %v2780_v55, %v2783_v1  ;;  %v2795_v10 = vrot.slane %v2793_v2, 4  ;;  %v2803_v24 = vrot.slane %v5704_v58, 5  ;;  %v1543_v8 = vrot.slane %v1541_v54, 4  ;;  %v4869_v1 = vld [vmem:[#allocation2 + $0x64] sm:$0xf] }
  0xba   : > { %4493 = vmatpush3.bf16.msra.mxu0 %v3116_v37  ;;  %4464 = vmatprep.mubr.msk.bf16.mxu0 %vm945_vm8, %v5772_v13  ;;  %v4024_v37 = vrot.slane %v5497_v32, 9  ;;  %v2800_v32 = vrot.slane %v5519_v52, 5  ;;  %v2790_v38 = vsel %vm5080_vm11, %v2788_v35, %v2789_v41  ;;  %v6379_v58 = vshll.u32 %v5533_v5, 16 }
  0xbb   : > { %4827 = vmatprep.subr.msk.bf16.mxu0 %vm994_vm0, %v5801_v56  ;;  %v5848_v45 = vcombine.low %v2787_v29, %v2790_v38  ;;  %v2797_v39 = vsel %vm5080_vm11, %v2795_v10, %v2796_v14  ;;  %v1550_v47 = vshll.u32 %v5535_v18, 16  ;;  %v1556_v54 = vrot.slane %v1554_v12, 4  ;;  %v4870_v12 = vld [vmem:[#allocation2 + $0x54] sm:$0xf] }
  0xbc   : > { %v2794_v20 = vsel %vm5080_vm11, %v4024_v37, %v2793_v2  ;;  %v2801_v63 = vsel %vm5080_vm11, %v4025_v23, %v2800_v32  ;;  %v2802_v52 = vrot.slane %v2800_v32, 4  ;;  %v1546_v43 = vrot.slane %v6379_v58, 5 }
  0xbd   : > { %v5857_v44 = vcombine.low %v2794_v20, %v2797_v39  ;;  %v1560_v55 = vshll.u32 %v5725_v26, 16  ;;  %v1552_v53 = vrot.slane %v1550_v47, 5  ;;  %v4059_v41 = vrot.slane %v5555_v4, 9 }
  0xbe   : > { %v2804_v48 = vsel %vm5080_vm11, %v2802_v52, %v2803_v24  ;;  %v1547_v22 = vor.u32 %v1546_v43, %v1543_v8  ;;  %v2741_v37 = vsel %vm5080_vm11, %v2739_v28, %v2740_v49  ;;  %v2751_v2 = vrot.slane %v4869_v1, 5  ;;  %v6380_v24 = vld [vmem:[#allocation10_spill] sm:$0xff]  ;;  %v6385_v1 = vld [vmem:[#allocation17_spill] sm:$0xff] }
  0xbf   : > { %4311 = vmatmul.mubr.msk.bf16.gmra.mrb[20].mxu1 %vm945_vm8, %v5450_v3  ;;  %v5866_v5 = vcombine.low %v2801_v63, %v2804_v48  ;;  %v3102_v14 = vrot.slane %v5557_v31, 5  ;;  %v3105_v18 = vrot.slane %v5719_v19, 5  ;;  %v4017_v26 = vrot.slane %v4870_v12, 9  ;;  %v6381_v43 = vld [vmem:[#allocation14_spill] sm:$0xff] }
  0xc0   : > { %4314 = vmatprep.mubr.msk.bf16.mxu1 %vm945_vm8, %v5467_v46  ;;  %v1548_v23 = vrot.slane %v1547_v22, 4  ;;  %v1557_v29 = vor.u32 %v1556_v54, %v1552_v53  ;;  %v1562_v35 = vrot.slane %v1560_v55, 5  ;;  %v5874_v32 = vcombine.low %v5785_v40, %v2734_v60  ;;  %v6382_v54 = vld [vmem:[#allocation16_spill] sm:$0xff] }
  0xc1   : > { %4465 = vmatmul.mubr.msk.bf16.gmra.mrb[4].mxu0 %vm945_vm8, %v5781_v11  ;;  %v2747_v20 = vrot.slane %v5300_v50, 5  ;;  %v3103_v4 = vsel %vm5080_vm11, %v4059_v41, %v3102_v14  ;;  %v3104_v49 = vrot.slane %v3102_v14, 4  ;;  %v5881_v31 = vcombine.low %v2738_v7, %v2741_v37  ;;  %v4871_v50 = vld [vmem:[#allocation2 + $0x60] sm:$0xf] }
  0xc2   : > { %4468 = vmatprep.mubr.msk.bf16.mxu0 %vm945_vm8, %v5793_v0  ;;  %v2746_v19 = vrot.slane %v2744_v62, 4  ;;  %v1553_v28 = vsel %vm5138_vm12, %v1548_v23, %v1552_v53  ;;  %v1558_v10 = vrot.slane %v1557_v29, 4  ;;  %v4018_v40 = vrot.slane %v4871_v50, 9  ;;  %v6383_v53 = vld [vmem:[#allocation18_spill] sm:$0xff]  ;;  %v6401_v50 = vld [vmem:[#allocation19_spill] sm:$0xff] }
  0xc3   : > { %v2753_v60 = vrot.slane %v2751_v2, 4  ;;  %v2754_v38 = vrot.slane %v6380_v24, 5  ;;  %v3106_v63 = vsel %vm5080_vm11, %v3104_v49, %v3105_v18  ;;  %v2745_v39 = vsel %vm5080_vm11, %v4017_v26, %v2744_v62  ;;  %v6384_v62 = vld [vmem:[#allocation13_spill] sm:$0xff]  ;;  %v6387_v26 = vld [vmem:[#allocation20_spill] sm:$0xff] }
  0xc4   : > { %v1563_v7 = vsel %vm5138_vm12, %v1558_v10, %v1562_v35  ;;  %v5894_v52 = vcombine.low %v3103_v4, %v3106_v63  ;;  %v2748_v58 = vsel %vm5080_vm11, %v2746_v19, %v2747_v20  ;;  %v2758_v61 = vrot.slane %v6381_v43, 5  ;;  %v6388_v4 = vld [vmem:[#allocation23_spill] sm:$0xff]  ;;  %v4872_v10 = vld [vmem:[%s6282_s3 + $0x8] sm:$0x3] }
  0xc5   : > { %v3942_v8 = vcombine.low %v1553_v28, %v1563_v7  ;;  %v2752_v47 = vsel %vm5080_vm11, %v4018_v40, %v2751_v2  ;;  %v2755_v48 = vsel %vm5080_vm11, %v2753_v60, %v2754_v38  ;;  %v2765_v55 = vrot.slane %v6382_v54, 5  ;;  %v6386_v2 = vld [vmem:[#allocation15_spill] sm:$0xff]  ;;  %v6402_v40 = vld [vmem:[#allocation22_spill] sm:$0xff]  ;;  %v6403_v60 = vld [vmem:[#allocation24_spill] sm:$0xff] }
  0xc6   : > { %v5912_v22 = vcombine.low %v2745_v39, %v2748_v58  ;;  %v5916_v6 = vcombine.low %v2752_v47, %v2755_v48  ;;  %v4019_v41 = vrot.slane %v6384_v62, 9  ;;  %v2760_v37 = vrot.slane %v2758_v61, 4  ;;  %v6404_v24 = vld [vmem:[#allocation25_spill] sm:$0xff]  ;;  %v6406_v38 = vld [vmem:[#allocation30_spill] sm:$0xff]  ;;  %v6409_v7 = vld [vmem:[#allocation32_spill] sm:$0xff] }
  0xc7   : > { %4315 = vmatmul.mubr.msk.bf16.gmra.mrb[24].mxu1 %vm945_vm8, %v5495_v30  ;;  %v2761_v14 = vrot.slane %v6385_v1, 5  ;;  %v4020_v18 = vrot.slane %v6386_v2, 9  ;;  %v2767_v12 = vrot.slane %v2765_v55, 4  ;;  %v2768_v23 = vrot.slane %v6387_v26, 5 }
  0xc8   : > { %4318 = vmatprep.mubr.msk.bf16.mxu1 %vm945_vm8, %v5513_v34  ;;  %v2759_v29 = vsel %vm5080_vm11, %v4019_v41, %v2758_v61  ;;  %v2023_v49 = vsel %vm994_vm0, %v6388_v4, 0 }
  0xc9   : > { %4469 = vmatmul.mubr.msk.bf16.gmra.mrb[8].mxu0 %vm945_vm8, %v5874_v32  ;;  %v2762_v35 = vsel %vm5080_vm11, %v2760_v37, %v2761_v14  ;;  %v2769_v20 = vsel %vm5080_vm11, %v2767_v12, %v2768_v23 }
  0xca   : > { %4472 = vmatprep.mubr.msk.bf16.mxu0 %vm945_vm8, %v5881_v31  ;;  %v5938_v19 = vcombine.low %v2759_v29, %v2762_v35 }
  0xcf   : > { %4319 = vmatmul.mubr.msk.bf16.gmra.mrb[28].mxu1 %vm945_vm8, %v6383_v53 }
  0xd0   : > { %4324 = vmatprep.mubr.msk.bf16.mxu1 %vm945_vm8, %v5088_v25  ;;  %v2766_v25 = vsel %vm5080_vm11, %v4020_v18, %v2765_v55 }
  0xd1   : > { %4473 = vmatmul.mubr.msk.bf16.gmra.mrb[12].mxu0 %vm945_vm8, %v5912_v22  ;;  %v5942_v28 = vcombine.low %v2766_v25, %v2769_v20 }
  0xd2   : > { %4476 = vmatprep.mubr.msk.bf16.mxu0 %vm945_vm8, %v5916_v6 }
  0xd7   : > { %4325 = vmatmul.mubr.msk.bf16.vlgmr.msra.gmra.mrb[0].mxu1 %vm945_vm8, %v5098_v33  ;;  %v3328_v33 = vsel %vm994_vm0, %v5801_v56, 0  ;;  %v6400_v56 = vld [vmem:[#allocation12_spill] sm:$0xff] }
  0xd8   : > { %4328 = vmatprep.mubr.msk.bf16.mxu1 %vm945_vm8, %v5119_v42  ;;  %4357 = vmatpush3.bf16.msra.mxu1 %v2023_v49  ;;  %v6389_v42 = vld [vmem:[#allocation21_spill] sm:$0xff] }
  0xd9   : > { %4823 = vmatprep.subr.msk.bf16.mxu1 %vm994_vm0, %v4872_v10  ;;  %4477 = vmatmul.mubr.msk.bf16.gmra.mrb[16].mxu0 %vm945_vm8, %v5938_v19 }
  0xda   : > { %4480 = vmatprep.mubr.msk.bf16.mxu0 %vm945_vm8, %v5942_v28 }
  0xdf   : > { %4329 = vmatmul.mubr.msk.bf16.gmra.mrb[4].mxu1 %vm945_vm8, %v5144_v9  ;;  %v6391_v9 = vld [vmem:[#allocation26_spill] sm:$0xff] }
  0xe0   : > { %4332 = vmatprep.mubr.msk.bf16.mxu1 %vm945_vm8, %v5211_v51 }
  0xe1   : > { %4481 = vmatmul.mubr.msk.bf16.gmra.mrb[20].mxu0 %vm945_vm8, %v5818_v21 }
  0xe2   : > { %4484 = vmatprep.mubr.msk.bf16.mxu0 %vm945_vm8, %v5830_v36 }
  0xe7   : > { %4333 = vmatmul.mubr.msk.bf16.gmra.mrb[8].mxu1 %vm945_vm8, %v5278_v17  ;;  %v6392_v17 = vld [vmem:[#allocation4_spill] sm:$0xff] }
  0xe8   : > { %4336 = vmatprep.mubr.msk.bf16.mxu1 %vm945_vm8, %v5288_v57  ;;  %v6393_v57 = vld [vmem:[#allocation5_spill] sm:$0xff] }
  0xe9   : > { %4485 = vmatmul.mubr.msk.bf16.gmra.mrb[24].mxu0 %vm945_vm8, %v5848_v45 }
  0xea   : > { %4488 = vmatprep.mubr.msk.bf16.mxu0 %vm945_vm8, %v5857_v44 }
  0xef   : > { %4337 = vmatmul.mubr.msk.bf16.gmra.mrb[12].mxu1 %vm945_vm8, %v5356_v27  ;;  %v6394_v27 = vld [vmem:[#allocation3_spill] sm:$0xff] }
  0xf0   : > { %4340 = vmatprep.mubr.msk.bf16.mxu1 %vm945_vm8, %v5375_v15  ;;  %v6395_v15 = vld [vmem:[#allocation6_spill] sm:$0xff] }
  0xf1   : > { %4489 = vmatmul.mubr.msk.bf16.gmra.mrb[28].mxu0 %vm945_vm8, %v5866_v5 }
  0xf2   : > { %4494 = vmatprep.mubr.msk.bf16.mxu0 %vm945_vm8, %v5130_v59  ;;  %v6390_v59 = vld [vmem:[#allocation27_spill] sm:$0xff] }
  0xf3   : > { %v3924_v51 = vcombine.low %v6391_v9, %v6390_v59 }
  0xf7   : > { %4341 = vmatmul.mubr.msk.bf16.gmra.mrb[16].mxu1 %vm945_vm8, %v5450_v3  ;;  %v6396_v3 = vld [vmem:[#allocation7_spill] sm:$0xff] }
  0xf8   : > { %4344 = vmatprep.mubr.msk.bf16.mxu1 %vm945_vm8, %v5467_v46  ;;  %v6397_v46 = vld [vmem:[#allocation8_spill] sm:$0xff] }
  0xf9   : > { %4495 = vmatmul.mubr.msk.bf16.vlgmr.msra.gmra.mrb[0].mxu0 %vm945_vm8, %v5772_v13 }
  0xfa   : > { %4527 = vmatpush3.bf16.msra.mxu0 %v3328_v33  ;;  %4498 = vmatprep.mubr.msk.bf16.mxu0 %vm945_vm8, %v5781_v11 }
  0xff   : > { %4345 = vmatmul.mubr.msk.bf16.gmra.mrb[20].mxu1 %vm945_vm8, %v5495_v30  ;;  %v6398_v30 = vld [vmem:[#allocation9_spill] sm:$0xff] }
 0x100   : > { %4348 = vmatprep.mubr.msk.bf16.mxu1 %vm945_vm8, %v5513_v34  ;;  %v6399_v34 = vld [vmem:[#allocation11_spill] sm:$0xff] }
 0x101   : > { %4499 = vmatmul.mubr.msk.bf16.gmra.mrb[4].mxu0 %vm945_vm8, %v5793_v0 }
 0x102   : > { %4502 = vmatprep.mubr.msk.bf16.mxu0 %vm945_vm8, %v5874_v32 }
 0x107   : > { %4349 = vmatmul.mubr.msk.bf16.gmra.mrb[24].mxu1 %vm945_vm8, %v6383_v53 }
 0x108   : > { %4352 = vmatprep.mubr.msk.bf16.mxu1 %vm945_vm8, %v6389_v42 }
 0x109   : > { %4503 = vmatmul.mubr.msk.bf16.gmra.mrb[8].mxu0 %vm945_vm8, %v5881_v31 }
 0x10a   : > { %4506 = vmatprep.mubr.msk.bf16.mxu0 %vm945_vm8, %v5912_v22 }
 0x10f   : > { %4353 = vmatmul.mubr.msk.bf16.gmra.mrb[28].mxu1 %vm945_vm8, %v3924_v51 }
 0x110   : > { %4358 = vmatprep.mubr.msk.bf16.mxu1 %vm945_vm8, %v3942_v8 }
 0x111   : > { %4507 = vmatmul.mubr.msk.bf16.gmra.mrb[12].mxu0 %vm945_vm8, %v5916_v6 }
 0x112   : > { %4510 = vmatprep.mubr.msk.bf16.mxu0 %vm945_vm8, %v5938_v19 }
 0x117   : > { %4359 = vmatmul.mubr.msk.bf16.vlgmr.msra.gmra.mrb[0].mxu1 %vm945_vm8, %v6392_v17 }
 0x118   : > { %4362 = vmatprep.mubr.msk.bf16.mxu1 %vm945_vm8, %v6393_v57  ;;  %4561 = vmatpush3.bf16.msra.mxu1 %v6394_v27 }
 0x119   : > { %4511 = vmatmul.mubr.msk.bf16.gmra.mrb[16].mxu0 %vm945_vm8, %v5942_v28 }
 0x11a   : > { %4514 = vmatprep.mubr.msk.bf16.mxu0 %vm945_vm8, %v5818_v21 }
 0x11f   : > { %4363 = vmatmul.mubr.msk.bf16.gmra.mrb[4].mxu1 %vm945_vm8, %v6395_v15 }
 0x120   : > { %4366 = vmatprep.mubr.msk.bf16.mxu1 %vm945_vm8, %v6396_v3 }
 0x121   : > { %4515 = vmatmul.mubr.msk.bf16.gmra.mrb[20].mxu0 %vm945_vm8, %v5830_v36 }
 0x122   : > { %4518 = vmatprep.mubr.msk.bf16.mxu0 %vm945_vm8, %v5848_v45 }
 0x127   : > { %4367 = vmatmul.mubr.msk.bf16.gmra.mrb[8].mxu1 %vm945_vm8, %v6397_v46 }
 0x128   : > { %4370 = vmatprep.mubr.msk.bf16.mxu1 %vm945_vm8, %v6398_v30 }
 0x129   : > { %4519 = vmatmul.mubr.msk.bf16.gmra.mrb[24].mxu0 %vm945_vm8, %v5857_v44 }
 0x12a   : > { %4522 = vmatprep.mubr.msk.bf16.mxu0 %vm945_vm8, %v5866_v5 }
 0x12f   : > { %4371 = vmatmul.mubr.msk.bf16.gmra.mrb[12].mxu1 %vm945_vm8, %v6399_v34 }
 0x130   : > { %4374 = vmatprep.mubr.msk.bf16.mxu1 %vm945_vm8, %v6400_v56 }
 0x131   : > { %4523 = vmatmul.mubr.msk.bf16.gmra.mrb[28].mxu0 %vm945_vm8, %v5894_v52 }
 0x132   : > { %4528 = vmatprep.mubr.msk.bf16.mxu0 %vm945_vm8, %v5772_v13  ;;  %v6405_v13 = vld [vmem:[#allocation28_spill] sm:$0xff] }
 0x137   : > { %4375 = vmatmul.mubr.msk.bf16.gmra.mrb[16].mxu1 %vm945_vm8, %v6401_v50 }
 0x138   : > { %4378 = vmatprep.mubr.msk.bf16.mxu1 %vm945_vm8, %v6402_v40 }
 0x139   : > { %4529 = vmatmul.mubr.msk.bf16.vlgmr.msra.gmra.mrb[0].mxu0 %vm945_vm8, %v5781_v11  ;;  %v6407_v11 = vld [vmem:[#allocation31_spill] sm:$0xff] }
 0x13a   : > { %4532 = vmatprep.mubr.msk.bf16.mxu0 %vm945_vm8, %v5793_v0  ;;  %v3314_v0 = vrot.slane %v6390_v59, 5 }
 0x13f   : > { %4379 = vmatmul.mubr.msk.bf16.gmra.mrb[20].mxu1 %vm945_vm8, %v6403_v60 }
 0x140   : > { %4382 = vmatprep.mubr.msk.bf16.mxu1 %vm945_vm8, %v6404_v24 }
 0x141   : > { %4533 = vmatmul.mubr.msk.bf16.gmra.mrb[4].mxu0 %vm945_vm8, %v5874_v32  ;;  %v6408_v32 = vld [vmem:[#allocation29_spill] sm:$0xff] }
 0x142   : > { %4536 = vmatprep.mubr.msk.bf16.mxu0 %vm945_vm8, %v5881_v31  ;;  %v3317_v31 = vrot.slane %v6408_v32, 5 }
 0x147   : > { %4383 = vmatmul.mubr.msk.bf16.gmra.mrb[24].mxu1 %vm945_vm8, %v6405_v13 }
 0x148   : > { %4386 = vmatprep.mubr.msk.bf16.mxu1 %vm945_vm8, %v6406_v38 }
 0x149   : > { %4537 = vmatmul.mubr.msk.bf16.gmra.mrb[8].mxu0 %vm945_vm8, %v5912_v22 }
 0x14a   : > { %4540 = vmatprep.mubr.msk.bf16.mxu0 %vm945_vm8, %v5916_v6 }
 0x14f   : > { %4387 = vmatmul.mubr.msk.bf16.gmra.mrb[28].mxu1 %vm945_vm8, %v6407_v11 }
 0x150   : > { %4408 = vmatprep.mubr.msk.bf16.mxu1 %vm945_vm8, %v6401_v50 }
 0x151   : > { %4541 = vmatmul.mubr.msk.bf16.gmra.mrb[12].mxu0 %vm945_vm8, %v5938_v19 }
 0x152   : > { %4544 = vmatprep.mubr.msk.bf16.mxu0 %vm945_vm8, %v5942_v28 }
 0x157   : > { %4409 = vmatmul.mubr.msk.bf16.vlgmr.msra.gmra.mrb[16].mxu1 %vm945_vm8, %v6402_v40 }
 0x158   : > { %4412 = vmatprep.mubr.msk.bf16.mxu1 %vm945_vm8, %v6403_v60 }
 0x159   : > { %4545 = vmatmul.mubr.msk.bf16.gmra.mrb[16].mxu0 %vm945_vm8, %v5818_v21  ;;  %v4078_v21 = vrot.slane %v6391_v9, 9 }
 0x15a   : > { %4548 = vmatprep.mubr.msk.bf16.mxu0 %vm945_vm8, %v5830_v36  ;;  %v3316_v36 = vrot.slane %v3314_v0, 4 }
 0x15f   : > { %4413 = vmatmul.mubr.msk.bf16.gmra.mrb[20].mxu1 %vm945_vm8, %v6404_v24 }
 0x160   : > { %4416 = vmatprep.mubr.msk.bf16.mxu1 %vm945_vm8, %v6405_v13 }
 0x161   : > { %4549 = vmatmul.mubr.msk.bf16.gmra.mrb[20].mxu0 %vm945_vm8, %v5848_v45  ;;  %v3315_v45 = vsel %vm5080_vm11, %v4078_v21, %v3314_v0 }
 0x162   : > { %4552 = vmatprep.mubr.msk.bf16.mxu0 %vm945_vm8, %v5857_v44  ;;  %v3318_v44 = vsel %vm5080_vm11, %v3316_v36, %v3317_v31 }
 0x163   : > { %v4080_v63 = vcombine.low %v3315_v45, %v3318_v44 }
 0x167   : > { %4417 = vmatmul.mubr.msk.bf16.gmra.mrb[24].mxu1 %vm945_vm8, %v6406_v38 }
 0x168   : > { %4420 = vmatprep.mubr.msk.bf16.mxu1 %vm945_vm8, %v6407_v11 }
 0x169   : > { %4553 = vmatmul.mubr.msk.bf16.gmra.mrb[24].mxu0 %vm945_vm8, %v5866_v5 }
 0x16a   : > { %4556 = vmatprep.mubr.msk.bf16.mxu0 %vm945_vm8, %v5894_v52 }
 0x16f   : > { %4421 = vmatmul.mubr.msk.bf16.gmra.mrb[28].mxu1 %vm945_vm8, %v6409_v7 }
 0x171   : > { %4557 = vmatmul.mubr.msk.bf16.gmra.mrb[28].mxu0 %vm945_vm8, %v4080_v63 }
 0x1ea   : > { %v4360_v8 = vpop.f32.mrb[0].mxu1 }
 0x1eb   : > { %v2059_v39 = vpop.f32.mrb[1].mxu1 }
 0x1ec   : > { %v4361_v58 = vpop.f32.mrb[2].mxu1 }
 0x1ed   : > { %v2062_v5 = vpop.f32.mrb[3].mxu1 }
 0x1f2   : > { %v4364_v43 = vpop.f32.mrb[4].mxu1 }
 0x1f3   : > { %v2075_v61 = vpop.f32.mrb[5].mxu1 }
 0x1f4   : > { %v4365_v52 = vpop.f32.mrb[6].mxu1 }
 0x1f5   : > { %v2078_v47 = vpop.f32.mrb[7].mxu1 }
 0x1fa   : > { %v6111_v48 = vpop.f32.mrb[8].mxu1 }
 0x1fb   : > { %v6113_v54 = vpop.f32.mrb[9].mxu1 }
 0x1fc   : > { %v6115_v16 = vpop.f32.mrb[10].mxu1 }
 0x1fd   : > { %v6117_v55 = vpop.f32.mrb[11].mxu1 }
 0x202   : > { %v6119_v22 = vpop.f32.mrb[12].mxu1 }
 0x203   : > { %v6121_v53 = vpop.f32.mrb[13].mxu1 }
 0x204   : > { %v6123_v6 = vpop.f32.mrb[14].mxu1 }
 0x205   : > { %v6125_v62 = vpop.f32.mrb[15].mxu1 }
 0x20c   : > { %v4530_v41 = vpop.f32.mrb[0].mxu0 }
 0x20d   : > { %v4562_v37 = vadd.f32 %v4530_v41, %v4360_v8  ;;  %v3364_v1 = vpop.f32.mrb[1].mxu0 }
 0x20e   : > { %v4563_v14 = vadd.f32 %v3364_v1, %v2059_v39  ;;  %v4531_v2 = vpop.f32.mrb[2].mxu0 }
 0x20f   : > { %3525 = vst.msk [vmem:[%s6132_s28 + $0x10] sm:$0xff] %vm945_vm8, %v4562_v37  ;;  %v4564_v18 = vadd.f32 %v4531_v2, %v4361_v58  ;;  %v3367_v12 = vpop.f32.mrb[3].mxu0  ;;  %v3627_v29 = vmul.f32 %v4562_v37, %v4562_v37  ;;  %v3558_v19 = vsel %vm945_vm8, %v4562_v37, 0.0 }
 0x210   : > { %3523 = vst.msk [vmem:[%s6132_s28] sm:$0xff] %vm945_vm8, %v4563_v14  ;;  %v3625_v26 = vmul.f32 %v4563_v14, %v4563_v14  ;;  %v4565_v23 = vadd.f32 %v3367_v12, %v2062_v5  ;;  %v3555_v35 = vsel %vm945_vm8, %v4563_v14, 0.0 }
 0x211   : > { %3526 = vst.msk [vmem:[%s6132_s28 + $0x18] sm:$0xff] %vm945_vm8, %v4564_v18  ;;  %v3628_v4 = vmul.f32 %v4564_v18, %v4564_v18  ;;  %v3660_v17 = vsel %vm945_vm8, %v3627_v29, 0.0  ;;  %v3560_v57 = vsel %vm945_vm8, %v4564_v18, 0.0 }
 0x212   : > { %3524 = vst.msk [vmem:[%s6132_s28 + $0x8] sm:$0xff] %vm945_vm8, %v4565_v23  ;;  %v3556_v25 = vsel %vm945_vm8, %v4565_v23, 0.0  ;;  %v3626_v20 = vmul.f32 %v4565_v23, %v4565_v23  ;;  %v3657_v28 = vsel %vm945_vm8, %v3625_v26, 0.0 }
 0x213   : > { %v3557_v49 = vadd.f32 %v3556_v25, %v3555_v35  ;;  %v3662_v3 = vsel %vm945_vm8, %v3628_v4, 0.0 }
 0x214   : > { %v3658_v10 = vsel %vm945_vm8, %v3626_v20, 0.0  ;;  %v4534_v33 = vpop.f32.mrb[4].mxu0 }
 0x215   : > { %v3559_v42 = vadd.f32 %v3558_v19, %v3557_v49  ;;  %v3659_v59 = vadd.f32 %v3658_v10, %v3657_v28  ;;  %v4566_v9 = vadd.f32 %v4534_v33, %v4364_v43  ;;  %v3380_v51 = vpop.f32.mrb[5].mxu0 }
 0x216   : > { %v4567_v27 = vadd.f32 %v3380_v51, %v2075_v61  ;;  %v4535_v15 = vpop.f32.mrb[6].mxu0 }
 0x217   : > { %v3661_v46 = vadd.f32 %v3660_v17, %v3659_v59  ;;  %3529 = vst.msk [vmem:[%s6132_s28 + $0x30] sm:$0xff] %vm945_vm8, %v4566_v9  ;;  %v3561_v30 = vadd.f32 %v3560_v57, %v3559_v42  ;;  %v3383_v34 = vpop.f32.mrb[7].mxu0  ;;  %v4568_v40 = vadd.f32 %v4535_v15, %v4365_v52  ;;  %v3631_v0 = vmul.f32 %v4566_v9, %v4566_v9 }
 0x218   : > { %3527 = vst.msk [vmem:[%s6132_s28 + $0x20] sm:$0xff] %vm945_vm8, %v4567_v27  ;;  %v3562_v56 = vsel %vm945_vm8, %v4567_v27, 0.0  ;;  %v3629_v50 = vmul.f32 %v4567_v27, %v4567_v27  ;;  %v4569_v60 = vadd.f32 %v3383_v34, %v2078_v47  ;;  %v3566_v31 = vsel %vm945_vm8, %v4566_v9, 0.0 }
 0x219   : > { %v3563_v24 = vadd.f32 %v3562_v56, %v3561_v30  ;;  %v3663_v13 = vadd.f32 %v3662_v3, %v3661_v46  ;;  %3530 = vst.msk [vmem:[%s6132_s28 + $0x38] sm:$0xff] %vm945_vm8, %v4568_v40  ;;  %v3632_v44 = vmul.f32 %v4568_v40, %v4568_v40  ;;  %v3568_v58 = vsel %vm945_vm8, %v4568_v40, 0.0 }
 0x21a   : > { %v3664_v38 = vsel %vm945_vm8, %v3629_v50, 0.0  ;;  %3528 = vst.msk [vmem:[%s6132_s28 + $0x28] sm:$0xff] %vm945_vm8, %v4569_v60  ;;  %v3564_v11 = vsel %vm945_vm8, %v4569_v60, 0.0  ;;  %v3630_v32 = vmul.f32 %v4569_v60, %v4569_v60  ;;  %v3668_v52 = vsel %vm945_vm8, %v3631_v0, 0.0 }
 0x21b   : > { %v3665_v21 = vadd.f32 %v3664_v38, %v3663_v13  ;;  %v3565_v36 = vadd.f32 %v3564_v11, %v3563_v24 }
 0x21c   : > { %v4538_v45 = vpop.f32.mrb[8].mxu0  ;;  %v3666_v7 = vsel %vm945_vm8, %v3630_v32, 0.0 }
 0x21d   : > { %v3567_v63 = vadd.f32 %v3566_v31, %v3565_v36  ;;  %v4570_v8 = vadd.f32 %v4538_v45, %v6111_v48  ;;  %v3396_v39 = vpop.f32.mrb[9].mxu0  ;;  %v3667_v5 = vadd.f32 %v3666_v7, %v3665_v21 }
 0x21e   : > { %v4571_v43 = vadd.f32 %v3396_v39, %v6113_v54  ;;  %v4539_v61 = vpop.f32.mrb[10].mxu0  ;;  %v3670_v54 = vsel %vm945_vm8, %v3632_v44, 0.0 }
 0x21f   : > { %3533 = vst.msk [vmem:[%s6132_s28 + $0x50] sm:$0xff] %vm945_vm8, %v4570_v8  ;;  %v3569_v47 = vadd.f32 %v3568_v58, %v3567_v63  ;;  %v4572_v41 = vadd.f32 %v4539_v61, %v6115_v16  ;;  %v3399_v37 = vpop.f32.mrb[11].mxu0  ;;  %v3669_v1 = vadd.f32 %v3668_v52, %v3667_v5  ;;  %v3635_v29 = vmul.f32 %v4570_v8, %v4570_v8 }
 0x220   : > { %3531 = vst.msk [vmem:[%s6132_s28 + $0x40] sm:$0xff] %vm945_vm8, %v4571_v43  ;;  %v3570_v48 = vsel %vm945_vm8, %v4571_v43, 0.0  ;;  %v3633_v14 = vmul.f32 %v4571_v43, %v4571_v43  ;;  %v4573_v2 = vadd.f32 %v3399_v37, %v6117_v55  ;;  %v3574_v25 = vsel %vm945_vm8, %v4570_v8, 0.0 }
 0x221   : > { %v3571_v18 = vadd.f32 %v3570_v48, %v3569_v47  ;;  %3534 = vst.msk [vmem:[%s6132_s28 + $0x58] sm:$0xff] %vm945_vm8, %v4572_v41  ;;  %v3671_v12 = vadd.f32 %v3670_v54, %v3669_v1  ;;  %v3636_v49 = vmul.f32 %v4572_v41, %v4572_v41  ;;  %v3576_v33 = vsel %vm945_vm8, %v4572_v41, 0.0 }
 0x222   : > { %v3672_v26 = vsel %vm945_vm8, %v3633_v14, 0.0  ;;  %3532 = vst.msk [vmem:[%s6132_s28 + $0x48] sm:$0xff] %vm945_vm8, %v4573_v2  ;;  %v3572_v16 = vsel %vm945_vm8, %v4573_v2, 0.0  ;;  %v3634_v23 = vmul.f32 %v4573_v2, %v4573_v2  ;;  %v3676_v51 = vsel %vm945_vm8, %v3635_v29, 0.0 }
 0x223   : > { %v3573_v35 = vadd.f32 %v3572_v16, %v3571_v18  ;;  %v3673_v20 = vadd.f32 %v3672_v26, %v3671_v12 }
 0x224   : > { %v3674_v55 = vsel %vm945_vm8, %v3634_v23, 0.0  ;;  %v4542_v4 = vpop.f32.mrb[12].mxu0 }
 0x225   : > { %v3575_v19 = vadd.f32 %v3574_v25, %v3573_v35  ;;  %v4574_v28 = vadd.f32 %v4542_v4, %v6119_v22  ;;  %v3412_v10 = vpop.f32.mrb[13].mxu0  ;;  %v3675_v42 = vadd.f32 %v3674_v55, %v3673_v20 }
 0x226   : > { %v4575_v59 = vadd.f32 %v3412_v10, %v6121_v53  ;;  %v4543_v9 = vpop.f32.mrb[14].mxu0  ;;  %v3678_v53 = vsel %vm945_vm8, %v3636_v49, 0.0 }
 0x227   : > { %3537 = vst.msk [vmem:[%s6132_s28 + $0x70] sm:$0xff] %vm945_vm8, %v4574_v28  ;;  %v3577_v17 = vadd.f32 %v3576_v33, %v3575_v19  ;;  %v4576_v57 = vadd.f32 %v4543_v9, %v6123_v6  ;;  %v3415_v27 = vpop.f32.mrb[15].mxu0  ;;  %v3677_v15 = vadd.f32 %v3676_v51, %v3675_v42  ;;  %v3639_v24 = vmul.f32 %v4574_v28, %v4574_v28 }
 0x228   : > { %3535 = vst.msk [vmem:[%s6132_s28 + $0x60] sm:$0xff] %vm945_vm8, %v4575_v59  ;;  %v3578_v22 = vsel %vm945_vm8, %v4575_v59, 0.0  ;;  %v3637_v3 = vmul.f32 %v4575_v59, %v4575_v59  ;;  %v4577_v46 = vadd.f32 %v3415_v27, %v6125_v62  ;;  %v3582_v62 = vsel %vm945_vm8, %v4574_v28, 0.0 }
 0x229   : > { %v3579_v34 = vadd.f32 %v3578_v22, %v3577_v17  ;;  %3538 = vst.msk [vmem:[%s6132_s28 + $0x78] sm:$0xff] %vm945_vm8, %v4576_v57  ;;  %v3679_v50 = vadd.f32 %v3678_v53, %v3677_v15  ;;  %v3640_v32 = vmul.f32 %v4576_v57, %v4576_v57  ;;  %v3584_v63 = vsel %vm945_vm8, %v4576_v57, 0.0 }
 0x22a   : > { %v4410_v30 = vpop.f32.mrb[16].mxu1  ;;  %v3680_v40 = vsel %vm945_vm8, %v3637_v3, 0.0  ;;  %3536 = vst.msk [vmem:[%s6132_s28 + $0x68] sm:$0xff] %vm945_vm8, %v4577_v46  ;;  %v3580_v6 = vsel %vm945_vm8, %v4577_v46, 0.0  ;;  %v3638_v60 = vmul.f32 %v4577_v46, %v4577_v46  ;;  %v3684_v58 = vsel %vm945_vm8, %v3639_v24, 0.0 }
 0x22b   : > { %v2351_v56 = vpop.f32.mrb[17].mxu1  ;;  %v3581_v38 = vadd.f32 %v3580_v6, %v3579_v34  ;;  %v3681_v11 = vadd.f32 %v3680_v40, %v3679_v50  ;;  %v3686_v1 = vsel %vm945_vm8, %v3640_v32, 0.0 }
 0x22c   : > { %v4411_v13 = vpop.f32.mrb[18].mxu1  ;;  %v3682_v21 = vsel %vm945_vm8, %v3638_v60, 0.0  ;;  %v4546_v36 = vpop.f32.mrb[16].mxu0 }
 0x22d   : > { %v2354_v0 = vpop.f32.mrb[19].mxu1  ;;  %v3583_v31 = vadd.f32 %v3582_v62, %v3581_v38  ;;  %v4578_v45 = vadd.f32 %v4546_v36, %v4410_v30  ;;  %v3428_v44 = vpop.f32.mrb[17].mxu0  ;;  %v3683_v7 = vadd.f32 %v3682_v21, %v3681_v11 }
 0x22e   : > { %v4579_v8 = vadd.f32 %v3428_v44, %v2351_v56  ;;  %v4547_v39 = vpop.f32.mrb[18].mxu0 }
 0x22f   : > { %3541 = vst.msk [vmem:[%s6132_s28 + $0x90] sm:$0xff] %vm945_vm8, %v4578_v45  ;;  %v3585_v5 = vadd.f32 %v3584_v63, %v3583_v31  ;;  %v4580_v43 = vadd.f32 %v4547_v39, %v4411_v13  ;;  %v3431_v61 = vpop.f32.mrb[19].mxu0  ;;  %v3685_v52 = vadd.f32 %v3684_v58, %v3683_v7  ;;  %v3643_v16 = vmul.f32 %v4578_v45, %v4578_v45 }
 0x230   : > { %3539 = vst.msk [vmem:[%s6132_s28 + $0x80] sm:$0xff] %vm945_vm8, %v4579_v8  ;;  %v3586_v47 = vsel %vm945_vm8, %v4579_v8, 0.0  ;;  %v3641_v41 = vmul.f32 %v4579_v8, %v4579_v8  ;;  %v4581_v37 = vadd.f32 %v3431_v61, %v2354_v0  ;;  %v3590_v35 = vsel %vm945_vm8, %v4578_v45, 0.0 }
 0x231   : > { %v3587_v14 = vadd.f32 %v3586_v47, %v3585_v5  ;;  %3542 = vst.msk [vmem:[%s6132_s28 + $0x98] sm:$0xff] %vm945_vm8, %v4580_v43  ;;  %v3687_v54 = vadd.f32 %v3686_v1, %v3685_v52  ;;  %v3644_v49 = vmul.f32 %v4580_v43, %v4580_v43  ;;  %v3592_v33 = vsel %vm945_vm8, %v4580_v43, 0.0 }
 0x232   : > { %v4414_v48 = vpop.f32.mrb[20].mxu1  ;;  %v3688_v18 = vsel %vm945_vm8, %v3641_v41, 0.0  ;;  %3540 = vst.msk [vmem:[%s6132_s28 + $0x88] sm:$0xff] %vm945_vm8, %v4581_v37  ;;  %v3588_v12 = vsel %vm945_vm8, %v4581_v37, 0.0  ;;  %v3642_v26 = vmul.f32 %v4581_v37, %v4581_v37  ;;  %v3692_v51 = vsel %vm945_vm8, %v3643_v16, 0.0 }
 0x233   : > { %v2367_v2 = vpop.f32.mrb[21].mxu1  ;;  %v3589_v29 = vadd.f32 %v3588_v12, %v3587_v14  ;;  %v3689_v25 = vadd.f32 %v3688_v18, %v3687_v54  ;;  %v3694_v53 = vsel %vm945_vm8, %v3644_v49, 0.0 }
 0x234   : > { %v4415_v23 = vpop.f32.mrb[22].mxu1  ;;  %v3690_v55 = vsel %vm945_vm8, %v3642_v26, 0.0  ;;  %v4550_v4 = vpop.f32.mrb[20].mxu0 }
 0x235   : > { %v2370_v20 = vpop.f32.mrb[23].mxu1  ;;  %v3591_v19 = vadd.f32 %v3590_v35, %v3589_v29  ;;  %v4582_v28 = vadd.f32 %v4550_v4, %v4414_v48  ;;  %v3444_v10 = vpop.f32.mrb[21].mxu0  ;;  %v3691_v42 = vadd.f32 %v3690_v55, %v3689_v25 }
 0x236   : > { %v4583_v59 = vadd.f32 %v3444_v10, %v2367_v2  ;;  %v4551_v9 = vpop.f32.mrb[22].mxu0 }
 0x237   : > { %3545 = vst.msk [vmem:[%s6132_s28 + $0xb0] sm:$0xff] %vm945_vm8, %v4582_v28  ;;  %v3593_v17 = vadd.f32 %v3592_v33, %v3591_v19  ;;  %v4584_v57 = vadd.f32 %v4551_v9, %v4415_v23  ;;  %v3447_v27 = vpop.f32.mrb[23].mxu0  ;;  %v3693_v15 = vadd.f32 %v3692_v51, %v3691_v42  ;;  %v3647_v24 = vmul.f32 %v4582_v28, %v4582_v28 }
 0x238   : > { %3543 = vst.msk [vmem:[%s6132_s28 + $0xa0] sm:$0xff] %vm945_vm8, %v4583_v59  ;;  %v3594_v22 = vsel %vm945_vm8, %v4583_v59, 0.0  ;;  %v3645_v3 = vmul.f32 %v4583_v59, %v4583_v59  ;;  %v4585_v46 = vadd.f32 %v3447_v27, %v2370_v20  ;;  %v3598_v62 = vsel %vm945_vm8, %v4582_v28, 0.0 }
 0x239   : > { %v3595_v34 = vadd.f32 %v3594_v22, %v3593_v17  ;;  %3546 = vst.msk [vmem:[%s6132_s28 + $0xb8] sm:$0xff] %vm945_vm8, %v4584_v57  ;;  %v3695_v50 = vadd.f32 %v3694_v53, %v3693_v15  ;;  %v3648_v32 = vmul.f32 %v4584_v57, %v4584_v57  ;;  %v3600_v63 = vsel %vm945_vm8, %v4584_v57, 0.0 }
 0x23a   : > { %v4418_v30 = vpop.f32.mrb[24].mxu1  ;;  %v3696_v40 = vsel %vm945_vm8, %v3645_v3, 0.0  ;;  %3544 = vst.msk [vmem:[%s6132_s28 + $0xa8] sm:$0xff] %vm945_vm8, %v4585_v46  ;;  %v3596_v6 = vsel %vm945_vm8, %v4585_v46, 0.0  ;;  %v3646_v60 = vmul.f32 %v4585_v46, %v4585_v46  ;;  %v3700_v58 = vsel %vm945_vm8, %v3647_v24, 0.0 }
 0x23b   : > { %v2383_v56 = vpop.f32.mrb[25].mxu1  ;;  %v3597_v38 = vadd.f32 %v3596_v6, %v3595_v34  ;;  %v3697_v11 = vadd.f32 %v3696_v40, %v3695_v50  ;;  %v3702_v1 = vsel %vm945_vm8, %v3648_v32, 0.0 }
 0x23c   : > { %v4419_v13 = vpop.f32.mrb[26].mxu1  ;;  %v3698_v21 = vsel %vm945_vm8, %v3646_v60, 0.0  ;;  %v4554_v36 = vpop.f32.mrb[24].mxu0 }
 0x23d   : > { %v2386_v0 = vpop.f32.mrb[27].mxu1  ;;  %v3599_v31 = vadd.f32 %v3598_v62, %v3597_v38  ;;  %v4586_v45 = vadd.f32 %v4554_v36, %v4418_v30  ;;  %v3460_v44 = vpop.f32.mrb[25].mxu0  ;;  %v3699_v7 = vadd.f32 %v3698_v21, %v3697_v11 }
 0x23e   : > { %v4587_v8 = vadd.f32 %v3460_v44, %v2383_v56  ;;  %v4555_v39 = vpop.f32.mrb[26].mxu0 }
 0x23f   : > { %3549 = vst.msk [vmem:[%s6132_s28 + $0xd0] sm:$0xff] %vm945_vm8, %v4586_v45  ;;  %v3601_v5 = vadd.f32 %v3600_v63, %v3599_v31  ;;  %v4588_v43 = vadd.f32 %v4555_v39, %v4419_v13  ;;  %v3463_v61 = vpop.f32.mrb[27].mxu0  ;;  %v3701_v52 = vadd.f32 %v3700_v58, %v3699_v7  ;;  %v3651_v16 = vmul.f32 %v4586_v45, %v4586_v45 }
 0x240   : > { %3547 = vst.msk [vmem:[%s6132_s28 + $0xc0] sm:$0xff] %vm945_vm8, %v4587_v8  ;;  %v3602_v47 = vsel %vm945_vm8, %v4587_v8, 0.0  ;;  %v3649_v41 = vmul.f32 %v4587_v8, %v4587_v8  ;;  %v4589_v37 = vadd.f32 %v3463_v61, %v2386_v0  ;;  %v3606_v35 = vsel %vm945_vm8, %v4586_v45, 0.0 }
 0x241   : > { %v3603_v14 = vadd.f32 %v3602_v47, %v3601_v5  ;;  %3550 = vst.msk [vmem:[%s6132_s28 + $0xd8] sm:$0xff] %vm945_vm8, %v4588_v43  ;;  %v3703_v54 = vadd.f32 %v3702_v1, %v3701_v52  ;;  %v3652_v49 = vmul.f32 %v4588_v43, %v4588_v43  ;;  %v3608_v33 = vsel %vm945_vm8, %v4588_v43, 0.0 }
 0x242   : > { %v4422_v48 = vpop.f32.mrb[28].mxu1  ;;  %v3704_v18 = vsel %vm945_vm8, %v3649_v41, 0.0  ;;  %3548 = vst.msk [vmem:[%s6132_s28 + $0xc8] sm:$0xff] %vm945_vm8, %v4589_v37  ;;  %v3604_v12 = vsel %vm945_vm8, %v4589_v37, 0.0  ;;  %v3650_v26 = vmul.f32 %v4589_v37, %v4589_v37  ;;  %v3708_v51 = vsel %vm945_vm8, %v3651_v16, 0.0 }
 0x243   : > { %v2399_v2 = vpop.f32.mrb[29].mxu1  ;;  %v3605_v29 = vadd.f32 %v3604_v12, %v3603_v14  ;;  %v3705_v25 = vadd.f32 %v3704_v18, %v3703_v54  ;;  %v3710_v53 = vsel %vm945_vm8, %v3652_v49, 0.0 }
 0x244   : > { %v4423_v23 = vpop.f32.mrb[30].mxu1  ;;  %v3706_v55 = vsel %vm945_vm8, %v3650_v26, 0.0  ;;  %v4558_v4 = vpop.f32.mrb[28].mxu0 }
 0x245   : > { %v2402_v20 = vpop.f32.mrb[31].mxu1  ;;  %v3607_v19 = vadd.f32 %v3606_v35, %v3605_v29  ;;  %v4590_v28 = vadd.f32 %v4558_v4, %v4422_v48  ;;  %v3476_v10 = vpop.f32.mrb[29].mxu0  ;;  %v3707_v42 = vadd.f32 %v3706_v55, %v3705_v25 }
 0x246   : > { %v4591_v59 = vadd.f32 %v3476_v10, %v2399_v2  ;;  %v4559_v9 = vpop.f32.mrb[30].mxu0 }
 0x247   : > { %3553 = vst.msk [vmem:[%s6132_s28 + $0xf0] sm:$0xff] %vm945_vm8, %v4590_v28  ;;  %v3609_v17 = vadd.f32 %v3608_v33, %v3607_v19  ;;  %v4592_v57 = vadd.f32 %v4559_v9, %v4423_v23  ;;  %v3479_v27 = vpop.f32.mrb[31].mxu0  ;;  %v3709_v15 = vadd.f32 %v3708_v51, %v3707_v42  ;;  %v3655_v6 = vmul.f32 %v4590_v28, %v4590_v28 }
 0x248   : > { %3551 = vst.msk [vmem:[%s6132_s28 + $0xe0] sm:$0xff] %vm945_vm8, %v4591_v59  ;;  %v3610_v22 = vsel %vm945_vm8, %v4591_v59, 0.0  ;;  %v3653_v3 = vmul.f32 %v4591_v59, %v4591_v59  ;;  %v4593_v46 = vadd.f32 %v3479_v27, %v2402_v20  ;;  %v3614_v24 = vsel %vm945_vm8, %v4590_v28, 0.0 }
 0x249   : > { %v3611_v30 = vadd.f32 %v3610_v22, %v3609_v17  ;;  %3554 = vst.msk [vmem:[%s6132_s28 + $0xf8] sm:$0xff] %vm945_vm8, %v4592_v57  ;;  %v3711_v34 = vadd.f32 %v3710_v53, %v3709_v15  ;;  %v3656_v62 = vmul.f32 %v4592_v57, %v4592_v57  ;;  %v3616_v0 = vsel %vm945_vm8, %v4592_v57, 0.0 }
 0x24a   : > { %v3712_v56 = vsel %vm945_vm8, %v3653_v3, 0.0  ;;  %3552 = vst.msk [vmem:[%s6132_s28 + $0xe8] sm:$0xff] %vm945_vm8, %v4593_v46  ;;  %v3612_v50 = vsel %vm945_vm8, %v4593_v46, 0.0  ;;  %v3654_v40 = vmul.f32 %v4593_v46, %v4593_v46  ;;  %v3716_v36 = vsel %vm945_vm8, %v3655_v6, 0.0 }
 0x24b   : > { %v3613_v60 = vadd.f32 %v3612_v50, %v3611_v30  ;;  %v3713_v13 = vadd.f32 %v3712_v56, %v3711_v34  ;;  %v3718_v45 = vsel %vm945_vm8, %v3656_v62, 0.0 }
 0x24c   : > { %v3714_v38 = vsel %vm945_vm8, %v3654_v40, 0.0 }
 0x24d   : > { %v3615_v11 = vadd.f32 %v3614_v24, %v3613_v60  ;;  %v3715_v21 = vadd.f32 %v3714_v38, %v3713_v13 }
 0x24f   : > { %v3617_v32 = vadd.f32 %v3616_v0, %v3615_v11  ;;  %v3717_v31 = vadd.f32 %v3716_v36, %v3715_v21 }
 0x251   : > { %v3618_v44 = vrot.slane %v3617_v32, 4  ;;  %v3719_v63 = vadd.f32 %v3718_v45, %v3717_v31 }
 0x253   : > { %v3619_v7 = vadd.f32 %v3618_v44, %v3617_v32  ;;  %v3720_v8 = vrot.slane %v3719_v63, 4 }
 0x255   : > { %v3620_v39 = vrot.slane %v3619_v7, 2  ;;  %v3721_v58 = vadd.f32 %v3720_v8, %v3719_v63 }
 0x257   : > { %v3621_v5 = vadd.f32 %v3620_v39, %v3619_v7  ;;  %v3722_v43 = vrot.slane %v3721_v58, 2 }
 0x259   : > { %v3622_v61 = vrot.slane %v3621_v5, 1  ;;  %v3723_v52 = vadd.f32 %v3722_v43, %v3721_v58 }
 0x25b   : > { %v3623_v47 = vadd.f32 %v3622_v61, %v3621_v5  ;;  %v3724_v41 = vrot.slane %v3723_v52, 1 }
 0x25d   : > { %3624 = vst.msk [vmem:[%s235_s6] sm:$0x1] %vm398_vm2, %v3623_v47  ;;  %v3725_v37 = vadd.f32 %v3724_v41, %v3723_v52 }
 0x25f   : > { %3726 = vst.msk [vmem:[%s235_s6 + $0x1] sm:$0x1] %vm398_vm2, %v3725_v37 }
 0x260 PF: > { %s16_s18 = sadd.s32 1, %s4879_s18  }
 0x261   : > { %p13_p4 = scmp.ge.s32.totalorder %s16_s18, 4  }
 0x263   :  { %15 = sbr.rel (!%p13_p4) target bundleno = 1 (0x1), region = 88 }

// kernel: residual_block.3
= control target key start
LH: loop header
LB: loop body
LE: loop exit
PB: predicated region body
PF: predicated region fallthrough
CT: control target
= control target key end

     0   :  { %s4734_s12 = smov 0   ;;  %s6065_s0 = inlined_call_operand.vmem [shape: f32[2,16,16,4], index: 0, kind: input, shape index: {}]   ;;  %s6066_s1 = inlined_call_operand.vmem [shape: bf16[3,3,4,4], index: 1, kind: input, shape index: {}]   ;;  %s6067_s2 = inlined_call_operand.vmem [shape: f32[2,16,16,4], index: 2, kind: output, shape index: {0}]   ;;  %s6068_s3 = inlined_call_operand.vmem [shape: f32[2,2,4], index: 3, kind: output, shape index: {1}]  }
   0x1 LB: > { %s3649_s13 = sadd.s32 4294967295, %s4711_s12   ;;  %p3653_p0 = scmp.ge.s32.totalorder %s4711_s12, 1  ;;  %s4711_s12 = sphi %s4734_s12, %s14_s12  }
   0x2   : > { %p140_p1 = scmp.lt.s32.totalorder %s4711_s12, 3 }
   0x4   : > { %p141_p2 = pnand %p3653_p0, %p140_p1 }
   0x6   : > { %144 = sbr.rel (%p141_p2) target bundleno = 590 (0x24e), region = 28 }
   0xd   : > { %v3707_v0 = vld [vmem:[%s6066_s1 + $0x6] sm:$0x3]  ;;  %vm830_vm0 = vcmask 1041408   ;;  %p168_p3 = scmp.lt.s32.totalorder %s3649_s13, 1  ;;  %v3808_v2 = vld [vmem:[%s6066_s1 + $0x8] sm:$0x3] }
   0xe   : > { %4652 = vmatprep.subr.msk.bf16.mxu1 %vm830_vm0, %v3707_v0  ;;  %v832_v1 = vsel %vm830_vm0, %v3707_v0, 0  ;;  %v698_v3 = vld [vmem:[%s6066_s1] sm:$0x3]  ;;  %4656 = vmatprep.subr.msk.bf16.mxu0 %vm830_vm0, %v3808_v2  ;;  %v4757_v4 = vsel %vm830_vm0, %v3808_v2, 0  ;;  %v3826_v5 = vld [vmem:[%s6066_s1 + $0xe] sm:$0x3] }
   0xf   : > { %4089 = vmatpush3.bf16.msra.mxu1 %v832_v1  ;;  %s6198_s13 = smov (!%p168_p3, %s3649_s13), 1  ;;  %6113 = vst [vmem:[#allocation3_spill] sm:$0xff] %v4757_v4  ;;  %4225 = vmatpush3.bf16.msra.mxu0 %v4757_v4  ;;  %vm231_vm1 = vcmask 27648   ;;  %vm234_vm2 = vcmask 24576   ;;  %v4713_v9 = vmov 0   ;;  %vm384_vm3 = vcmask 1040384  }
  0x10   : > { %4653 = vmatprep.subr.msk.bf16.mxu1 %vm830_vm0, %v698_v3  ;;  %s3933_s20 = sshll.u32 %s6198_s13, 8  ;;  %4658 = vmatprep.subr.msk.bf16.mxu0 %vm830_vm0, %v3826_v5  ;;  %232 = vst.msk [vmem:[#allocation2] sm:$0xf] %vm231_vm1, %v4713_v9  ;;  %233 = vst.msk [vmem:[#allocation2 + $0x4] sm:$0xf] %vm231_vm1, %v4713_v9  ;;  %v4788_v18 = vsel %vm830_vm0, %v698_v3, 0 }
  0x11   : > { %s4770_s25 = scalar_lea.vmem %s6065_s0, %s3933_s20  ;;  %235 = vst.msk [vmem:[#allocation2 + $0x8] sm:$0x1] %vm234_vm2, %v4713_v9  ;;  %239 = vst.msk [vmem:[#allocation2 + $0xd4] sm:$0x1] %vm234_vm2, %v4713_v9  ;;  %vm385_vm4 = vsmask.f32 256  ;;  %s5918_s15 = scalar_lea.vmem %s6067_s2, %s3933_s20 }
  0x12   : > { %v183_v6 = vld [vmem:[%s4770_s25] sm:$0xff]  ;;  %v184_v7 = vld [vmem:[%s4770_s25 + $0x8] sm:$0xff]  ;;  %v185_v8 = vld [vmem:[%s4770_s25 + $0x10] sm:$0xff]  ;;  %237 = vst.msk [vmem:[#allocation2 + $0xcc] sm:$0xf] %vm231_vm1, %v4713_v9  ;;  %v4792_v23 = vsel %vm830_vm0, %v3826_v5, 0 }
  0x13   : > { %238 = vst.msk [vmem:[#allocation2 + $0xd0] sm:$0xf] %vm231_vm1, %v4713_v9  ;;  %v215_v10 = vpack.c.bf16 %v184_v7, %v183_v6  ;;  %v186_v11 = vld [vmem:[%s4770_s25 + $0x18] sm:$0xff]  ;;  %v187_v12 = vld [vmem:[%s4770_s25 + $0x20] sm:$0xff]  ;;  %v188_v13 = vld [vmem:[%s4770_s25 + $0x28] sm:$0xff]  ;;  %vm2526_vm6 = vcmask 1042432  }
  0x14   : > { %v216_v14 = vpack.c.bf16 %v186_v11, %v185_v8  ;;  %v217_v15 = vpack.c.bf16 %v188_v13, %v187_v12  ;;  %v189_v16 = vld [vmem:[%s4770_s25 + $0x30] sm:$0xff]  ;;  %v190_v17 = vld [vmem:[%s4770_s25 + $0x38] sm:$0xff]  ;;  %v191_v19 = vld [vmem:[%s4770_s25 + $0x40] sm:$0xff]  ;;  %vm2527_vm7 = vcmask 1046532   ;;  %vm781_vm8 = vcmask 31744   ;;  %s3658_s16 = sshll.u32 %s6198_s13, 1 }
  0x15   : > { %v241_v20 = vshrl.u32 %v215_v10, 16  ;;  %v244_v21 = vshll.u32 %v215_v10, 16  ;;  %v218_v22 = vpack.c.bf16 %v190_v17, %v189_v16  ;;  %v192_v24 = vld [vmem:[%s4770_s25 + $0x48] sm:$0xff]  ;;  %v193_v25 = vld [vmem:[%s4770_s25 + $0x50] sm:$0xff]  ;;  %v194_v26 = vld [vmem:[%s4770_s25 + $0x58] sm:$0xff]  ;;  %s181_s19 = scalar_lea.vmem %s6068_s3, %s3658_s16 }
  0x16   : > { %v248_v27 = vshrl.u32 %v216_v14, 16  ;;  %v251_v28 = vshll.u32 %v216_v14, 16  ;;  %v255_v29 = vshrl.u32 %v217_v15, 16  ;;  %v258_v30 = vshll.u32 %v217_v15, 16  ;;  %v195_v31 = vld [vmem:[%s4770_s25 + $0x60] sm:$0xff]  ;;  %v196_v32 = vld [vmem:[%s4770_s25 + $0x68] sm:$0xff]  ;;  %vm4801_vm5 = vmand %vm384_vm3, %vm385_vm4 }
  0x17   : > { %v243_v33 = vrot.slane %v241_v20, 7  ;;  %v262_v34 = vshrl.u32 %v218_v22, 16  ;;  %v265_v35 = vshll.u32 %v218_v22, 16  ;;  %v219_v36 = vpack.c.bf16 %v192_v24, %v191_v19  ;;  %v197_v2 = vld [vmem:[%s4770_s25 + $0x70] sm:$0xff]  ;;  %v198_v3 = vld [vmem:[%s4770_s25 + $0x78] sm:$0xff]  ;;  %vm4870_vm11 = vmor %vm2526_vm6, %vm2527_vm7 }
  0x18   : > { %v250_v38 = vrot.slane %v248_v27, 7  ;;  %v257_v39 = vrot.slane %v255_v29, 7  ;;  %v220_v40 = vpack.c.bf16 %v194_v26, %v193_v25  ;;  %v4805_v41 = vpack.c.bf16 %v196_v32, %v195_v31 }
  0x19   : > { %v246_v42 = vor.u32 %v244_v21, %v243_v33  ;;  %v264_v43 = vrot.slane %v262_v34, 7  ;;  %v403_v44 = vsel %vm4801_vm5, %v243_v33, 0  ;;  %v269_v45 = vshrl.u32 %v219_v36, 16 }
  0x1a   : > { %v253_v46 = vor.u32 %v251_v28, %v250_v38  ;;  %v260_v47 = vor.u32 %v258_v30, %v257_v39  ;;  %v3661_v48 = vcombine.low %v403_v44, %v403_v44  ;;  %v404_v49 = vsel %vm4801_vm5, %v250_v38, 0 }
  0x1b   : > { %v387_v50 = vsel %vm4801_vm5, 0, %v246_v42  ;;  %v267_v51 = vor.u32 %v265_v35, %v264_v43  ;;  %v3664_v52 = vcombine.low %v404_v49, %v404_v49  ;;  %v271_v53 = vrot.slane %v269_v45, 7 }
  0x1c   : > { %v3659_v54 = vcombine.low %v387_v50, %v387_v50  ;;  %v3660_v55 = vcombine.high %v387_v50, %v387_v50  ;;  %v388_v56 = vsel %vm4801_vm5, 0, %v253_v46  ;;  %v389_v57 = vsel %vm4801_vm5, 0, %v260_v47  ;;  %598 = vst.msk [vmem:[#allocation2 + $0x14] sm:$0x1] %vm234_vm2, %v3661_v48 }
  0x1d   : > { %v3662_v58 = vcombine.low %v388_v56, %v388_v56  ;;  %v3663_v59 = vcombine.high %v388_v56, %v388_v56  ;;  %v3665_v60 = vcombine.low %v389_v57, %v389_v57  ;;  %v3666_v61 = vcombine.high %v389_v57, %v389_v57  ;;  %601 = vst.msk [vmem:[#allocation2 + $0x20] sm:$0x1] %vm234_vm2, %v3664_v52 }
  0x1e   : > { %596 = vst.msk [vmem:[#allocation2 + $0xc] sm:$0xf] %vm231_vm1, %v3659_v54  ;;  %597 = vst.msk [vmem:[#allocation2 + $0x10] sm:$0xf] %vm231_vm1, %v3660_v55  ;;  %v390_v62 = vsel %vm4801_vm5, 0, %v267_v51  ;;  %v272_v63 = vshll.u32 %v219_v36, 16  ;;  %v4837_v15 = vpack.c.bf16 %v198_v3, %v197_v2 }
  0x1f   : > { %v276_v0 = vshrl.u32 %v220_v40, 16  ;;  %v279_v1 = vshll.u32 %v220_v40, 16  ;;  %599 = vst.msk [vmem:[#allocation2 + $0x18] sm:$0xf] %vm231_vm1, %v3662_v58  ;;  %600 = vst.msk [vmem:[#allocation2 + $0x1c] sm:$0xf] %vm231_vm1, %v3663_v59  ;;  %v3668_v5 = vcombine.low %v390_v62, %v390_v62  ;;  %v3669_v6 = vcombine.high %v390_v62, %v390_v62 }
  0x20   : > { %602 = vst.msk [vmem:[#allocation2 + $0x24] sm:$0xf] %vm231_vm1, %v3665_v60  ;;  %603 = vst.msk [vmem:[#allocation2 + $0x28] sm:$0xf] %vm231_vm1, %v3666_v61  ;;  %v405_v7 = vsel %vm4801_vm5, %v257_v39, 0  ;;  %v406_v8 = vsel %vm4801_vm5, %v264_v43, 0  ;;  %v274_v9 = vor.u32 %v272_v63, %v271_v53 }
  0x21   : > { %v278_v10 = vrot.slane %v276_v0, 7  ;;  %v3667_v11 = vcombine.low %v405_v7, %v405_v7  ;;  %v3670_v12 = vcombine.low %v406_v8, %v406_v8  ;;  %605 = vst.msk [vmem:[#allocation2 + $0x30] sm:$0xf] %vm231_vm1, %v3668_v5  ;;  %606 = vst.msk [vmem:[#allocation2 + $0x34] sm:$0xf] %vm231_vm1, %v3669_v6  ;;  %v283_v13 = vshrl.u32 %v4805_v41, 16 }
  0x22   : > { %v286_v14 = vshll.u32 %v4805_v41, 16  ;;  %v407_v16 = vsel %vm4801_vm5, %v271_v53, 0  ;;  %v391_v17 = vsel %vm4801_vm5, 0, %v274_v9  ;;  %vm1373_vm9 = vsmask.f32 3328 }
  0x23   : > { %v281_v19 = vor.u32 %v279_v1, %v278_v10  ;;  %604 = vst.msk [vmem:[#allocation2 + $0x2c] sm:$0x1] %vm234_vm2, %v3667_v11  ;;  %607 = vst.msk [vmem:[#allocation2 + $0x38] sm:$0x1] %vm234_vm2, %v3670_v12  ;;  %v3673_v20 = vcombine.low %v407_v16, %v407_v16  ;;  %v408_v21 = vsel %vm4801_vm5, %v278_v10, 0  ;;  %v3671_v24 = vcombine.low %v391_v17, %v391_v17 }
  0x24   : > { %v4847_v22 = vld [vmem:[#allocation2 + $0x14] sm:$0x1]  ;;  %vm1374_vm10 = vsmask.f32 7440  ;;  %v3672_v25 = vcombine.high %v391_v17, %v391_v17  ;;  %v4849_v26 = vrot.slane %v283_v13, 7  ;;  %v290_v27 = vshrl.u32 %v4837_v15, 16 }
  0x25   : > { %v1420_v28 = vshll.u32 %v4847_v22, 16  ;;  %v2541_v29 = vrot.slane %v4847_v22, 5  ;;  %v4854_v30 = vld [vmem:[#allocation2 + $0x20] sm:$0x1]  ;;  %v392_v31 = vsel %vm4801_vm5, 0, %v281_v19  ;;  %v293_v32 = vshll.u32 %v4837_v15, 16  ;;  %vm4922_vm12 = vmor %vm1373_vm9, %vm1374_vm10 }
  0x26   : > { %610 = vst.msk [vmem:[#allocation2 + $0x44] sm:$0x1] %vm234_vm2, %v3673_v20  ;;  %v647_v33 = vld [vmem:[#allocation2 + $0xc] sm:$0xf]  ;;  %v648_v34 = vld [vmem:[#allocation2 + $0x10] sm:$0xf]  ;;  %v3674_v36 = vcombine.low %v392_v31, %v392_v31  ;;  %v3675_v38 = vcombine.high %v392_v31, %v392_v31  ;;  %v4864_v39 = vor.u32 %v286_v14, %v4849_v26  ;;  %v3676_v57 = vcombine.low %v408_v21, %v408_v21 }
  0x27   : > { %v1444_v35 = vshll.u32 %v4854_v30, 16  ;;  %608 = vst.msk [vmem:[#allocation2 + $0x3c] sm:$0xf] %vm231_vm1, %v3671_v24  ;;  %609 = vst.msk [vmem:[#allocation2 + $0x40] sm:$0xf] %vm231_vm1, %v3672_v25  ;;  %v4866_v40 = vcombine.low %v647_v33, %v648_v34  ;;  %v1401_v41 = vshrl.u32 %v647_v33, 16 }
  0x28   : > { %v1404_v42 = vshll.u32 %v647_v33, 16  ;;  %v1414_v43 = vshrl.u32 %v648_v34, 16  ;;  %v650_v45 = vld [vmem:[#allocation2 + $0x18] sm:$0xf]  ;;  %v3845_v46 = vrot.slane %v647_v33, 9  ;;  %v2538_v47 = vrot.slane %v648_v34, 5 }
  0x29   : > { %v651_v48 = vld [vmem:[#allocation2 + $0x1c] sm:$0xf]  ;;  %v1425_v49 = vshrl.u32 %v650_v45, 16  ;;  %v1428_v50 = vshll.u32 %v650_v45, 16  ;;  %611 = vst.msk [vmem:[#allocation2 + $0x48] sm:$0xf] %vm231_vm1, %v3674_v36  ;;  %4090 = vmatprep.mubr.msk.bf16.mxu1 %vm781_vm8, %v4866_v40 }
  0x2a   : > { %612 = vst.msk [vmem:[#allocation2 + $0x4c] sm:$0xf] %vm231_vm1, %v3675_v38  ;;  %v4879_v51 = vld [vmem:[%s6066_s1 + $0xc] sm:$0x3]  ;;  %v4883_v52 = vcombine.low %v650_v45, %v651_v48  ;;  %v1438_v53 = vshrl.u32 %v651_v48, 16  ;;  %v1403_v56 = vrot.slane %v1401_v41, 4  ;;  %v2539_v58 = vsel %vm4870_vm11, %v3845_v46, %v2538_v47 }
  0x2b   : > { %v653_v54 = vld [vmem:[#allocation2 + $0x24] sm:$0xf]  ;;  %v4885_v55 = vld [vmem:[#allocation2 + $0x28] sm:$0xf]  ;;  %v2540_v59 = vrot.slane %v2538_v47, 4  ;;  %v1406_v7 = vrot.slane %v1404_v42, 5 }
  0x2c   : > { %v4890_v60 = vcombine.low %v653_v54, %v4885_v55  ;;  %v1449_v61 = vshrl.u32 %v653_v54, 16  ;;  %v4892_v62 = vld [vmem:[#allocation2 + $0x30] sm:$0xf]  ;;  %v4894_v63 = vld [vmem:[#allocation2 + $0x34] sm:$0xf]  ;;  %4091 = vmatmul.mubr.msk.bf16.vlgmr.msra.gmra.mrb[0].mxu1 %vm781_vm8, %v4883_v52  ;;  %v1452_v0 = vshll.u32 %v653_v54, 16 }
  0x2d   : > { %v1462_v1 = vshrl.u32 %v4885_v55, 16  ;;  %v4901_v2 = vcombine.low %v4892_v62, %v4894_v63  ;;  %v1473_v3 = vshrl.u32 %v4892_v62, 16  ;;  %613 = vst.msk [vmem:[#allocation2 + $0x50] sm:$0x1] %vm234_vm2, %v3676_v57  ;;  %v1476_v5 = vshll.u32 %v4892_v62, 16  ;;  %4123 = vmatpush3.bf16.msra.mxu1 %v4788_v18 }
  0x2e   : > { %4094 = vmatprep.mubr.msk.bf16.mxu1 %vm781_vm8, %v4890_v60  ;;  %v1486_v6 = vshrl.u32 %v4894_v63, 16  ;;  %v1410_v8 = vshll.u32 %v648_v34, 16  ;;  %v1416_v9 = vrot.slane %v1414_v43, 4  ;;  %v1422_v10 = vrot.slane %v1420_v28, 5  ;;  %v4912_v13 = vld [vmem:[#allocation2 + $0x3c] sm:$0xf]  ;;  %4654 = vmatprep.subr.msk.bf16.mxu1 %vm830_vm0, %v4879_v51 }
  0x2f   : > { %v2542_v11 = vsel %vm4870_vm11, %v2540_v59, %v2541_v29  ;;  %v1427_v12 = vrot.slane %v1425_v49, 4  ;;  %v1407_v14 = vor.u32 %v1406_v7, %v1403_v56  ;;  %v1430_v19 = vrot.slane %v1428_v50, 5  ;;  %v4918_v20 = vld [vmem:[#allocation2 + $0x40] sm:$0xf]  ;;  %v655_v47 = vld [vmem:[#allocation2 + $0x2c] sm:$0x1] }
  0x30   : > { %v1412_v16 = vrot.slane %v1410_v8, 5  ;;  %v4916_v17 = vcombine.low %v2539_v58, %v2542_v11  ;;  %v1434_v21 = vshll.u32 %v651_v48, 16  ;;  %v1440_v22 = vrot.slane %v1438_v53, 4  ;;  %v4930_v28 = vld [vmem:[#allocation2 + $0x48] sm:$0xf] }
  0x31   : > { %v1446_v24 = vrot.slane %v1444_v35, 5  ;;  %v4928_v25 = vcombine.low %v4912_v13, %v4918_v20  ;;  %v1408_v29 = vrot.slane %v1407_v14, 4  ;;  %v1431_v31 = vor.u32 %v1430_v19, %v1427_v12  ;;  %v4933_v34 = vld [vmem:[#allocation2 + $0x4c] sm:$0xf] }
  0x32   : > { %6118 = vst [vmem:[#allocation4_spill] sm:$0xff] %v4916_v17  ;;  %v1417_v30 = vor.u32 %v1416_v9, %v1412_v16  ;;  %v1497_v33 = vshrl.u32 %v4912_v13, 16  ;;  %v1436_v36 = vrot.slane %v1434_v21, 5  ;;  %v1500_v38 = vshll.u32 %v4912_v13, 16 }
  0x33   : > { %v1510_v41 = vshrl.u32 %v4918_v20, 16  ;;  %v4939_v35 = vcombine.low %v4930_v28, %v4933_v34  ;;  %v1413_v42 = vsel %vm4922_vm12, %v1408_v29, %v1412_v16  ;;  %v1432_v45 = vrot.slane %v1431_v31, 4 }
  0x34   : > { %v1418_v43 = vrot.slane %v1417_v30, 4  ;;  %v1521_v46 = vshrl.u32 %v4930_v28, 16  ;;  %4095 = vmatmul.mubr.msk.bf16.gmra.mrb[4].mxu1 %vm781_vm8, %v4901_v2  ;;  %v1441_v48 = vor.u32 %v1440_v22, %v1436_v36  ;;  %v1524_v49 = vshll.u32 %v4930_v28, 16 }
  0x35   : > { %v1534_v50 = vshrl.u32 %v4933_v34, 16  ;;  %v1451_v53 = vrot.slane %v1449_v61, 4  ;;  %v1437_v56 = vsel %vm4922_vm12, %v1432_v45, %v1436_v36  ;;  %4098 = vmatprep.mubr.msk.bf16.mxu1 %vm781_vm8, %v4928_v25  ;;  %v1454_v57 = vrot.slane %v1452_v0, 5  ;;  %v4957_v61 = vld [vmem:[#allocation2 + $0x38] sm:$0x1] }
  0x36   : > { %v1423_v54 = vsel %vm4922_vm12, %v1418_v43, %v1422_v10  ;;  %v1458_v58 = vshll.u32 %v4885_v55, 16  ;;  %v1442_v62 = vrot.slane %v1441_v48, 4  ;;  %v1464_v7 = vrot.slane %v1462_v1, 4 }
  0x37   : > { %v4955_v59 = vcombine.low %v1413_v42, %v1423_v54  ;;  %v1468_v8 = vshll.u32 %v655_v47, 16  ;;  %v1455_v9 = vor.u32 %v1454_v57, %v1451_v53  ;;  %v1475_v12 = vrot.slane %v1473_v3, 4  ;;  %v4994_v47 = vld [vmem:[#allocation2 + $0x44] sm:$0x1] }
  0x38   : > { %v1460_v11 = vrot.slane %v1458_v58, 5  ;;  %v1478_v10 = vrot.slane %v1476_v5, 5  ;;  %v1447_v13 = vsel %vm4922_vm12, %v1442_v62, %v1446_v24  ;;  %v1482_v55 = vshll.u32 %v4894_v63, 16  ;;  %v4977_v63 = vld [vmem:[%s6066_s1 + $0x4] sm:$0x3] }
  0x39   : > { %6121 = vst [vmem:[#allocation5_spill] sm:$0xff] %v4955_v59  ;;  %4226 = vmatprep.mubr.msk.bf16.mxu0 %vm781_vm8, %v4955_v59  ;;  %v1470_v0 = vrot.slane %v1468_v8, 5  ;;  %v1488_v14 = vrot.slane %v1486_v6, 4  ;;  %v4964_v16 = vcombine.low %v1437_v56, %v1447_v13  ;;  %v1456_v1 = vrot.slane %v1455_v9, 4  ;;  %v5262_v59 = vld [vmem:[#allocation2] sm:$0xf] }
  0x3a   : > { %v1465_v19 = vor.u32 %v1464_v7, %v1460_v11  ;;  %v1479_v21 = vor.u32 %v1478_v10, %v1475_v12  ;;  %v1484_v22 = vrot.slane %v1482_v55, 5  ;;  %v1492_v29 = vshll.u32 %v4957_v61, 16  ;;  %v200_v12 = vld [vmem:[%s4770_s25 + $0x88] sm:$0xff]  ;;  %v202_v55 = vld [vmem:[%s4770_s25 + $0x98] sm:$0xff] }
  0x3b   : > { %6122 = vst [vmem:[#allocation6_spill] sm:$0xff] %v4964_v16  ;;  %v393_v3 = vsel %vm4801_vm5, 0, %v4864_v39  ;;  %v4972_v5 = vrot.slane %v290_v27, 7  ;;  %4227 = vmatmul.mubr.msk.bf16.vlgmr.msra.gmra.mrb[0].mxu0 %vm781_vm8, %v4964_v16  ;;  %v1461_v6 = vsel %vm4922_vm12, %v1456_v1, %v1460_v11  ;;  %v1502_v48 = vrot.slane %v1500_v38, 5  ;;  %v664_v38 = vld [vmem:[#allocation2 + $0x50] sm:$0x1] }
  0x3c   : > { %v1466_v24 = vrot.slane %v1465_v19, 4  ;;  %v1480_v30 = vrot.slane %v1479_v21, 4  ;;  %v3677_v31 = vcombine.low %v393_v3, %v393_v3  ;;  %4259 = vmatpush3.bf16.msra.mxu0 %v4792_v23  ;;  %4099 = vmatmul.mubr.msk.bf16.gmra.mrb[8].mxu1 %vm781_vm8, %v4939_v35  ;;  %v1489_v27 = vor.u32 %v1488_v14, %v1484_v22  ;;  %v199_v11 = vld [vmem:[%s4770_s25 + $0x80] sm:$0xff] }
  0x3d   : > { %v1494_v39 = vrot.slane %v1492_v29, 5  ;;  %v3678_v36 = vcombine.high %v393_v3, %v393_v3  ;;  %v295_v42 = vor.u32 %v293_v32, %v4972_v5  ;;  %v1499_v23 = vrot.slane %v1497_v33, 4  ;;  %4659 = vmatprep.subr.msk.bf16.mxu0 %vm830_vm0, %v4977_v63 }
  0x3e   : > { %v1471_v43 = vsel %vm4922_vm12, %v1466_v24, %v1470_v0  ;;  %v1485_v45 = vsel %vm4922_vm12, %v1480_v30, %v1484_v22  ;;  %614 = vst.msk [vmem:[#allocation2 + $0x54] sm:$0xf] %vm231_vm1, %v3677_v31  ;;  %v1490_v15 = vrot.slane %v1489_v27, 4  ;;  %v1506_v54 = vshll.u32 %v4918_v20, 16  ;;  %v201_v0 = vld [vmem:[%s4770_s25 + $0x90] sm:$0xff] }
  0x3f   : > { %v4998_v53 = vcombine.low %v1461_v6, %v1471_v43  ;;  %615 = vst.msk [vmem:[#allocation2 + $0x58] sm:$0xf] %vm231_vm1, %v3678_v36  ;;  %v394_v32 = vsel %vm4801_vm5, 0, %v295_v42  ;;  %v1503_v58 = vor.u32 %v1502_v48, %v1499_v23  ;;  %v1512_v33 = vrot.slane %v1510_v41, 4  ;;  %v204_v42 = vld [vmem:[%s4770_s25 + $0xa8] sm:$0xff] }
  0x40   : > { %v3680_v56 = vcombine.low %v394_v32, %v394_v32  ;;  %v3681_v57 = vcombine.high %v394_v32, %v394_v32  ;;  %v1495_v62 = vsel %vm4922_vm12, %v1490_v15, %v1494_v39  ;;  %v1508_v7 = vrot.slane %v1506_v54, 5 }
  0x41   : > { %6123 = vst [vmem:[#allocation7_spill] sm:$0xff] %v4998_v53  ;;  %4230 = vmatprep.mubr.msk.bf16.mxu0 %vm781_vm8, %v4998_v53  ;;  %v1516_v8 = vshll.u32 %v4994_v47, 16  ;;  %v1523_v9 = vrot.slane %v1521_v46, 4  ;;  %v5015_v10 = vcombine.low %v1485_v45, %v1495_v62  ;;  %v1504_v20 = vrot.slane %v1503_v58, 4 }
  0x42   : > { %617 = vst.msk [vmem:[#allocation2 + $0x60] sm:$0xf] %vm231_vm1, %v3680_v56  ;;  %618 = vst.msk [vmem:[#allocation2 + $0x64] sm:$0xf] %vm231_vm1, %v3681_v57  ;;  %v1526_v41 = vrot.slane %v1524_v49, 5  ;;  %v1530_v13 = vshll.u32 %v4933_v34, 16  ;;  %v1513_v14 = vor.u32 %v1512_v33, %v1508_v7  ;;  %v223_v22 = vpack.c.bf16 %v200_v12, %v199_v11 }
  0x43   : > { %6124 = vst [vmem:[#allocation8_spill] sm:$0xff] %v5015_v10  ;;  %v1518_v1 = vrot.slane %v1516_v8, 5  ;;  %v1536_v46 = vrot.slane %v1534_v50, 4  ;;  %v1540_v19 = vshll.u32 %v664_v38, 16  ;;  %4231 = vmatmul.mubr.msk.bf16.gmra.mrb[4].mxu0 %vm781_vm8, %v5015_v10  ;;  %v1509_v21 = vsel %vm4922_vm12, %v1504_v20, %v1508_v7  ;;  %v203_v50 = vld [vmem:[%s4770_s25 + $0xa0] sm:$0xff] }
  0x44   : > { %v1527_v28 = vor.u32 %v1526_v41, %v1523_v9  ;;  %v1532_v49 = vrot.slane %v1530_v13, 5  ;;  %v1514_v3 = vrot.slane %v1513_v14, 4  ;;  %v224_v24 = vpack.c.bf16 %v202_v55, %v201_v0 }
  0x45   : > { %v665_v29 = vld [vmem:[#allocation2 + $0x54] sm:$0xf]  ;;  %v1542_v6 = vrot.slane %v1540_v19, 5  ;;  %v409_v34 = vsel %vm4801_vm5, %v4849_v26, 0  ;;  %v297_v48 = vshrl.u32 %v223_v22, 16  ;;  %v300_v54 = vshll.u32 %v223_v22, 16 }
  0x46   : > { %v5034_v30 = vld [vmem:[#allocation2 + $0x58] sm:$0xf]  ;;  %v1545_v31 = vshrl.u32 %v665_v29, 16  ;;  %v1548_v27 = vshll.u32 %v665_v29, 16  ;;  %v1528_v39 = vrot.slane %v1527_v28, 4  ;;  %v1537_v36 = vor.u32 %v1536_v46, %v1532_v49 }
  0x47   : > { %6125 = vst [vmem:[#allocation9_spill] sm:$0xff] %v5034_v30  ;;  %v5038_v43 = vcombine.low %v665_v29, %v5034_v30  ;;  %v1558_v45 = vshrl.u32 %v5034_v30, 16  ;;  %v1519_v23 = vsel %vm4922_vm12, %v1514_v3, %v1518_v1  ;;  %v5051_v58 = vrot.slane %v297_v48, 7 }
  0x48   : > { %v5043_v15 = vcombine.low %v1509_v21, %v1519_v23  ;;  %v1533_v26 = vsel %vm4922_vm12, %v1528_v39, %v1532_v49  ;;  %v1538_v32 = vrot.slane %v1537_v36, 4  ;;  %v304_v33 = vshrl.u32 %v224_v24, 16 }
  0x49   : > { %4102 = vmatprep.mubr.msk.bf16.mxu1 %vm781_vm8, %v5038_v43  ;;  %v668_v56 = vld [vmem:[#allocation2 + $0x60] sm:$0xf]  ;;  %v5049_v57 = vld [vmem:[#allocation2 + $0x64] sm:$0xf]  ;;  %v3679_v38 = vcombine.low %v409_v34, %v409_v34  ;;  %v225_v62 = vpack.c.bf16 %v204_v42, %v203_v50  ;;  %v302_v20 = vor.u32 %v300_v54, %v5051_v58  ;;  %v307_v13 = vshll.u32 %v224_v24, 16  ;;  %v209_v54 = vld [vmem:[%s4770_s25 + $0xd0] sm:$0xff] }
  0x4a   : > { %6126 = vst [vmem:[#allocation10_spill] sm:$0xff] %v5043_v15  ;;  %6127 = vst [vmem:[#allocation11_spill] sm:$0xff] %v5049_v57  ;;  %v5054_v7 = vcombine.low %v668_v56, %v5049_v57  ;;  %v1569_v8 = vshrl.u32 %v668_v56, 16  ;;  %v1572_v9 = vshll.u32 %v668_v56, 16  ;;  %v1582_v11 = vshrl.u32 %v5049_v57, 16  ;;  %4234 = vmatprep.mubr.msk.bf16.mxu0 %vm781_vm8, %v5043_v15  ;;  %v207_v42 = vld [vmem:[%s4770_s25 + $0xc0] sm:$0xff] }
  0x4b   : > { %v1543_v12 = vsel %vm4922_vm12, %v1538_v32, %v1542_v6  ;;  %v5062_v41 = vrot.slane %v304_v33, 7  ;;  %616 = vst.msk [vmem:[#allocation2 + $0x5c] sm:$0x1] %vm234_vm2, %v3679_v38  ;;  %v1547_v55 = vrot.slane %v1545_v31, 4  ;;  %v1550_v14 = vrot.slane %v1548_v27, 5  ;;  %v205_v31 = vld [vmem:[%s4770_s25 + $0xb0] sm:$0xff] }
  0x4c   : > { %4103 = vmatmul.mubr.msk.bf16.gmra.mrb[12].mxu1 %vm781_vm8, %v5054_v7  ;;  %v5067_v0 = vcombine.low %v1533_v26, %v1543_v12  ;;  %v1554_v1 = vshll.u32 %v5034_v30, 16  ;;  %v395_v46 = vsel %vm4801_vm5, 0, %v302_v20  ;;  %v1560_v21 = vrot.slane %v1558_v45, 4  ;;  %v206_v27 = vld [vmem:[%s4770_s25 + $0xb8] sm:$0xff]  ;;  %v208_v45 = vld [vmem:[%s4770_s25 + $0xc8] sm:$0xff] }
  0x4d   : > { %v309_v19 = vor.u32 %v307_v13, %v5062_v41  ;;  %v410_v28 = vsel %vm4801_vm5, %v4972_v5, 0  ;;  %v3683_v49 = vcombine.low %v395_v46, %v395_v46  ;;  %v3684_v22 = vcombine.high %v395_v46, %v395_v46  ;;  %v210_v56 = vld [vmem:[%s4770_s25 + $0xd8] sm:$0xff] }
  0x4e   : > { %6128 = vst [vmem:[#allocation12_spill] sm:$0xff] %v5067_v0  ;;  %4235 = vmatmul.mubr.msk.bf16.gmra.mrb[8].mxu0 %vm781_vm8, %v5067_v0  ;;  %v1551_v29 = vor.u32 %v1550_v14, %v1547_v55  ;;  %v1556_v3 = vrot.slane %v1554_v1, 5  ;;  %v3682_v24 = vcombine.low %v410_v28, %v410_v28  ;;  %v1571_v34 = vrot.slane %v1569_v8, 4 }
  0x4f   : > { %v396_v6 = vsel %vm4801_vm5, 0, %v309_v19  ;;  %v1574_v50 = vrot.slane %v1572_v9, 5  ;;  %620 = vst.msk [vmem:[#allocation2 + $0x6c] sm:$0xf] %vm231_vm1, %v3683_v49  ;;  %621 = vst.msk [vmem:[#allocation2 + $0x70] sm:$0xf] %vm231_vm1, %v3684_v22  ;;  %v226_v9 = vpack.c.bf16 %v206_v27, %v205_v31  ;;  %v227_v14 = vpack.c.bf16 %v208_v45, %v207_v42 }
  0x50   : > { %v3686_v5 = vcombine.low %v396_v6, %v396_v6  ;;  %v3687_v39 = vcombine.high %v396_v6, %v396_v6  ;;  %v1561_v36 = vor.u32 %v1560_v21, %v1556_v3  ;;  %v1552_v23 = vrot.slane %v1551_v29, 4  ;;  %619 = vst.msk [vmem:[#allocation2 + $0x68] sm:$0x1] %vm234_vm2, %v3682_v24  ;;  %v211_v49 = vld [vmem:[%s4770_s25 + $0xe0] sm:$0xff] }
  0x51   : > { %v1578_v48 = vshll.u32 %v5049_v57, 16  ;;  %v1584_v26 = vrot.slane %v1582_v11, 4  ;;  %v311_v32 = vshrl.u32 %v225_v62, 16  ;;  %v1575_v38 = vor.u32 %v1574_v50, %v1571_v34 }
  0x52   : > { %623 = vst.msk [vmem:[#allocation2 + $0x78] sm:$0xf] %vm231_vm1, %v3686_v5  ;;  %624 = vst.msk [vmem:[#allocation2 + $0x7c] sm:$0xf] %vm231_vm1, %v3687_v39  ;;  %v5092_v33 = vld [vmem:[#allocation2 + $0x5c] sm:$0x1]  ;;  %v228_v1 = vpack.c.bf16 %v210_v56, %v209_v54  ;;  %v1557_v46 = vsel %vm4922_vm12, %v1552_v23, %v1556_v3 }
  0x53   : > { %6129 = vst [vmem:[#allocation13_spill] sm:$0xff] %v5092_v33  ;;  %v314_v8 = vshll.u32 %v225_v62, 16  ;;  %v1562_v12 = vrot.slane %v1561_v36, 4  ;;  %v1564_v20 = vshll.u32 %v5092_v33, 16  ;;  %v1580_v13 = vrot.slane %v1578_v48, 5  ;;  %v212_v62 = vld [vmem:[%s4770_s25 + $0xe8] sm:$0xff] }
  0x54   : > { %v5095_v55 = vrot.slane %v311_v32, 7  ;;  %v318_v11 = vshrl.u32 %v226_v9, 16  ;;  %v1576_v22 = vrot.slane %v1575_v38, 4  ;;  %v321_v6 = vshll.u32 %v226_v9, 16  ;;  %v213_v23 = vld [vmem:[%s4770_s25 + $0xf0] sm:$0xff] }
  0x55   : > { %v1566_v19 = vrot.slane %v1564_v20, 5  ;;  %v1585_v21 = vor.u32 %v1584_v26, %v1580_v13  ;;  %v325_v24 = vshrl.u32 %v227_v14, 16  ;;  %v332_v27 = vshrl.u32 %v228_v1, 16 }
  0x56   : > { %v316_v28 = vor.u32 %v314_v8, %v5095_v55  ;;  %v5102_v29 = vrot.slane %v318_v11, 7  ;;  %v5104_v34 = vld [vmem:[#allocation2 + $0x6c] sm:$0xf]  ;;  %v5106_v50 = vld [vmem:[#allocation2 + $0x70] sm:$0xf]  ;;  %v328_v42 = vshll.u32 %v227_v14, 16  ;;  %v229_v45 = vpack.c.bf16 %v212_v62, %v211_v49 }
  0x57   : > { %6130 = vst [vmem:[#allocation14_spill] sm:$0xff] %v5104_v34  ;;  %6131 = vst [vmem:[#allocation15_spill] sm:$0xff] %v5106_v50  ;;  %v1567_v3 = vsel %vm4922_vm12, %v1562_v12, %v1566_v19  ;;  %v5114_v5 = vcombine.low %v5104_v34, %v5106_v50  ;;  %v5116_v39 = vld [vmem:[#allocation2 + $0x68] sm:$0x1]  ;;  %v1586_v36 = vrot.slane %v1585_v21, 4  ;;  %v214_v8 = vld [vmem:[%s4770_s25 + $0xf8] sm:$0xff]  ;;  %v1581_v12 = vsel %vm4922_vm12, %v1576_v22, %v1580_v13 }
  0x58   : > { %v397_v31 = vsel %vm4801_vm5, 0, %v316_v28  ;;  %6132 = vst [vmem:[#allocation16_spill] sm:$0xff] %v5116_v39  ;;  %v5123_v32 = vcombine.low %v1557_v46, %v1567_v3  ;;  %v1588_v54 = vshll.u32 %v5116_v39, 16  ;;  %v323_v11 = vor.u32 %v321_v6, %v5102_v29  ;;  %v5266_v39 = vld [vmem:[#allocation2 + $0x4] sm:$0xf] }
  0x59   : > { %v5119_v48 = vld [vmem:[#allocation2 + $0x78] sm:$0xf]  ;;  %v5121_v26 = vld [vmem:[#allocation2 + $0x7c] sm:$0xf]  ;;  %v3689_v56 = vcombine.low %v397_v31, %v397_v31  ;;  %v3690_v38 = vcombine.high %v397_v31, %v397_v31  ;;  %4106 = vmatprep.mubr.msk.bf16.mxu1 %vm781_vm8, %v5114_v5  ;;  %v5140_v14 = vrot.slane %v325_v24, 7  ;;  %v5142_v46 = vrot.slane %v332_v27, 7 }
  0x5a   : > { %6133 = vst [vmem:[#allocation17_spill] sm:$0xff] %v5119_v48  ;;  %6134 = vst [vmem:[#allocation18_spill] sm:$0xff] %v5121_v26  ;;  %v5131_v9 = vcombine.low %v5119_v48, %v5121_v26  ;;  %4238 = vmatprep.mubr.msk.bf16.mxu0 %vm781_vm8, %v5123_v32  ;;  %v1590_v20 = vrot.slane %v1588_v54, 5  ;;  %v1593_v19 = vshrl.u32 %v5104_v34, 16  ;;  %v335_v13 = vshll.u32 %v228_v1, 16 }
  0x5b   : > { %6135 = vst [vmem:[#allocation19_spill] sm:$0xff] %v5123_v32  ;;  %626 = vst.msk [vmem:[#allocation2 + $0x84] sm:$0xf] %vm231_vm1, %v3689_v56  ;;  %v339_v21 = vshrl.u32 %v229_v45, 16  ;;  %v230_v28 = vpack.c.bf16 %v214_v8, %v213_v23  ;;  %v398_v62 = vsel %vm4801_vm5, 0, %v323_v11  ;;  %v330_v22 = vor.u32 %v328_v42, %v5140_v14 }
  0x5c   : > { %6136 = vst [vmem:[#allocation20_spill] sm:$0xff] %v5131_v9  ;;  %627 = vst.msk [vmem:[#allocation2 + $0x88] sm:$0xf] %vm231_vm1, %v3690_v38  ;;  %4107 = vmatmul.mubr.msk.bf16.gmra.mrb[16].mxu1 %vm781_vm8, %v5131_v9  ;;  %v1591_v49 = vsel %vm4922_vm12, %v1586_v36, %v1590_v20  ;;  %v342_v6 = vshll.u32 %v229_v45, 16  ;;  %v3692_v3 = vcombine.low %v398_v62, %v398_v62  ;;  %v1596_v54 = vshll.u32 %v5104_v34, 16 }
  0x5d   : > { %v5152_v24 = vcombine.low %v1581_v12, %v1591_v49  ;;  %v3693_v31 = vcombine.high %v398_v62, %v398_v62  ;;  %v337_v27 = vor.u32 %v335_v13, %v5142_v46  ;;  %v399_v1 = vsel %vm4801_vm5, 0, %v330_v22 }
  0x5e   : > { %v5158_v23 = vrot.slane %v339_v21, 7  ;;  %v346_v36 = vshrl.u32 %v230_v28, 16  ;;  %629 = vst.msk [vmem:[#allocation2 + $0x90] sm:$0xf] %vm231_vm1, %v3692_v3  ;;  %v3695_v42 = vcombine.low %v399_v1, %v399_v1  ;;  %v3696_v45 = vcombine.high %v399_v1, %v399_v1 }
  0x5f   : > { %6137 = vst [vmem:[#allocation21_spill] sm:$0xff] %v5152_v24  ;;  %4239 = vmatmul.mubr.msk.bf16.gmra.mrb[12].mxu0 %vm781_vm8, %v5152_v24  ;;  %630 = vst.msk [vmem:[#allocation2 + $0x94] sm:$0xf] %vm231_vm1, %v3693_v31  ;;  %v400_v56 = vsel %vm4801_vm5, 0, %v337_v27  ;;  %v349_v38 = vshll.u32 %v230_v28, 16  ;;  %v1606_v13 = vshrl.u32 %v5106_v50, 16 }
  0x60   : > { %4260 = vmatprep.mubr.msk.bf16.mxu0 %vm781_vm8, %v4964_v16  ;;  %v3698_v8 = vcombine.low %v400_v56, %v400_v56  ;;  %v3699_v12 = vcombine.high %v400_v56, %v400_v56  ;;  %v344_v20 = vor.u32 %v342_v6, %v5158_v23  ;;  %v5169_v11 = vrot.slane %v346_v36, 7  ;;  %632 = vst.msk [vmem:[#allocation2 + $0x9c] sm:$0xf] %vm231_vm1, %v3695_v42 }
  0x61   : > { %v2740_v62 = vsel %vm830_vm0, %v4977_v63, 0  ;;  %633 = vst.msk [vmem:[#allocation2 + $0xa0] sm:$0xf] %vm231_vm1, %v3696_v45  ;;  %v1617_v28 = vshrl.u32 %v5119_v48, 16  ;;  %v1620_v22 = vshll.u32 %v5119_v48, 16  ;;  %v5190_v3 = vsel %vm830_vm0, %v4879_v51, 0 }
  0x62   : > { %v5172_v21 = vld [vmem:[#allocation2 + $0x84] sm:$0xf]  ;;  %635 = vst.msk [vmem:[#allocation2 + $0xa8] sm:$0xf] %vm231_vm1, %v3698_v8  ;;  %636 = vst.msk [vmem:[#allocation2 + $0xac] sm:$0xf] %vm231_vm1, %v3699_v12  ;;  %v351_v31 = vor.u32 %v349_v38, %v5169_v11 }
  0x63   : > { %v5174_v49 = vld [vmem:[#allocation2 + $0x88] sm:$0xf]  ;;  %v401_v63 = vsel %vm4801_vm5, 0, %v344_v20  ;;  %v411_v27 = vsel %vm4801_vm5, %v5051_v58, 0  ;;  %v1595_v1 = vrot.slane %v1593_v19, 4  ;;  %v1598_v56 = vrot.slane %v1596_v54, 5 }
  0x64   : > { %v5184_v6 = vcombine.low %v5172_v21, %v5174_v49  ;;  %v3701_v36 = vcombine.low %v401_v63, %v401_v63  ;;  %v3702_v42 = vcombine.high %v401_v63, %v401_v63  ;;  %v3685_v45 = vcombine.low %v411_v27, %v411_v27 }
  0x65   : > { %v402_v51 = vsel %vm4801_vm5, 0, %v351_v31  ;;  %v1602_v8 = vshll.u32 %v5106_v50, 16  ;;  %v1608_v12 = vrot.slane %v1606_v13, 4  ;;  %v412_v38 = vsel %vm4801_vm5, %v5062_v41, 0  ;;  %v5206_v20 = vld [vmem:[#allocation2 + $0x90] sm:$0xf] }
  0x66   : > { %6138 = vst [vmem:[#allocation22_spill] sm:$0xff] %v5184_v6  ;;  %4110 = vmatprep.mubr.msk.bf16.mxu1 %vm781_vm8, %v5184_v6  ;;  %6139 = vst [vmem:[#allocation23_spill] sm:$0xff] %v5206_v20  ;;  %v5208_v58 = vld [vmem:[#allocation2 + $0x94] sm:$0xf]  ;;  %v3704_v19 = vcombine.low %v402_v51, %v402_v51  ;;  %v3705_v54 = vcombine.high %v402_v51, %v402_v51  ;;  %v1599_v63 = vor.u32 %v1598_v56, %v1595_v1  ;;  %v5216_v13 = vld [vmem:[%s6066_s1 + $0xa] sm:$0x3] }
  0x67   : > { %638 = vst.msk [vmem:[#allocation2 + $0xb4] sm:$0xf] %vm231_vm1, %v3701_v36  ;;  %639 = vst.msk [vmem:[#allocation2 + $0xb8] sm:$0xf] %vm231_vm1, %v3702_v42  ;;  %v3688_v31 = vcombine.low %v412_v38, %v412_v38  ;;  %v1630_v41 = vshrl.u32 %v5121_v26, 16  ;;  %v1641_v27 = vshrl.u32 %v5172_v21, 16  ;;  %v5223_v36 = vcombine.low %v5206_v20, %v5208_v58  ;;  %4261 = vmatmul.mubr.msk.bf16.vlgmr.msra.gmra.mrb[0].mxu0 %vm781_vm8, %v4998_v53 }
  0x68   : > { %622 = vst.msk [vmem:[#allocation2 + $0x74] sm:$0x1] %vm234_vm2, %v3685_v45  ;;  %v1644_v4 = vshll.u32 %v5172_v21, 16  ;;  %v1654_v1 = vshrl.u32 %v5174_v49, 16  ;;  %4293 = vmatpush3.bf16.msra.mxu0 %v2740_v62  ;;  %v5228_v42 = vld [vmem:[#allocation2 + $0x9c] sm:$0xf]  ;;  %4264 = vmatprep.mubr.msk.bf16.mxu0 %vm781_vm8, %v5015_v10 }
  0x69   : > { %6140 = vst [vmem:[#allocation24_spill] sm:$0xff] %v5223_v36  ;;  %v5230_v45 = vld [vmem:[#allocation2 + $0xa0] sm:$0xf]  ;;  %641 = vst.msk [vmem:[#allocation2 + $0xc0] sm:$0xf] %vm231_vm1, %v3704_v19  ;;  %v5236_v56 = vrot.slane %v1602_v8, 5  ;;  %4111 = vmatmul.mubr.msk.bf16.gmra.mrb[20].mxu1 %vm781_vm8, %v5223_v36  ;;  %4660 = vmatprep.subr.msk.bf16.mxu0 %vm830_vm0, %v5216_v13 }
  0x6a   : > { %642 = vst.msk [vmem:[#allocation2 + $0xc4] sm:$0xf] %vm231_vm1, %v3705_v54  ;;  %v1665_v62 = vshrl.u32 %v5206_v20, 16  ;;  %v1668_v51 = vshll.u32 %v5206_v20, 16  ;;  %v5246_v10 = vcombine.low %v5228_v42, %v5230_v45  ;;  %v5251_v19 = vld [vmem:[#allocation2 + $0xa8] sm:$0xf] }
  0x6b   : > { %625 = vst.msk [vmem:[#allocation2 + $0x80] sm:$0x1] %vm234_vm2, %v3688_v31  ;;  %v5253_v54 = vld [vmem:[#allocation2 + $0xac] sm:$0xf]  ;;  %v5255_v31 = vrot.slane %v1599_v63, 4  ;;  %v1609_v53 = vor.u32 %v1608_v12, %v5236_v56  ;;  %v1619_v48 = vrot.slane %v1617_v28, 4 }
  0x6c   : > { %6141 = vst [vmem:[#allocation25_spill] sm:$0xff] %v5246_v10  ;;  %4114 = vmatprep.mubr.msk.bf16.mxu1 %vm781_vm8, %v5246_v10  ;;  %v1622_v34 = vrot.slane %v1620_v22, 5  ;;  %v1626_v63 = vshll.u32 %v5121_v26, 16  ;;  %v413_v12 = vsel %vm4801_vm5, %v5095_v55, 0  ;;  %v5274_v38 = vcombine.low %v5251_v19, %v5253_v54 }
  0x6d   : > { %v3691_v8 = vcombine.low %v413_v12, %v413_v12  ;;  %v1610_v33 = vrot.slane %v1609_v53, 4  ;;  %v1632_v57 = vrot.slane %v1630_v41, 4  ;;  %v3740_v53 = vcombine.low %v5262_v59, %v5266_v39 }
  0x6e   : > { %6142 = vst [vmem:[#allocation26_spill] sm:$0xff] %v5274_v38  ;;  %v5276_v16 = vld [vmem:[#allocation2 + $0xb4] sm:$0xf]  ;;  %v5278_v28 = vld [vmem:[#allocation2 + $0xb8] sm:$0xf]  ;;  %v1623_v36 = vor.u32 %v1622_v34, %v1619_v48  ;;  %v1605_v41 = vsel %vm4922_vm12, %v5255_v31, %v5236_v56  ;;  %v1628_v48 = vrot.slane %v1626_v63, 5 }
  0x6f   : > { %v5280_v22 = vld [vmem:[#allocation2 + $0x74] sm:$0x1]  ;;  %v5285_v26 = vcombine.low %v5276_v16, %v5278_v28  ;;  %4265 = vmatmul.mubr.msk.bf16.gmra.mrb[4].mxu0 %vm781_vm8, %v5043_v15  ;;  %628 = vst.msk [vmem:[#allocation2 + $0x8c] sm:$0x1] %vm234_vm2, %v3691_v8  ;;  %v1643_v55 = vrot.slane %v1641_v27, 4  ;;  %v1650_v15 = vshll.u32 %v5174_v49, 16 }
  0x70   : > { %6143 = vst [vmem:[#allocation27_spill] sm:$0xff] %v5280_v22  ;;  %v1612_v30 = vshll.u32 %v5280_v22, 16  ;;  %v5293_v12 = vld [vmem:[#allocation2 + $0xc0] sm:$0xf]  ;;  %4268 = vmatprep.mubr.msk.bf16.mxu0 %vm781_vm8, %v5067_v0  ;;  %v1646_v0 = vrot.slane %v1644_v4, 5  ;;  %v1656_v22 = vrot.slane %v1654_v1, 4 }
  0x71   : > { %6144 = vst [vmem:[#allocation28_spill] sm:$0xff] %v5285_v26  ;;  %v5295_v50 = vld [vmem:[#allocation2 + $0xc4] sm:$0xf]  ;;  %4115 = vmatmul.mubr.msk.bf16.gmra.mrb[24].mxu1 %vm781_vm8, %v5274_v38  ;;  %v414_v56 = vsel %vm4801_vm5, %v5102_v29, 0  ;;  %v1624_v63 = vrot.slane %v1623_v36, 4  ;;  %v5321_v6 = vrot.slane %v1650_v15, 5 }
  0x72   : > { %v5305_v10 = vld [vmem:[#allocation2 + $0x80] sm:$0x1]  ;;  %v1614_v34 = vrot.slane %v1612_v30, 5  ;;  %4118 = vmatprep.mubr.msk.bf16.mxu1 %vm781_vm8, %v5285_v26  ;;  %v5319_v30 = vcombine.low %v5293_v12, %v5295_v50  ;;  %v1647_v38 = vor.u32 %v1646_v0, %v1643_v55  ;;  %v3694_v4 = vcombine.low %v414_v56, %v414_v56 }
  0x73   : > { %6145 = vst [vmem:[#allocation29_spill] sm:$0xff] %v5305_v10  ;;  %v1636_v8 = vshll.u32 %v5305_v10, 16  ;;  %v1633_v10 = vor.u32 %v1632_v57, %v1628_v48  ;;  %v1667_v17 = vrot.slane %v1665_v62, 4  ;;  %v1670_v1 = vrot.slane %v1668_v51, 5 }
  0x74   : > { %v1674_v9 = vshll.u32 %v5208_v58, 16  ;;  %v1615_v29 = vsel %vm4922_vm12, %v1610_v33, %v1614_v34  ;;  %v1657_v20 = vor.u32 %v1656_v22, %v5321_v6  ;;  %631 = vst.msk [vmem:[#allocation2 + $0x98] sm:$0x1] %vm234_vm2, %v3694_v4  ;;  %v6146_v57 = vshrl.u32 %v5208_v58, 16 }
  0x75   : > { %v1638_v27 = vrot.slane %v1636_v8, 5  ;;  %v1634_v26 = vrot.slane %v1633_v10, 4  ;;  %v415_v10 = vsel %vm4801_vm5, %v5140_v14, 0  ;;  %v2055_v15 = vshrl.u32 %v5293_v12, 16 }
  0x76   : > { %v5326_v31 = vld [vmem:[#allocation2 + $0x8c] sm:$0x1]  ;;  %v1680_v0 = vrot.slane %v6146_v57, 4  ;;  %v1648_v36 = vrot.slane %v1647_v38, 4  ;;  %v5339_v62 = vrot.slane %v1674_v9, 5  ;;  %v1629_v51 = vsel %vm4922_vm12, %v1624_v63, %v1628_v48 }
  0x77   : > { %4269 = vmatmul.mubr.msk.bf16.gmra.mrb[8].mxu0 %vm781_vm8, %v5123_v32  ;;  %v1660_v33 = vshll.u32 %v5326_v31, 16  ;;  %v1639_v22 = vsel %vm4922_vm12, %v1634_v26, %v1638_v27  ;;  %v1671_v14 = vor.u32 %v1670_v1, %v1667_v17  ;;  %v3697_v55 = vcombine.low %v415_v10, %v415_v10 }
  0x78   : > { %4272 = vmatprep.mubr.msk.bf16.mxu0 %vm781_vm8, %v5152_v24  ;;  %v5349_v34 = vcombine.low %v1605_v41, %v1615_v29  ;;  %v1658_v38 = vrot.slane %v1657_v20, 4  ;;  %v6148_v9 = vshrl.u32 %v5228_v42, 16  ;;  %v1681_v4 = vor.u32 %v1680_v0, %v5339_v62 }
  0x79   : > { %4119 = vmatmul.mubr.msk.bf16.gmra.mrb[28].mxu1 %vm781_vm8, %v5319_v30  ;;  %v1662_v8 = vrot.slane %v1660_v33, 5  ;;  %634 = vst.msk [vmem:[#allocation2 + $0xa4] sm:$0x1] %vm234_vm2, %v3697_v55  ;;  %v6149_v26 = vshll.u32 %v5228_v42, 16  ;;  %v1698_v48 = vshll.u32 %v5230_v45, 16  ;;  %v416_v41 = vsel %vm4801_vm5, %v5142_v46, 0 }
  0x7a   : > { %6147 = vst [vmem:[#allocation30_spill] sm:$0xff] %v5349_v34  ;;  %v1691_v56 = vrot.slane %v6148_v9, 4  ;;  %4124 = vmatprep.mubr.msk.bf16.mxu1 %vm781_vm8, %v3740_v53  ;;  %v5362_v20 = vcombine.low %v1629_v51, %v1639_v22  ;;  %v1653_v63 = vsel %vm4922_vm12, %v1648_v36, %v5321_v6  ;;  %v6151_v53 = vshrl.u32 %v5230_v45, 16 }
  0x7b   : > { %v1694_v17 = vrot.slane %v6149_v26, 5  ;;  %v3700_v1 = vcombine.low %v416_v41, %v416_v41  ;;  %v1672_v29 = vrot.slane %v1671_v14, 4  ;;  %v5369_v0 = vrot.slane %v1698_v48, 5  ;;  %v5373_v55 = vld [vmem:[#allocation2 + $0x98] sm:$0x1] }
  0x7c   : > { %6150 = vst [vmem:[#allocation31_spill] sm:$0xff] %v5362_v20  ;;  %v1704_v27 = vrot.slane %v6151_v53, 4  ;;  %v6152_v10 = vshrl.u32 %v5251_v19, 16  ;;  %v6153_v46 = vshll.u32 %v5251_v19, 16  ;;  %v1722_v6 = vshll.u32 %v5253_v54, 16 }
  0x7d   : > { %v1695_v57 = vor.u32 %v1694_v17, %v1691_v56  ;;  %637 = vst.msk [vmem:[#allocation2 + $0xb0] sm:$0x1] %vm234_vm2, %v3700_v1  ;;  %v6154_v36 = vshrl.u32 %v5253_v54, 16  ;;  %v417_v14 = vsel %vm4801_vm5, %v5158_v23, 0  ;;  %v1663_v9 = vsel %vm4922_vm12, %v1658_v38, %v1662_v8 }
  0x7e   : > { %v1715_v33 = vrot.slane %v6152_v10, 4  ;;  %v1718_v51 = vrot.slane %v6153_v46, 5  ;;  %v1682_v56 = vrot.slane %v1681_v4, 4  ;;  %v1684_v26 = vshll.u32 %v5373_v55, 16  ;;  %v5404_v4 = vld [vmem:[%s6066_s1 + $0x2] sm:$0x3] }
  0x7f   : > { %v1728_v22 = vrot.slane %v6154_v36, 4  ;;  %v3703_v17 = vcombine.low %v417_v14, %v417_v14  ;;  %v2058_v48 = vshll.u32 %v5293_v12, 16  ;;  %4273 = vmatmul.mubr.msk.bf16.gmra.mrb[12].mxu0 %vm781_vm8, %v5349_v34  ;;  %v1705_v41 = vor.u32 %v1704_v27, %v5369_v0 }
  0x80   : > { %v1719_v53 = vor.u32 %v1718_v51, %v1715_v33  ;;  %v5391_v1 = vrot.slane %v1722_v6, 5  ;;  %v2068_v10 = vshrl.u32 %v5295_v50, 16  ;;  %4276 = vmatprep.mubr.msk.bf16.mxu0 %vm781_vm8, %v5362_v20  ;;  %v1677_v23 = vsel %vm4922_vm12, %v1672_v29, %v5339_v62  ;;  %v5410_v33 = vld [vmem:[#allocation2 + $0xa4] sm:$0x1] }
  0x81   : > { %v1686_v38 = vrot.slane %v1684_v26, 5  ;;  %640 = vst.msk [vmem:[#allocation2 + $0xbc] sm:$0x1] %vm234_vm2, %v3703_v17  ;;  %v1746_v8 = vshll.u32 %v5278_v28, 16  ;;  %4125 = vmatmul.mubr.msk.bf16.vlgmr.msra.gmra.mrb[0].mxu1 %vm781_vm8, %v4866_v40  ;;  %v5408_v27 = vcombine.low %v1653_v63, %v1663_v9  ;;  %v1696_v46 = vrot.slane %v1695_v57, 4 }
  0x82   : > { %v1729_v62 = vor.u32 %v1728_v22, %v5391_v1  ;;  %v6156_v29 = vshrl.u32 %v5276_v16, 16  ;;  %4128 = vmatprep.mubr.msk.bf16.mxu1 %vm781_vm8, %v4883_v52  ;;  %4157 = vmatpush3.bf16.msra.mxu1 %v5190_v3  ;;  %v1708_v40 = vshll.u32 %v5410_v33, 16  ;;  %v6157_v63 = vshll.u32 %v5276_v16, 16  ;;  %v5430_v3 = vld [vmem:[#allocation2 + $0xcc] sm:$0xf] }
  0x83   : > { %6155 = vst [vmem:[#allocation32_spill] sm:$0xff] %v5408_v27  ;;  %v1687_v6 = vsel %vm4922_vm12, %v1682_v56, %v1686_v38  ;;  %v418_v57 = vsel %vm4801_vm5, %v5169_v11, 0  ;;  %v1706_v22 = vrot.slane %v1705_v41, 4  ;;  %v1720_v14 = vrot.slane %v1719_v53, 4  ;;  %6159 = vst [vmem:[#allocation33_spill] sm:$0xff] %v5430_v3  ;;  %4655 = vmatprep.subr.msk.bf16.mxu1 %vm830_vm0, %v5404_v4 }
  0x84   : > { %v1739_v51 = vrot.slane %v6156_v29, 4  ;;  %v1742_v36 = vrot.slane %v6157_v63, 5  ;;  %v5426_v9 = vrot.slane %v1746_v8, 5  ;;  %v6158_v26 = vshrl.u32 %v5278_v28, 16  ;;  %v5436_v29 = vld [vmem:[#allocation2 + $0xb0] sm:$0x1] }
  0x85   : > { %v5434_v56 = vcombine.low %v1677_v23, %v1687_v6  ;;  %v1710_v38 = vrot.slane %v1708_v40, 5  ;;  %v1730_v63 = vrot.slane %v1729_v62, 4  ;;  %v3706_v37 = vcombine.low %v418_v57, %v418_v57 }
  0x86   : > { %v1752_v17 = vrot.slane %v6158_v26, 4  ;;  %v1732_v11 = vshll.u32 %v5436_v29, 16  ;;  %v2057_v41 = vrot.slane %v2055_v15, 4  ;;  %v2060_v53 = vrot.slane %v2058_v48, 5  ;;  %v5442_v26 = vld [vmem:[#allocation2 + $0xd0] sm:$0xf] }
  0x87   : > { %6160 = vst [vmem:[#allocation34_spill] sm:$0xff] %v5434_v56  ;;  %v2064_v8 = vshll.u32 %v5295_v50, 16  ;;  %v1701_v23 = vsel %vm4922_vm12, %v1696_v46, %v5369_v0  ;;  %643 = vst.msk [vmem:[#allocation2 + $0xc8] sm:$0x1] %vm234_vm2, %v3706_v37  ;;  %v2070_v6 = vrot.slane %v2068_v10, 4  ;;  %v2283_v62 = vshrl.u32 %v5430_v3, 16  ;;  %4277 = vmatmul.mubr.msk.bf16.gmra.mrb[16].mxu0 %vm781_vm8, %v5408_v27 }
  0x88   : > { %v1734_v40 = vrot.slane %v1732_v11, 5  ;;  %v5451_v57 = vld [vmem:[#allocation2 + $0xbc] sm:$0x1]  ;;  %v1743_v15 = vor.u32 %v1742_v36, %v1739_v51  ;;  %v1753_v48 = vor.u32 %v1752_v17, %v5426_v9  ;;  %4280 = vmatprep.mubr.msk.bf16.mxu0 %vm781_vm8, %v5434_v56  ;;  %v1711_v0 = vsel %vm4922_vm12, %v1706_v22, %v1710_v38 }
  0x89   : > { %v2066_v20 = vrot.slane %v2064_v8, 5  ;;  %v1756_v10 = vshll.u32 %v5451_v57, 16  ;;  %v2286_v46 = vshll.u32 %v5430_v3, 16  ;;  %v2292_v37 = vshll.u32 %v5442_v26, 16  ;;  %4129 = vmatmul.mubr.msk.bf16.gmra.mrb[4].mxu1 %vm781_vm8, %v4890_v60  ;;  %v5475_v3 = vld [vmem:[#allocation2 + $0xd4] sm:$0x1] }
  0x8a   : > { %v1725_v51 = vsel %vm4922_vm12, %v1720_v14, %v5391_v1  ;;  %v1735_v36 = vsel %vm4922_vm12, %v1730_v63, %v1734_v40  ;;  %v2061_v17 = vor.u32 %v2060_v53, %v2057_v41  ;;  %v2296_v11 = vshrl.u32 %v5442_v26, 16  ;;  %4132 = vmatprep.mubr.msk.bf16.mxu1 %vm781_vm8, %v4901_v2 }
  0x8b   : > { %v2071_v22 = vor.u32 %v2070_v6, %v2066_v20  ;;  %v2285_v38 = vrot.slane %v2283_v62, 4  ;;  %v2288_v8 = vrot.slane %v2286_v46, 5  ;;  %v5471_v56 = vcombine.low %v1701_v23, %v1711_v0 }
  0x8c   : > { %v2294_v27 = vrot.slane %v2292_v37, 5  ;;  %v2298_v34 = vrot.slane %v2296_v11, 4  ;;  %v5473_v24 = vcombine.low %v1725_v51, %v1735_v36  ;;  %v1744_v32 = vrot.slane %v1743_v15, 4 }
  0x8d   : > { %v1754_v1 = vrot.slane %v1753_v48, 4  ;;  %v1758_v14 = vrot.slane %v1756_v10, 5  ;;  %v2062_v41 = vrot.slane %v2061_v17, 4  ;;  %v2072_v53 = vrot.slane %v2071_v22, 4  ;;  %v4689_v17 = vld [vmem:[#allocation2 + $0x1c] sm:$0xf] }
  0x8e   : > { %v5477_v63 = vld [vmem:[#allocation2 + $0xc8] sm:$0x1]  ;;  %v2289_v6 = vor.u32 %v2288_v8, %v2285_v38  ;;  %v2299_v23 = vor.u32 %v2298_v34, %v2294_v27  ;;  %v2302_v62 = vshll.u32 %v5475_v3, 16  ;;  %v1749_v15 = vsel %vm4922_vm12, %v1744_v32, %v5426_v9 }
  0x8f   : > { %v2074_v40 = vshll.u32 %v5477_v63, 16  ;;  %4281 = vmatmul.mubr.msk.bf16.gmra.mrb[20].mxu0 %vm781_vm8, %v5471_v56  ;;  %v1759_v48 = vsel %vm4922_vm12, %v1754_v1, %v1758_v14  ;;  %v2067_v10 = vsel %vm4922_vm12, %v2062_v41, %v2066_v20  ;;  %v2531_v34 = vrot.slane %v5266_v39, 5  ;;  %v5499_v32 = vld [vmem:[#allocation2 + $0x8] sm:$0x1]  ;;  %v4690_v14 = vld [vmem:[#allocation2 + $0x18] sm:$0xf] }
  0x90   : > { %4284 = vmatprep.mubr.msk.bf16.mxu0 %vm781_vm8, %v5473_v24  ;;  %v2290_v37 = vrot.slane %v2289_v6, 4  ;;  %v5501_v9 = vcombine.low %v1749_v15, %v1759_v48  ;;  %v2300_v51 = vrot.slane %v2299_v23, 4  ;;  %v2304_v36 = vrot.slane %v2302_v62, 5  ;;  %v4691_v6 = vld [vmem:[#allocation2 + $0x20] sm:$0x1] }
  0x91   : > { %v2076_v0 = vrot.slane %v2074_v40, 5  ;;  %4133 = vmatmul.mubr.msk.bf16.gmra.mrb[8].mxu1 %vm781_vm8, %v4928_v25  ;;  %v2545_v11 = vrot.slane %v4689_v17, 5  ;;  %v3844_v20 = vrot.slane %v5262_v59, 9  ;;  %v2533_v38 = vrot.slane %v2531_v34, 4  ;;  %v4692_v62 = vld [vmem:[#allocation2 + $0x28] sm:$0xf] }
  0x92   : > { %4136 = vmatprep.mubr.msk.bf16.mxu1 %vm781_vm8, %v4939_v35  ;;  %v2534_v8 = vrot.slane %v5499_v32, 5  ;;  %v2295_v1 = vsel %vm4922_vm12, %v2290_v37, %v2294_v27  ;;  %v3846_v41 = vrot.slane %v4690_v14, 9  ;;  %v2548_v23 = vrot.slane %v4691_v6, 5  ;;  %v4694_v17 = vld [vmem:[#allocation2 + $0x2c] sm:$0x1] }
  0x93   : > { %v2077_v46 = vsel %vm4922_vm12, %v2072_v53, %v2076_v0  ;;  %v2305_v53 = vsel %vm4922_vm12, %v2300_v51, %v2304_v36  ;;  %v2547_v40 = vrot.slane %v2545_v11, 4  ;;  %v2552_v15 = vrot.slane %v4692_v62, 5  ;;  %v4695_v6 = vld [vmem:[#allocation2 + $0x34] sm:$0xf]  ;;  %v4696_v62 = vld [vmem:[#allocation2 + $0x30] sm:$0xf] }
  0x94   : > { %v5503_v22 = vcombine.low %v2067_v10, %v2077_v46  ;;  %v2532_v27 = vsel %vm4870_vm11, %v3844_v20, %v2531_v34  ;;  %v2535_v48 = vsel %vm4870_vm11, %v2533_v38, %v2534_v8  ;;  %v3827_v0 = vcombine.low %v2295_v1, %v2305_v53  ;;  %v4693_v46 = vld [vmem:[#allocation2 + $0x24] sm:$0xf] }
  0x95   : > { %v2546_v10 = vsel %vm4870_vm11, %v3846_v41, %v2545_v11  ;;  %v3847_v37 = vrot.slane %v4693_v46, 9  ;;  %v2549_v51 = vsel %vm4870_vm11, %v2547_v40, %v2548_v23  ;;  %v2554_v36 = vrot.slane %v2552_v15, 4  ;;  %v5536_v23 = vld [vmem:[#allocation2 + $0x40] sm:$0xf] }
  0x96   : > { %v2555_v14 = vrot.slane %v4694_v17, 5  ;;  %v2559_v34 = vrot.slane %v4695_v6, 5  ;;  %v3861_v20 = vcombine.low %v2532_v27, %v2535_v48  ;;  %v3848_v38 = vrot.slane %v4696_v62, 9 }
  0x97   : > { %4285 = vmatmul.mubr.msk.bf16.gmra.mrb[24].mxu0 %vm781_vm8, %v5501_v9  ;;  %v1377_v8 = vshrl.u32 %v5262_v59, 16  ;;  %v1380_v1 = vshll.u32 %v5262_v59, 16  ;;  %v1390_v53 = vshrl.u32 %v5266_v39, 16  ;;  %v2952_v11 = vsel %vm830_vm0, %v5216_v13, 0 }
  0x98   : > { %4288 = vmatprep.mubr.msk.bf16.mxu0 %vm781_vm8, %v5503_v22  ;;  %v5532_v41 = vcombine.low %v2546_v10, %v2549_v51  ;;  %v2553_v40 = vsel %vm4870_vm11, %v3847_v37, %v2552_v15  ;;  %v6112_v27 = vrot.slane %v5536_v23, 5  ;;  %v2556_v48 = vsel %vm4870_vm11, %v2554_v36, %v2555_v14  ;;  %v5547_v15 = vld [vmem:[#allocation2 + $0x3c] sm:$0xf]  ;;  %v5554_v51 = vld [vmem:[#allocation2 + $0x48] sm:$0xf] }
  0x99   : > { %4137 = vmatmul.mubr.msk.bf16.gmra.mrb[12].mxu1 %vm781_vm8, %v5038_v43  ;;  %v2561_v46 = vrot.slane %v2559_v34, 4  ;;  %v2562_v17 = vrot.slane %v4957_v61, 5  ;;  %v3855_v6 = vrot.slane %v5172_v21, 9  ;;  %v2560_v13 = vsel %vm4870_vm11, %v3848_v38, %v2559_v34  ;;  %v6161_v36 = vld [vmem:[#allocation23_spill] sm:$0xff] }
  0x9a   : > { %4140 = vmatprep.mubr.msk.bf16.mxu1 %vm781_vm8, %v5054_v7  ;;  %v2611_v21 = vrot.slane %v5326_v31, 5  ;;  %v3856_v14 = vrot.slane %v6161_v36, 9  ;;  %v2615_v34 = vrot.slane %v5208_v58, 5  ;;  %v5562_v62 = vcombine.low %v2553_v40, %v2556_v48 }
  0x9b   : > { %v2563_v31 = vsel %vm4870_vm11, %v2561_v46, %v2562_v17  ;;  %v2618_v61 = vrot.slane %v5373_v55, 5  ;;  %v3857_v48 = vrot.slane %v5228_v42, 9  ;;  %v2622_v10 = vrot.slane %v5230_v45, 5  ;;  %v5594_v45 = vld [vmem:[%s6066_s1 + $0x10] sm:$0x3] }
  0x9c   : > { %v2616_v36 = vsel %vm4870_vm11, %v3856_v14, %v2615_v34  ;;  %v2617_v58 = vrot.slane %v2615_v34, 4  ;;  %v3858_v17 = vrot.slane %v5251_v19, 9  ;;  %v2632_v42 = vrot.slane %v5436_v29, 5 }
  0x9d   : > { %v2623_v55 = vsel %vm4870_vm11, %v3857_v48, %v2622_v10  ;;  %v5604_v29 = vcombine.low %v2560_v13, %v2563_v31  ;;  %v6165_v13 = vld [vmem:[#allocation24_spill] sm:$0xff]  ;;  %v1382_v31 = vrot.slane %v1380_v1, 5  ;;  %v1386_v48 = vshll.u32 %v5266_v39, 16  ;;  %v4701_v1 = vld [vmem:[#allocation2 + $0x50] sm:$0x1] }
  0x9e   : > { %v2619_v46 = vsel %vm4870_vm11, %v2617_v58, %v2618_v61  ;;  %v3859_v61 = vrot.slane %v5276_v16, 9  ;;  %v6164_v58 = vld [vmem:[#allocation22_spill] sm:$0xff] }
  0x9f   : > { %4289 = vmatmul.mubr.msk.bf16.gmra.mrb[28].mxu0 %vm781_vm8, %v3827_v0  ;;  %v2608_v0 = vrot.slane %v5174_v49, 5  ;;  %v5566_v49 = vrot.slane %v6112_v27, 4  ;;  %v2625_v27 = vrot.slane %v5410_v33, 5  ;;  %v5586_v14 = vcombine.low %v2616_v36, %v2619_v46  ;;  %v6163_v33 = vld [vmem:[#allocation4_spill] sm:$0xff] }
  0xa0   : > { %4294 = vmatprep.mubr.msk.bf16.mxu0 %vm781_vm8, %v3861_v20  ;;  %v6162_v20 = vld [vmem:[#allocation20_spill] sm:$0xff]  ;;  %v2639_v36 = vrot.slane %v5451_v57, 5  ;;  %v1379_v57 = vrot.slane %v1377_v8, 4  ;;  %v2938_v8 = vrot.slane %v5295_v50, 5 }
  0xa1   : > { %4141 = vmatmul.mubr.msk.bf16.gmra.mrb[16].mxu1 %vm781_vm8, %v5114_v5  ;;  %v2609_v38 = vsel %vm4870_vm11, %v3855_v6, %v2608_v0  ;;  %v2610_v37 = vrot.slane %v2608_v0, 4  ;;  %v2629_v0 = vrot.slane %v5253_v54, 5 }
  0xa2   : > { %4144 = vmatprep.mubr.msk.bf16.mxu1 %vm781_vm8, %v6162_v20 }
  0xa3   : > { %v2612_v40 = vsel %vm4870_vm11, %v2610_v37, %v2611_v21  ;;  %v2624_v37 = vrot.slane %v2622_v10, 4  ;;  %v2630_v19 = vsel %vm4870_vm11, %v3858_v17, %v2629_v0  ;;  %v2631_v54 = vrot.slane %v2629_v0, 4  ;;  %v4700_v10 = vld [vmem:[#allocation2 + $0x4c] sm:$0xf] }
  0xa4   : > { %v5580_v6 = vcombine.low %v2609_v38, %v2612_v40  ;;  %v2636_v21 = vrot.slane %v5278_v28, 5  ;;  %v2573_v34 = vrot.slane %v4700_v10, 5  ;;  %v1392_v17 = vrot.slane %v1390_v53, 4 }
  0xa5   : > { %v2626_v38 = vsel %vm4870_vm11, %v2624_v37, %v2625_v27  ;;  %v2633_v16 = vsel %vm4870_vm11, %v2631_v54, %v2632_v42  ;;  %v1396_v0 = vshll.u32 %v5499_v32, 16  ;;  %v1383_v42 = vor.u32 %v1382_v31, %v1379_v57  ;;  %v6170_v57 = vld [vmem:[#allocation25_spill] sm:$0xff] }
  0xa6   : > { %v5611_v40 = vcombine.low %v2623_v55, %v2626_v38  ;;  %v2637_v28 = vsel %vm4870_vm11, %v3859_v61, %v2636_v21  ;;  %v5621_v27 = vcombine.low %v2630_v19, %v2633_v16  ;;  %v3893_v55 = vrot.slane %v5293_v12, 9 }
  0xa7   : > { %4295 = vmatmul.mubr.msk.bf16.vlgmr.msra.gmra.mrb[0].mxu0 %vm781_vm8, %v6163_v33  ;;  %v1388_v19 = vrot.slane %v1386_v48, 5  ;;  %v2575_v59 = vrot.slane %v2573_v34, 4  ;;  %v2576_v54 = vrot.slane %v4701_v1, 5  ;;  %v1398_v61 = vrot.slane %v1396_v0, 5  ;;  %v6173_v0 = vld [vmem:[#allocation26_spill] sm:$0xff] }
  0xa8   : > { %4327 = vmatpush3.bf16.msra.mxu0 %v2952_v11  ;;  %4298 = vmatprep.mubr.msk.bf16.mxu0 %vm781_vm8, %v5532_v41  ;;  %v2638_v11 = vrot.slane %v2636_v21, 4  ;;  %v2941_v21 = vrot.slane %v5477_v63, 5  ;;  %v1384_v10 = vrot.slane %v1383_v42, 4  ;;  %v2939_v39 = vsel %vm4870_vm11, %v3893_v55, %v2938_v8 }
  0xa9   : > { %4145 = vmatmul.mubr.msk.bf16.gmra.mrb[20].mxu1 %vm781_vm8, %v6164_v58  ;;  %4661 = vmatprep.subr.msk.bf16.mxu0 %vm830_vm0, %v5594_v45  ;;  %v1393_v38 = vor.u32 %v1392_v17, %v1388_v19  ;;  %v2940_v32 = vrot.slane %v2938_v8, 4  ;;  %v6166_v12 = vrot.slane %v5536_v23, 5  ;;  %v6167_v53 = vrot.slane %v5547_v15, 9 }
  0xaa   : > { %4148 = vmatprep.mubr.msk.bf16.mxu1 %vm781_vm8, %v6165_v13  ;;  %v2640_v46 = vsel %vm4870_vm11, %v2638_v11, %v2639_v36  ;;  %v6168_v36 = vld [vmem:[#allocation9_spill] sm:$0xff]  ;;  %v6169_v63 = vrot.slane %v4994_v47, 5  ;;  %v1389_v11 = vsel %vm4922_vm12, %v1384_v10, %v1388_v19  ;;  %v6171_v31 = vrot.slane %v5554_v51, 9 }
  0xab   : > { %v5634_v37 = vcombine.low %v2637_v28, %v2640_v46  ;;  %v2567_v50 = vsel %vm4870_vm11, %v6167_v53, %v6166_v12  ;;  %v2580_v16 = vrot.slane %v6168_v36, 5  ;;  %v1394_v23 = vrot.slane %v1393_v38, 4  ;;  %v6172_v46 = vld [vmem:[#allocation11_spill] sm:$0xff] }
  0xac   : > { %v2570_v28 = vsel %vm4870_vm11, %v5566_v49, %v6169_v63  ;;  %v2942_v15 = vsel %vm4870_vm11, %v2940_v32, %v2941_v21  ;;  %v2574_v48 = vsel %vm4870_vm11, %v6171_v31, %v2573_v34  ;;  %v2577_v47 = vsel %vm4870_vm11, %v2575_v59, %v2576_v54  ;;  %v4702_v34 = vld [vmem:[#allocation2 + $0x54] sm:$0xf]  ;;  %v6174_v59 = vld [vmem:[#allocation13_spill] sm:$0xff]  ;;  %v4703_v21 = vld [vmem:[#allocation2 + $0x60] sm:$0xf] }
  0xad   : > { %v2587_v49 = vrot.slane %v6172_v46, 5  ;;  %v5669_v17 = vcombine.low %v2939_v39, %v2942_v15  ;;  %v1399_v55 = vsel %vm4922_vm12, %v1394_v23, %v1398_v61  ;;  %v5675_v42 = vcombine.low %v2567_v50, %v2570_v28  ;;  %v6175_v39 = vld [vmem:[#allocation16_spill] sm:$0xff]  ;;  %v6176_v12 = vld [vmem:[#allocation15_spill] sm:$0xff]  ;;  %v6178_v28 = vld [vmem:[#allocation18_spill] sm:$0xff] }
  0xae   : > { %v5677_v19 = vcombine.low %v1389_v11, %v1399_v55  ;;  %v5679_v51 = vcombine.low %v2574_v48, %v2577_v47  ;;  %v3851_v8 = vrot.slane %v4702_v34, 9  ;;  %v2582_v1 = vrot.slane %v2580_v16, 4  ;;  %v6177_v50 = vld [vmem:[#allocation28_spill] sm:$0xff]  ;;  %v6179_v15 = vld [vmem:[#allocation14_spill] sm:$0xff]  ;;  %v6180_v47 = vld [vmem:[#allocation27_spill] sm:$0xff] }
  0xaf   : > { %4299 = vmatmul.mubr.msk.bf16.gmra.mrb[4].mxu0 %vm781_vm8, %v5562_v62  ;;  %v2583_v54 = vrot.slane %v6174_v59, 5  ;;  %v3852_v10 = vrot.slane %v4703_v21, 9  ;;  %v2589_v38 = vrot.slane %v2587_v49, 4  ;;  %v2590_v32 = vrot.slane %v6175_v39, 5  ;;  %v6181_v55 = vld [vmem:[#allocation17_spill] sm:$0xff] }
  0xb0   : > { %4302 = vmatprep.mubr.msk.bf16.mxu0 %vm781_vm8, %v5604_v29  ;;  %v2581_v18 = vsel %vm4870_vm11, %v3851_v8, %v2580_v16  ;;  %v2594_v53 = vrot.slane %v6176_v12, 5  ;;  %v2601_v11 = vrot.slane %v6178_v28, 5  ;;  %v3853_v31 = vrot.slane %v6179_v15, 9  ;;  %v6182_v8 = vld [vmem:[#allocation29_spill] sm:$0xff] }
  0xb1   : > { %4149 = vmatmul.mubr.msk.bf16.gmra.mrb[24].mxu1 %vm781_vm8, %v6170_v57  ;;  %v2584_v61 = vsel %vm4870_vm11, %v2582_v1, %v2583_v54  ;;  %v2588_v36 = vsel %vm4870_vm11, %v3852_v10, %v2587_v49  ;;  %v2591_v63 = vsel %vm4870_vm11, %v2589_v38, %v2590_v32  ;;  %v2597_v46 = vrot.slane %v6180_v47, 5  ;;  %v4704_v38 = vld [vmem:[%s6066_s1 + $0x8] sm:$0x3] }
  0xb2   : > { %4152 = vmatprep.mubr.msk.bf16.mxu1 %vm781_vm8, %v6173_v0  ;;  %v5701_v16 = vcombine.low %v2581_v18, %v2584_v61  ;;  %v5703_v23 = vcombine.low %v2588_v36, %v2591_v63  ;;  %v2596_v48 = vrot.slane %v2594_v53, 4  ;;  %v3854_v34 = vrot.slane %v6181_v55, 9 }
  0xb3   : > { %v2603_v49 = vrot.slane %v2601_v11, 4  ;;  %v2604_v1 = vrot.slane %v6182_v8, 5  ;;  %v2595_v59 = vsel %vm4870_vm11, %v3853_v31, %v2594_v53 }
  0xb4   : > { %v2598_v54 = vsel %vm4870_vm11, %v2596_v48, %v2597_v46  ;;  %v2602_v21 = vsel %vm4870_vm11, %v3854_v34, %v2601_v11 }
  0xb5   : > { %v2605_v10 = vsel %vm4870_vm11, %v2603_v49, %v2604_v1 }
  0xb6   : > { %v5733_v39 = vcombine.low %v2602_v21, %v2605_v10 }
  0xb7   : > { %4303 = vmatmul.mubr.msk.bf16.gmra.mrb[8].mxu0 %vm781_vm8, %v5675_v42 }
  0xb8   : > { %4306 = vmatprep.mubr.msk.bf16.mxu0 %vm781_vm8, %v5679_v51 }
  0xb9   : > { %4153 = vmatmul.mubr.msk.bf16.gmra.mrb[28].mxu1 %vm781_vm8, %v6177_v50 }
  0xba   : > { %4158 = vmatprep.mubr.msk.bf16.mxu1 %vm781_vm8, %v4883_v52  ;;  %v1859_v52 = vsel %vm830_vm0, %v5404_v4, 0  ;;  %v5727_v4 = vcombine.low %v2595_v59, %v2598_v54 }
  0xbf   : > { %4307 = vmatmul.mubr.msk.bf16.gmra.mrb[12].mxu0 %vm781_vm8, %v5701_v16 }
  0xc0   : > { %4310 = vmatprep.mubr.msk.bf16.mxu0 %vm781_vm8, %v5703_v23 }
  0xc1   : > { %4159 = vmatmul.mubr.msk.bf16.vlgmr.msra.gmra.mrb[0].mxu1 %vm781_vm8, %v4890_v60  ;;  %v3164_v60 = vsel %vm830_vm0, %v5594_v45, 0  ;;  %v6190_v45 = vld [vmem:[#allocation12_spill] sm:$0xff] }
  0xc2   : > { %4162 = vmatprep.mubr.msk.bf16.mxu1 %vm781_vm8, %v4901_v2  ;;  %4191 = vmatpush3.bf16.msra.mxu1 %v1859_v52  ;;  %v6183_v2 = vld [vmem:[#allocation33_spill] sm:$0xff] }
  0xc3   : > { %4657 = vmatprep.subr.msk.bf16.mxu1 %vm830_vm0, %v4704_v38 }
  0xc7   : > { %4311 = vmatmul.mubr.msk.bf16.gmra.mrb[16].mxu0 %vm781_vm8, %v5727_v4 }
  0xc8   : > { %4314 = vmatprep.mubr.msk.bf16.mxu0 %vm781_vm8, %v5733_v39 }
  0xc9   : > { %4163 = vmatmul.mubr.msk.bf16.gmra.mrb[4].mxu1 %vm781_vm8, %v4928_v25  ;;  %v3758_v25 = vcombine.low %v6183_v2, %v5442_v26 }
  0xca   : > { %4166 = vmatprep.mubr.msk.bf16.mxu1 %vm781_vm8, %v4939_v35  ;;  %v6184_v35 = vld [vmem:[#allocation5_spill] sm:$0xff] }
  0xcf   : > { %4315 = vmatmul.mubr.msk.bf16.gmra.mrb[20].mxu0 %vm781_vm8, %v5580_v6 }
  0xd0   : > { %4318 = vmatprep.mubr.msk.bf16.mxu0 %vm781_vm8, %v5586_v14 }
  0xd1   : > { %4167 = vmatmul.mubr.msk.bf16.gmra.mrb[8].mxu1 %vm781_vm8, %v5038_v43  ;;  %v6185_v43 = vld [vmem:[#allocation6_spill] sm:$0xff] }
  0xd2   : > { %4170 = vmatprep.mubr.msk.bf16.mxu1 %vm781_vm8, %v5054_v7  ;;  %v6186_v7 = vld [vmem:[#allocation3_spill] sm:$0xff] }
  0xd7   : > { %4319 = vmatmul.mubr.msk.bf16.gmra.mrb[24].mxu0 %vm781_vm8, %v5611_v40 }
  0xd8   : > { %4322 = vmatprep.mubr.msk.bf16.mxu0 %vm781_vm8, %v5621_v27 }
  0xd9   : > { %4171 = vmatmul.mubr.msk.bf16.gmra.mrb[12].mxu1 %vm781_vm8, %v5114_v5  ;;  %v6187_v5 = vld [vmem:[#allocation7_spill] sm:$0xff] }
  0xda   : > { %4174 = vmatprep.mubr.msk.bf16.mxu1 %vm781_vm8, %v6162_v20  ;;  %v6189_v20 = vld [vmem:[#allocation10_spill] sm:$0xff] }
  0xdf   : > { %4323 = vmatmul.mubr.msk.bf16.gmra.mrb[28].mxu0 %vm781_vm8, %v5634_v37 }
  0xe0   : > { %4328 = vmatprep.mubr.msk.bf16.mxu0 %vm781_vm8, %v6163_v33  ;;  %v6191_v33 = vld [vmem:[#allocation19_spill] sm:$0xff] }
  0xe1   : > { %4175 = vmatmul.mubr.msk.bf16.gmra.mrb[16].mxu1 %vm781_vm8, %v6164_v58  ;;  %v6192_v58 = vld [vmem:[#allocation21_spill] sm:$0xff] }
  0xe2   : > { %4178 = vmatprep.mubr.msk.bf16.mxu1 %vm781_vm8, %v6165_v13  ;;  %v6193_v13 = vld [vmem:[#allocation30_spill] sm:$0xff] }
  0xe7   : > { %4329 = vmatmul.mubr.msk.bf16.vlgmr.msra.gmra.mrb[0].mxu0 %vm781_vm8, %v5532_v41 }
  0xe8   : > { %4361 = vmatpush3.bf16.msra.mxu0 %v3164_v60  ;;  %4332 = vmatprep.mubr.msk.bf16.mxu0 %vm781_vm8, %v5562_v62 }
  0xe9   : > { %4179 = vmatmul.mubr.msk.bf16.gmra.mrb[20].mxu1 %vm781_vm8, %v6170_v57  ;;  %v6194_v57 = vld [vmem:[#allocation31_spill] sm:$0xff] }
  0xea   : > { %4182 = vmatprep.mubr.msk.bf16.mxu1 %vm781_vm8, %v6173_v0  ;;  %v6195_v0 = vld [vmem:[#allocation32_spill] sm:$0xff] }
  0xef   : > { %4333 = vmatmul.mubr.msk.bf16.gmra.mrb[4].mxu0 %vm781_vm8, %v5604_v29 }
  0xf0   : > { %4336 = vmatprep.mubr.msk.bf16.mxu0 %vm781_vm8, %v5675_v42 }
  0xf1   : > { %4183 = vmatmul.mubr.msk.bf16.gmra.mrb[24].mxu1 %vm781_vm8, %v6177_v50 }
  0xf2   : > { %4186 = vmatprep.mubr.msk.bf16.mxu1 %vm781_vm8, %v5319_v30  ;;  %v6188_v30 = vld [vmem:[#allocation8_spill] sm:$0xff] }
  0xf7   : > { %4337 = vmatmul.mubr.msk.bf16.gmra.mrb[8].mxu0 %vm781_vm8, %v5679_v51 }
  0xf8   : > { %4340 = vmatprep.mubr.msk.bf16.mxu0 %vm781_vm8, %v5701_v16 }
  0xf9   : > { %4187 = vmatmul.mubr.msk.bf16.gmra.mrb[28].mxu1 %vm781_vm8, %v3758_v25 }
  0xfa   : > { %4192 = vmatprep.mubr.msk.bf16.mxu1 %vm781_vm8, %v5677_v19  ;;  %v6196_v19 = vld [vmem:[#allocation34_spill] sm:$0xff] }
  0xff   : > { %4341 = vmatmul.mubr.msk.bf16.gmra.mrb[12].mxu0 %vm781_vm8, %v5703_v23 }
 0x100   : > { %4344 = vmatprep.mubr.msk.bf16.mxu0 %vm781_vm8, %v5727_v4 }
 0x101   : > { %4193 = vmatmul.mubr.msk.bf16.vlgmr.msra.gmra.mrb[0].mxu1 %vm781_vm8, %v6184_v35 }
 0x102   : > { %4196 = vmatprep.mubr.msk.bf16.mxu1 %vm781_vm8, %v6185_v43  ;;  %4395 = vmatpush3.bf16.msra.mxu1 %v6186_v7 }
 0x107   : > { %4345 = vmatmul.mubr.msk.bf16.gmra.mrb[16].mxu0 %vm781_vm8, %v5733_v39 }
 0x108   : > { %4348 = vmatprep.mubr.msk.bf16.mxu0 %vm781_vm8, %v5580_v6 }
 0x109   : > { %4197 = vmatmul.mubr.msk.bf16.gmra.mrb[4].mxu1 %vm781_vm8, %v6187_v5 }
 0x10a   : > { %4200 = vmatprep.mubr.msk.bf16.mxu1 %vm781_vm8, %v6188_v30 }
 0x10f   : > { %4349 = vmatmul.mubr.msk.bf16.gmra.mrb[20].mxu0 %vm781_vm8, %v5586_v14 }
 0x110   : > { %4352 = vmatprep.mubr.msk.bf16.mxu0 %vm781_vm8, %v5611_v40 }
 0x111   : > { %4201 = vmatmul.mubr.msk.bf16.gmra.mrb[8].mxu1 %vm781_vm8, %v6189_v20 }
 0x112   : > { %4204 = vmatprep.mubr.msk.bf16.mxu1 %vm781_vm8, %v6190_v45 }
 0x117   : > { %4353 = vmatmul.mubr.msk.bf16.gmra.mrb[24].mxu0 %vm781_vm8, %v5621_v27 }
 0x118   : > { %4356 = vmatprep.mubr.msk.bf16.mxu0 %vm781_vm8, %v5634_v37 }
 0x119   : > { %4205 = vmatmul.mubr.msk.bf16.gmra.mrb[12].mxu1 %vm781_vm8, %v6191_v33 }
 0x11a   : > { %4208 = vmatprep.mubr.msk.bf16.mxu1 %vm781_vm8, %v6192_v58 }
 0x11f   : > { %4357 = vmatmul.mubr.msk.bf16.gmra.mrb[28].mxu0 %vm781_vm8, %v5669_v17 }
 0x120   : > { %4362 = vmatprep.mubr.msk.bf16.mxu0 %vm781_vm8, %v5532_v41  ;;  %v3150_v41 = vrot.slane %v5442_v26, 5 }
 0x121   : > { %4209 = vmatmul.mubr.msk.bf16.gmra.mrb[16].mxu1 %vm781_vm8, %v6193_v13 }
 0x122   : > { %4212 = vmatprep.mubr.msk.bf16.mxu1 %vm781_vm8, %v6194_v57 }
 0x127   : > { %4363 = vmatmul.mubr.msk.bf16.vlgmr.msra.gmra.mrb[0].mxu0 %vm781_vm8, %v5562_v62  ;;  %v3912_v62 = vrot.slane %v6183_v2, 9 }
 0x128   : > { %4366 = vmatprep.mubr.msk.bf16.mxu0 %vm781_vm8, %v5604_v29 }
 0x129   : > { %4213 = vmatmul.mubr.msk.bf16.gmra.mrb[20].mxu1 %vm781_vm8, %v6195_v0 }
 0x12a   : > { %4216 = vmatprep.mubr.msk.bf16.mxu1 %vm781_vm8, %v6196_v19 }
 0x12f   : > { %4367 = vmatmul.mubr.msk.bf16.gmra.mrb[4].mxu0 %vm781_vm8, %v5675_v42 }
 0x130   : > { %4370 = vmatprep.mubr.msk.bf16.mxu0 %vm781_vm8, %v5679_v51 }
 0x131   : > { %4217 = vmatmul.mubr.msk.bf16.gmra.mrb[24].mxu1 %vm781_vm8, %v5471_v56 }
 0x132   : > { %4220 = vmatprep.mubr.msk.bf16.mxu1 %vm781_vm8, %v5473_v24 }
 0x137   : > { %4371 = vmatmul.mubr.msk.bf16.gmra.mrb[8].mxu0 %vm781_vm8, %v5701_v16 }
 0x138   : > { %4374 = vmatprep.mubr.msk.bf16.mxu0 %vm781_vm8, %v5703_v23 }
 0x139   : > { %4221 = vmatmul.mubr.msk.bf16.gmra.mrb[28].mxu1 %vm781_vm8, %v5501_v9 }
 0x13a   : > { %4242 = vmatprep.mubr.msk.bf16.mxu1 %vm781_vm8, %v6193_v13 }
 0x13f   : > { %4375 = vmatmul.mubr.msk.bf16.gmra.mrb[12].mxu0 %vm781_vm8, %v5727_v4 }
 0x140   : > { %4378 = vmatprep.mubr.msk.bf16.mxu0 %vm781_vm8, %v5733_v39 }
 0x141   : > { %4243 = vmatmul.mubr.msk.bf16.vlgmr.msra.gmra.mrb[16].mxu1 %vm781_vm8, %v6194_v57 }
 0x142   : > { %4246 = vmatprep.mubr.msk.bf16.mxu1 %vm781_vm8, %v6195_v0 }
 0x147   : > { %4379 = vmatmul.mubr.msk.bf16.gmra.mrb[16].mxu0 %vm781_vm8, %v5580_v6  ;;  %v3152_v6 = vrot.slane %v3150_v41, 4 }
 0x148   : > { %4382 = vmatprep.mubr.msk.bf16.mxu0 %vm781_vm8, %v5586_v14  ;;  %v3153_v14 = vrot.slane %v5475_v3, 5 }
 0x149   : > { %4247 = vmatmul.mubr.msk.bf16.gmra.mrb[20].mxu1 %vm781_vm8, %v6196_v19 }
 0x14a   : > { %4250 = vmatprep.mubr.msk.bf16.mxu1 %vm781_vm8, %v5471_v56  ;;  %v3151_v56 = vsel %vm4870_vm11, %v3912_v62, %v3150_v41 }
 0x14f   : > { %4383 = vmatmul.mubr.msk.bf16.gmra.mrb[20].mxu0 %vm781_vm8, %v5611_v40 }
 0x150   : > { %4386 = vmatprep.mubr.msk.bf16.mxu0 %vm781_vm8, %v5621_v27 }
 0x151   : > { %4251 = vmatmul.mubr.msk.bf16.gmra.mrb[24].mxu1 %vm781_vm8, %v5473_v24  ;;  %v3154_v24 = vsel %vm4870_vm11, %v3152_v6, %v3153_v14 }
 0x152   : > { %4254 = vmatprep.mubr.msk.bf16.mxu1 %vm781_vm8, %v5501_v9  ;;  %v3914_v26 = vcombine.low %v3151_v56, %v3154_v24 }
 0x157   : > { %4387 = vmatmul.mubr.msk.bf16.gmra.mrb[24].mxu0 %vm781_vm8, %v5634_v37 }
 0x158   : > { %4390 = vmatprep.mubr.msk.bf16.mxu0 %vm781_vm8, %v5669_v17 }
 0x159   : > { %4255 = vmatmul.mubr.msk.bf16.gmra.mrb[28].mxu1 %vm781_vm8, %v5503_v22 }
 0x15f   : > { %4391 = vmatmul.mubr.msk.bf16.gmra.mrb[28].mxu0 %vm781_vm8, %v3914_v26 }
 0x1d4   : > { %v4194_v9 = vpop.f32.mrb[0].mxu1 }
 0x1d5   : > { %v1895_v3 = vpop.f32.mrb[1].mxu1 }
 0x1d6   : > { %v4195_v29 = vpop.f32.mrb[2].mxu1 }
 0x1d7   : > { %v1898_v40 = vpop.f32.mrb[3].mxu1 }
 0x1dc   : > { %v4198_v27 = vpop.f32.mrb[4].mxu1 }
 0x1dd   : > { %v1911_v37 = vpop.f32.mrb[5].mxu1 }
 0x1de   : > { %v4199_v17 = vpop.f32.mrb[6].mxu1 }
 0x1df   : > { %v1914_v42 = vpop.f32.mrb[7].mxu1 }
 0x1e4   : > { %v5897_v51 = vpop.f32.mrb[8].mxu1 }
 0x1e5   : > { %v5899_v32 = vpop.f32.mrb[9].mxu1 }
 0x1e6   : > { %v5901_v44 = vpop.f32.mrb[10].mxu1 }
 0x1e7   : > { %v5903_v18 = vpop.f32.mrb[11].mxu1 }
 0x1ec   : > { %v5905_v22 = vpop.f32.mrb[12].mxu1 }
 0x1ed   : > { %v5907_v61 = vpop.f32.mrb[13].mxu1 }
 0x1ee   : > { %v5909_v12 = vpop.f32.mrb[14].mxu1 }
 0x1ef   : > { %v5911_v53 = vpop.f32.mrb[15].mxu1 }
 0x1fa   : > { %v4364_v50 = vpop.f32.mrb[0].mxu0 }
 0x1fb   : > { %v4396_v36 = vadd.f32 %v4364_v50, %v4194_v9  ;;  %v3200_v63 = vpop.f32.mrb[1].mxu0 }
 0x1fc   : > { %v4397_v28 = vadd.f32 %v3200_v63, %v1895_v3  ;;  %v4365_v11 = vpop.f32.mrb[2].mxu0 }
 0x1fd   : > { %3361 = vst.msk [vmem:[%s5918_s15 + $0x10] sm:$0xff] %vm781_vm8, %v4396_v36  ;;  %v4398_v16 = vadd.f32 %v4365_v11, %v4195_v29  ;;  %v3203_v23 = vpop.f32.mrb[3].mxu0  ;;  %v3463_v48 = vmul.f32 %v4396_v36, %v4396_v36  ;;  %v3394_v8 = vsel %vm781_vm8, %v4396_v36, 0.0 }
 0x1fe   : > { %3359 = vst.msk [vmem:[%s5918_s15] sm:$0xff] %vm781_vm8, %v4397_v28  ;;  %v3461_v15 = vmul.f32 %v4397_v28, %v4397_v28  ;;  %v4399_v31 = vadd.f32 %v3203_v23, %v1898_v40  ;;  %v3391_v47 = vsel %vm781_vm8, %v4397_v28, 0.0 }
 0x1ff   : > { %3362 = vst.msk [vmem:[%s5918_s15 + $0x18] sm:$0xff] %vm781_vm8, %v4398_v16  ;;  %v3464_v34 = vmul.f32 %v4398_v16, %v4398_v16  ;;  %v3496_v38 = vsel %vm781_vm8, %v3463_v48, 0.0  ;;  %v3396_v39 = vsel %vm781_vm8, %v4398_v16, 0.0 }
 0x200   : > { %3360 = vst.msk [vmem:[%s5918_s15 + $0x8] sm:$0xff] %vm781_vm8, %v4399_v31  ;;  %v3392_v46 = vsel %vm781_vm8, %v4399_v31, 0.0  ;;  %v3462_v55 = vmul.f32 %v4399_v31, %v4399_v31  ;;  %v3493_v1 = vsel %vm781_vm8, %v3461_v15, 0.0 }
 0x201   : > { %v3393_v49 = vadd.f32 %v3392_v46, %v3391_v47  ;;  %v3498_v25 = vsel %vm781_vm8, %v3464_v34, 0.0 }
 0x202   : > { %v3494_v52 = vsel %vm781_vm8, %v3462_v55, 0.0  ;;  %v4368_v59 = vpop.f32.mrb[4].mxu0 }
 0x203   : > { %v3395_v54 = vadd.f32 %v3394_v8, %v3393_v49  ;;  %v3495_v21 = vadd.f32 %v3494_v52, %v3493_v1  ;;  %v4400_v10 = vadd.f32 %v4368_v59, %v4198_v27  ;;  %v3216_v4 = vpop.f32.mrb[5].mxu0 }
 0x204   : > { %v4401_v60 = vadd.f32 %v3216_v4, %v1911_v37  ;;  %v4369_v2 = vpop.f32.mrb[6].mxu0 }
 0x205   : > { %v3497_v35 = vadd.f32 %v3496_v38, %v3495_v21  ;;  %3365 = vst.msk [vmem:[%s5918_s15 + $0x30] sm:$0xff] %vm781_vm8, %v4400_v10  ;;  %v3397_v43 = vadd.f32 %v3396_v39, %v3395_v54  ;;  %v3219_v7 = vpop.f32.mrb[7].mxu0  ;;  %v4402_v20 = vadd.f32 %v4369_v2, %v4199_v17  ;;  %v3467_v0 = vmul.f32 %v4400_v10, %v4400_v10 }
 0x206   : > { %3363 = vst.msk [vmem:[%s5918_s15 + $0x20] sm:$0xff] %vm781_vm8, %v4401_v60  ;;  %v3398_v5 = vsel %vm781_vm8, %v4401_v60, 0.0  ;;  %v3465_v30 = vmul.f32 %v4401_v60, %v4401_v60  ;;  %v4403_v45 = vadd.f32 %v3219_v7, %v1914_v42  ;;  %v3402_v6 = vsel %vm781_vm8, %v4400_v10, 0.0 }
 0x207   : > { %v3399_v33 = vadd.f32 %v3398_v5, %v3397_v43  ;;  %v3499_v58 = vadd.f32 %v3498_v25, %v3497_v35  ;;  %3366 = vst.msk [vmem:[%s5918_s15 + $0x38] sm:$0xff] %vm781_vm8, %v4402_v20  ;;  %v3468_v56 = vmul.f32 %v4402_v20, %v4402_v20  ;;  %v3404_v29 = vsel %vm781_vm8, %v4402_v20, 0.0 }
 0x208   : > { %v3500_v13 = vsel %vm781_vm8, %v3465_v30, 0.0  ;;  %3364 = vst.msk [vmem:[%s5918_s15 + $0x28] sm:$0xff] %vm781_vm8, %v4403_v45  ;;  %v3400_v57 = vsel %vm781_vm8, %v4403_v45, 0.0  ;;  %v3466_v62 = vmul.f32 %v4403_v45, %v4403_v45  ;;  %v3504_v17 = vsel %vm781_vm8, %v3467_v0, 0.0 }
 0x209   : > { %v3501_v19 = vadd.f32 %v3500_v13, %v3499_v58  ;;  %v3401_v41 = vadd.f32 %v3400_v57, %v3399_v33 }
 0x20a   : > { %v4372_v14 = vpop.f32.mrb[8].mxu0  ;;  %v3502_v26 = vsel %vm781_vm8, %v3466_v62, 0.0 }
 0x20b   : > { %v3403_v24 = vadd.f32 %v3402_v6, %v3401_v41  ;;  %v4404_v9 = vadd.f32 %v4372_v14, %v5897_v51  ;;  %v3232_v3 = vpop.f32.mrb[9].mxu0  ;;  %v3503_v40 = vadd.f32 %v3502_v26, %v3501_v19 }
 0x20c   : > { %v4405_v27 = vadd.f32 %v3232_v3, %v5899_v32  ;;  %v4373_v37 = vpop.f32.mrb[10].mxu0  ;;  %v3506_v32 = vsel %vm781_vm8, %v3468_v56, 0.0 }
 0x20d   : > { %3369 = vst.msk [vmem:[%s5918_s15 + $0x50] sm:$0xff] %vm781_vm8, %v4404_v9  ;;  %v3405_v42 = vadd.f32 %v3404_v29, %v3403_v24  ;;  %v4406_v50 = vadd.f32 %v4373_v37, %v5901_v44  ;;  %v3235_v36 = vpop.f32.mrb[11].mxu0  ;;  %v3505_v63 = vadd.f32 %v3504_v17, %v3503_v40  ;;  %v3471_v48 = vmul.f32 %v4404_v9, %v4404_v9 }
 0x20e   : > { %3367 = vst.msk [vmem:[%s5918_s15 + $0x40] sm:$0xff] %vm781_vm8, %v4405_v27  ;;  %v3406_v51 = vsel %vm781_vm8, %v4405_v27, 0.0  ;;  %v3469_v28 = vmul.f32 %v4405_v27, %v4405_v27  ;;  %v4407_v11 = vadd.f32 %v3235_v36, %v5903_v18  ;;  %v3410_v46 = vsel %vm781_vm8, %v4404_v9, 0.0 }
 0x20f   : > { %v3407_v16 = vadd.f32 %v3406_v51, %v3405_v42  ;;  %3370 = vst.msk [vmem:[%s5918_s15 + $0x58] sm:$0xff] %vm781_vm8, %v4406_v50  ;;  %v3507_v23 = vadd.f32 %v3506_v32, %v3505_v63  ;;  %v3472_v49 = vmul.f32 %v4406_v50, %v4406_v50  ;;  %v3412_v59 = vsel %vm781_vm8, %v4406_v50, 0.0 }
 0x210   : > { %v3508_v15 = vsel %vm781_vm8, %v3469_v28, 0.0  ;;  %3368 = vst.msk [vmem:[%s5918_s15 + $0x48] sm:$0xff] %vm781_vm8, %v4407_v11  ;;  %v3408_v44 = vsel %vm781_vm8, %v4407_v11, 0.0  ;;  %v3470_v31 = vmul.f32 %v4407_v11, %v4407_v11  ;;  %v3512_v38 = vsel %vm781_vm8, %v3471_v48, 0.0 }
 0x211   : > { %v3409_v47 = vadd.f32 %v3408_v44, %v3407_v16  ;;  %v3509_v55 = vadd.f32 %v3508_v15, %v3507_v23  ;;  %v3514_v5 = vsel %vm781_vm8, %v3472_v49, 0.0 }
 0x212   : > { %v3510_v18 = vsel %vm781_vm8, %v3470_v31, 0.0  ;;  %v4376_v34 = vpop.f32.mrb[12].mxu0 }
 0x213   : > { %v3411_v8 = vadd.f32 %v3410_v46, %v3409_v47  ;;  %v4408_v1 = vadd.f32 %v4376_v34, %v5905_v22  ;;  %v3248_v52 = vpop.f32.mrb[13].mxu0  ;;  %v3511_v54 = vadd.f32 %v3510_v18, %v3509_v55 }
 0x214   : > { %v4244_v21 = vpop.f32.mrb[16].mxu1  ;;  %v4409_v10 = vadd.f32 %v3248_v52, %v5907_v61  ;;  %v4377_v4 = vpop.f32.mrb[14].mxu0 }
 0x215   : > { %v2187_v39 = vpop.f32.mrb[17].mxu1  ;;  %3373 = vst.msk [vmem:[%s5918_s15 + $0x70] sm:$0xff] %vm781_vm8, %v4408_v1  ;;  %v3413_v60 = vadd.f32 %v3412_v59, %v3411_v8  ;;  %v4410_v2 = vadd.f32 %v4377_v4, %v5909_v12  ;;  %v3251_v25 = vpop.f32.mrb[15].mxu0  ;;  %v3513_v22 = vadd.f32 %v3512_v38, %v3511_v54  ;;  %v3475_v13 = vmul.f32 %v4408_v1, %v4408_v1 }
 0x216   : > { %v4245_v35 = vpop.f32.mrb[18].mxu1  ;;  %3371 = vst.msk [vmem:[%s5918_s15 + $0x60] sm:$0xff] %vm781_vm8, %v4409_v10  ;;  %v3414_v43 = vsel %vm781_vm8, %v4409_v10, 0.0  ;;  %v3473_v7 = vmul.f32 %v4409_v10, %v4409_v10  ;;  %v4411_v61 = vadd.f32 %v3251_v25, %v5911_v53  ;;  %v3418_v0 = vsel %vm781_vm8, %v4408_v1, 0.0 }
 0x217   : > { %v3415_v30 = vadd.f32 %v3414_v43, %v3413_v60  ;;  %v2190_v20 = vpop.f32.mrb[19].mxu1  ;;  %3374 = vst.msk [vmem:[%s5918_s15 + $0x78] sm:$0xff] %vm781_vm8, %v4410_v2  ;;  %v3515_v45 = vadd.f32 %v3514_v5, %v3513_v22  ;;  %v3476_v62 = vmul.f32 %v4410_v2, %v4410_v2  ;;  %v3420_v24 = vsel %vm781_vm8, %v4410_v2, 0.0 }
 0x218   : > { %v3516_v33 = vsel %vm781_vm8, %v3473_v7, 0.0  ;;  %3372 = vst.msk [vmem:[%s5918_s15 + $0x68] sm:$0xff] %vm781_vm8, %v4411_v61  ;;  %v3416_v12 = vsel %vm781_vm8, %v4411_v61, 0.0  ;;  %v3474_v58 = vmul.f32 %v4411_v61, %v4411_v61  ;;  %v3520_v40 = vsel %vm781_vm8, %v3475_v13, 0.0 }
 0x219   : > { %v3417_v57 = vadd.f32 %v3416_v12, %v3415_v30  ;;  %v3517_v53 = vadd.f32 %v3516_v33, %v3515_v45  ;;  %v3522_v11 = vsel %vm781_vm8, %v3476_v62, 0.0 }
 0x21a   : > { %v3518_v19 = vsel %vm781_vm8, %v3474_v58, 0.0  ;;  %v4380_v41 = vpop.f32.mrb[16].mxu0 }
 0x21b   : > { %v3419_v6 = vadd.f32 %v3418_v0, %v3417_v57  ;;  %v4412_v14 = vadd.f32 %v4380_v41, %v4244_v21  ;;  %v3264_v56 = vpop.f32.mrb[17].mxu0  ;;  %v3519_v26 = vadd.f32 %v3518_v19, %v3517_v53 }
 0x21c   : > { %v4248_v9 = vpop.f32.mrb[20].mxu1  ;;  %v4413_v3 = vadd.f32 %v3264_v56, %v2187_v39  ;;  %v4381_v29 = vpop.f32.mrb[18].mxu0 }
 0x21d   : > { %v2203_v27 = vpop.f32.mrb[21].mxu1  ;;  %3377 = vst.msk [vmem:[%s5918_s15 + $0x90] sm:$0xff] %vm781_vm8, %v4412_v14  ;;  %v3421_v37 = vadd.f32 %v3420_v24, %v3419_v6  ;;  %v4414_v17 = vadd.f32 %v4381_v29, %v4245_v35  ;;  %v3267_v42 = vpop.f32.mrb[19].mxu0  ;;  %v3521_v50 = vadd.f32 %v3520_v40, %v3519_v26  ;;  %v3479_v48 = vmul.f32 %v4412_v14, %v4412_v14 }
 0x21e   : > { %v4249_v36 = vpop.f32.mrb[22].mxu1  ;;  %3375 = vst.msk [vmem:[%s5918_s15 + $0x80] sm:$0xff] %vm781_vm8, %v4413_v3  ;;  %v3422_v63 = vsel %vm781_vm8, %v4413_v3, 0.0  ;;  %v3477_v51 = vmul.f32 %v4413_v3, %v4413_v3  ;;  %v4415_v28 = vadd.f32 %v3267_v42, %v2190_v20  ;;  %v3426_v46 = vsel %vm781_vm8, %v4412_v14, 0.0 }
 0x21f   : > { %v3423_v32 = vadd.f32 %v3422_v63, %v3421_v37  ;;  %v2206_v16 = vpop.f32.mrb[23].mxu1  ;;  %3378 = vst.msk [vmem:[%s5918_s15 + $0x98] sm:$0xff] %vm781_vm8, %v4414_v17  ;;  %v3523_v23 = vadd.f32 %v3522_v11, %v3521_v50  ;;  %v3480_v49 = vmul.f32 %v4414_v17, %v4414_v17  ;;  %v3428_v59 = vsel %vm781_vm8, %v4414_v17, 0.0 }
 0x220   : > { %v3524_v15 = vsel %vm781_vm8, %v3477_v51, 0.0  ;;  %3376 = vst.msk [vmem:[%s5918_s15 + $0x88] sm:$0xff] %vm781_vm8, %v4415_v28  ;;  %v3424_v44 = vsel %vm781_vm8, %v4415_v28, 0.0  ;;  %v3478_v31 = vmul.f32 %v4415_v28, %v4415_v28  ;;  %v3528_v38 = vsel %vm781_vm8, %v3479_v48, 0.0 }
 0x221   : > { %v3425_v47 = vadd.f32 %v3424_v44, %v3423_v32  ;;  %v3525_v55 = vadd.f32 %v3524_v15, %v3523_v23  ;;  %v3530_v5 = vsel %vm781_vm8, %v3480_v49, 0.0 }
 0x222   : > { %v3526_v18 = vsel %vm781_vm8, %v3478_v31, 0.0  ;;  %v4384_v34 = vpop.f32.mrb[20].mxu0 }
 0x223   : > { %v3427_v8 = vadd.f32 %v3426_v46, %v3425_v47  ;;  %v4416_v1 = vadd.f32 %v4384_v34, %v4248_v9  ;;  %v3280_v52 = vpop.f32.mrb[21].mxu0  ;;  %v3527_v54 = vadd.f32 %v3526_v18, %v3525_v55 }
 0x224   : > { %v4252_v21 = vpop.f32.mrb[24].mxu1  ;;  %v4417_v10 = vadd.f32 %v3280_v52, %v2203_v27  ;;  %v4385_v4 = vpop.f32.mrb[22].mxu0 }
 0x225   : > { %v2219_v39 = vpop.f32.mrb[25].mxu1  ;;  %3381 = vst.msk [vmem:[%s5918_s15 + $0xb0] sm:$0xff] %vm781_vm8, %v4416_v1  ;;  %v3429_v60 = vadd.f32 %v3428_v59, %v3427_v8  ;;  %v4418_v2 = vadd.f32 %v4385_v4, %v4249_v36  ;;  %v3283_v25 = vpop.f32.mrb[23].mxu0  ;;  %v3529_v22 = vadd.f32 %v3528_v38, %v3527_v54  ;;  %v3483_v13 = vmul.f32 %v4416_v1, %v4416_v1 }
 0x226   : > { %v4253_v35 = vpop.f32.mrb[26].mxu1  ;;  %3379 = vst.msk [vmem:[%s5918_s15 + $0xa0] sm:$0xff] %vm781_vm8, %v4417_v10  ;;  %v3430_v43 = vsel %vm781_vm8, %v4417_v10, 0.0  ;;  %v3481_v7 = vmul.f32 %v4417_v10, %v4417_v10  ;;  %v4419_v61 = vadd.f32 %v3283_v25, %v2206_v16  ;;  %v3434_v0 = vsel %vm781_vm8, %v4416_v1, 0.0 }
 0x227   : > { %v3431_v30 = vadd.f32 %v3430_v43, %v3429_v60  ;;  %v2222_v20 = vpop.f32.mrb[27].mxu1  ;;  %3382 = vst.msk [vmem:[%s5918_s15 + $0xb8] sm:$0xff] %vm781_vm8, %v4418_v2  ;;  %v3531_v45 = vadd.f32 %v3530_v5, %v3529_v22  ;;  %v3484_v62 = vmul.f32 %v4418_v2, %v4418_v2  ;;  %v3436_v24 = vsel %vm781_vm8, %v4418_v2, 0.0 }
 0x228   : > { %v3532_v33 = vsel %vm781_vm8, %v3481_v7, 0.0  ;;  %3380 = vst.msk [vmem:[%s5918_s15 + $0xa8] sm:$0xff] %vm781_vm8, %v4419_v61  ;;  %v3432_v12 = vsel %vm781_vm8, %v4419_v61, 0.0  ;;  %v3482_v58 = vmul.f32 %v4419_v61, %v4419_v61  ;;  %v3536_v40 = vsel %vm781_vm8, %v3483_v13, 0.0 }
 0x229   : > { %v3433_v57 = vadd.f32 %v3432_v12, %v3431_v30  ;;  %v3533_v53 = vadd.f32 %v3532_v33, %v3531_v45  ;;  %v3538_v11 = vsel %vm781_vm8, %v3484_v62, 0.0 }
 0x22a   : > { %v3534_v19 = vsel %vm781_vm8, %v3482_v58, 0.0  ;;  %v4388_v41 = vpop.f32.mrb[24].mxu0 }
 0x22b   : > { %v3435_v6 = vadd.f32 %v3434_v0, %v3433_v57  ;;  %v4420_v14 = vadd.f32 %v4388_v41, %v4252_v21  ;;  %v3296_v56 = vpop.f32.mrb[25].mxu0  ;;  %v3535_v26 = vadd.f32 %v3534_v19, %v3533_v53 }
 0x22c   : > { %v4256_v9 = vpop.f32.mrb[28].mxu1  ;;  %v4421_v3 = vadd.f32 %v3296_v56, %v2219_v39  ;;  %v4389_v29 = vpop.f32.mrb[26].mxu0 }
 0x22d   : > { %v2235_v27 = vpop.f32.mrb[29].mxu1  ;;  %3385 = vst.msk [vmem:[%s5918_s15 + $0xd0] sm:$0xff] %vm781_vm8, %v4420_v14  ;;  %v3437_v37 = vadd.f32 %v3436_v24, %v3435_v6  ;;  %v4422_v17 = vadd.f32 %v4389_v29, %v4253_v35  ;;  %v3299_v42 = vpop.f32.mrb[27].mxu0  ;;  %v3537_v50 = vadd.f32 %v3536_v40, %v3535_v26  ;;  %v3487_v48 = vmul.f32 %v4420_v14, %v4420_v14 }
 0x22e   : > { %v4257_v36 = vpop.f32.mrb[30].mxu1  ;;  %3383 = vst.msk [vmem:[%s5918_s15 + $0xc0] sm:$0xff] %vm781_vm8, %v4421_v3  ;;  %v3438_v63 = vsel %vm781_vm8, %v4421_v3, 0.0  ;;  %v3485_v51 = vmul.f32 %v4421_v3, %v4421_v3  ;;  %v4423_v28 = vadd.f32 %v3299_v42, %v2222_v20  ;;  %v3442_v46 = vsel %vm781_vm8, %v4420_v14, 0.0 }
 0x22f   : > { %v3439_v32 = vadd.f32 %v3438_v63, %v3437_v37  ;;  %v2238_v16 = vpop.f32.mrb[31].mxu1  ;;  %3386 = vst.msk [vmem:[%s5918_s15 + $0xd8] sm:$0xff] %vm781_vm8, %v4422_v17  ;;  %v3539_v23 = vadd.f32 %v3538_v11, %v3537_v50  ;;  %v3488_v49 = vmul.f32 %v4422_v17, %v4422_v17  ;;  %v3444_v59 = vsel %vm781_vm8, %v4422_v17, 0.0 }
 0x230   : > { %v3540_v15 = vsel %vm781_vm8, %v3485_v51, 0.0  ;;  %3384 = vst.msk [vmem:[%s5918_s15 + $0xc8] sm:$0xff] %vm781_vm8, %v4423_v28  ;;  %v3440_v44 = vsel %vm781_vm8, %v4423_v28, 0.0  ;;  %v3486_v31 = vmul.f32 %v4423_v28, %v4423_v28  ;;  %v3544_v4 = vsel %vm781_vm8, %v3487_v48, 0.0 }
 0x231   : > { %v3441_v47 = vadd.f32 %v3440_v44, %v3439_v32  ;;  %v3541_v55 = vadd.f32 %v3540_v15, %v3539_v23  ;;  %v3546_v43 = vsel %vm781_vm8, %v3488_v49, 0.0 }
 0x232   : > { %v3542_v18 = vsel %vm781_vm8, %v3486_v31, 0.0  ;;  %v4392_v34 = vpop.f32.mrb[28].mxu0 }
 0x233   : > { %v3443_v8 = vadd.f32 %v3442_v46, %v3441_v47  ;;  %v4424_v1 = vadd.f32 %v4392_v34, %v4256_v9  ;;  %v3312_v52 = vpop.f32.mrb[29].mxu0  ;;  %v3543_v54 = vadd.f32 %v3542_v18, %v3541_v55 }
 0x234   : > { %v4425_v21 = vadd.f32 %v3312_v52, %v2235_v27  ;;  %v4393_v10 = vpop.f32.mrb[30].mxu0 }
 0x235   : > { %3389 = vst.msk [vmem:[%s5918_s15 + $0xf0] sm:$0xff] %vm781_vm8, %v4424_v1  ;;  %v3445_v38 = vadd.f32 %v3444_v59, %v3443_v8  ;;  %v4426_v39 = vadd.f32 %v4393_v10, %v4257_v36  ;;  %v3315_v60 = vpop.f32.mrb[31].mxu0  ;;  %v3545_v2 = vadd.f32 %v3544_v4, %v3543_v54  ;;  %v3491_v45 = vmul.f32 %v4424_v1, %v4424_v1 }
 0x236   : > { %3387 = vst.msk [vmem:[%s5918_s15 + $0xe0] sm:$0xff] %vm781_vm8, %v4425_v21  ;;  %v3446_v25 = vsel %vm781_vm8, %v4425_v21, 0.0  ;;  %v3489_v22 = vmul.f32 %v4425_v21, %v4425_v21  ;;  %v4427_v35 = vadd.f32 %v3315_v60, %v2238_v16  ;;  %v3450_v12 = vsel %vm781_vm8, %v4424_v1, 0.0 }
 0x237   : > { %v3447_v7 = vadd.f32 %v3446_v25, %v3445_v38  ;;  %3390 = vst.msk [vmem:[%s5918_s15 + $0xf8] sm:$0xff] %vm781_vm8, %v4426_v39  ;;  %v3547_v61 = vadd.f32 %v3546_v43, %v3545_v2  ;;  %v3492_v57 = vmul.f32 %v4426_v39, %v4426_v39  ;;  %v3452_v53 = vsel %vm781_vm8, %v4426_v39, 0.0 }
 0x238   : > { %v3548_v5 = vsel %vm781_vm8, %v3489_v22, 0.0  ;;  %3388 = vst.msk [vmem:[%s5918_s15 + $0xe8] sm:$0xff] %vm781_vm8, %v4427_v35  ;;  %v3448_v30 = vsel %vm781_vm8, %v4427_v35, 0.0  ;;  %v3490_v20 = vmul.f32 %v4427_v35, %v4427_v35  ;;  %v3552_v41 = vsel %vm781_vm8, %v3491_v45, 0.0 }
 0x239   : > { %v3449_v33 = vadd.f32 %v3448_v30, %v3447_v7  ;;  %v3549_v58 = vadd.f32 %v3548_v5, %v3547_v61  ;;  %v3554_v14 = vsel %vm781_vm8, %v3492_v57, 0.0 }
 0x23a   : > { %v3550_v13 = vsel %vm781_vm8, %v3490_v20, 0.0 }
 0x23b   : > { %v3451_v0 = vadd.f32 %v3450_v12, %v3449_v33  ;;  %v3551_v19 = vadd.f32 %v3550_v13, %v3549_v58 }
 0x23d   : > { %v3453_v62 = vadd.f32 %v3452_v53, %v3451_v0  ;;  %v3553_v6 = vadd.f32 %v3552_v41, %v3551_v19 }
 0x23f   : > { %v3454_v56 = vrot.slane %v3453_v62, 4  ;;  %v3555_v24 = vadd.f32 %v3554_v14, %v3553_v6 }
 0x241   : > { %v3455_v26 = vadd.f32 %v3454_v56, %v3453_v62  ;;  %v3556_v9 = vrot.slane %v3555_v24, 4 }
 0x243   : > { %v3456_v3 = vrot.slane %v3455_v26, 2  ;;  %v3557_v29 = vadd.f32 %v3556_v9, %v3555_v24 }
 0x245   : > { %v3457_v40 = vadd.f32 %v3456_v3, %v3455_v26  ;;  %v3558_v27 = vrot.slane %v3557_v29, 2 }
 0x247   : > { %v3458_v37 = vrot.slane %v3457_v40, 1  ;;  %v3559_v17 = vadd.f32 %v3558_v27, %v3557_v29 }
 0x249   : > { %v3459_v42 = vadd.f32 %v3458_v37, %v3457_v40  ;;  %v3560_v50 = vrot.slane %v3559_v17, 1 }
 0x24b   : > { %3460 = vst.msk [vmem:[%s181_s19] sm:$0x1] %vm234_vm2, %v3459_v42  ;;  %v3561_v36 = vadd.f32 %v3560_v50, %v3559_v17 }
 0x24d   : > { %3562 = vst.msk [vmem:[%s181_s19 + $0x1] sm:$0x1] %vm234_vm2, %v3561_v36 }
 0x24e PF: > { %s14_s12 = sadd.s32 1, %s4711_s12  }
 0x24f   : > { %p11_p4 = scmp.ge.s32.totalorder %s14_s12, 4  }
 0x251   :  { %13 = sbr.rel (!%p11_p4) target bundleno = 1 (0x1), region = 80 }

</bundles_post_ra>
